<compile_context>
chip_gen: v7x
topology: tpu7x:2x2x1
jax: 0.10.0
libtpu: 0.0.40
codegen_flags: <defaults>
</compile_context>

<pallas_src>
import functools

import jax
import jax.numpy as jnp
from jax.experimental import pallas as pl
from jax.experimental.pallas import tpu as pltpu


# Matmul-operand dtype (weights are stored in this dtype in params). Accumulation,
# LayerNorm statistics, softmax and residuals stay float32 regardless.
MXU_DTYPE = jnp.bfloat16
LN_EPS = 1e-5


def _vmem_limit_bytes():
    """Generation-aware scoped-VMEM limit: ~3/4 of physical VMEM (≈96 MiB on 128 MiB
    v5e/v6e parts, ≈48 MiB on 64 MiB v7x), falling back to 48 MiB if the query fails."""
    try:
        info = pltpu.get_tpu_info()
        cap = getattr(info, "vmem_capacity_bytes", None)
        if cap:
            return int(cap) * 3 // 4
    except Exception:
        pass
    return 48 * 1024 * 1024


# ----------------------------- in-kernel building blocks -----------------------------

def _layer_norm(x, g_ref, b_ref):
    # x: [n, d] f32; g/b refs: [1, d] f32
    mu = jnp.mean(x, axis=-1, keepdims=True)
    var = jnp.mean(jnp.square(x - mu), axis=-1, keepdims=True)
    return (x - mu) * jax.lax.rsqrt(var + LN_EPS) * g_ref[...] + b_ref[...]


def _mm(x_f32, w_ref, b_ref=None):
    # y = x @ w (+ b); bf16 operands, f32 accumulation.
    y = jnp.dot(x_f32.astype(MXU_DTYPE), w_ref[...].astype(MXU_DTYPE),
                preferred_element_type=jnp.float32)
    if b_ref is not None:
        y = y + b_ref[...]
    return y


def _mha_core(q_all, k_all, v_all, wo_ref, bo_ref, *, num_heads, head_dim):
    """Multi-head attention with the head merge fused into the output projection:
         out = sum_h softmax(q_h k_h^T / sqrt(hd)) v_h @ wo[h] + bo
       q_all/k_all/v_all: [n, H*hd] f32 packed activations; wo_ref: [H, hd, dz];
       the [n, H*hd] concat of head outputs is never materialized."""
    scale = 1.0 / (head_dim ** 0.5)
    nt_dims = (((1,), (1,)), ((), ()))  # contract last dims of both operands (q k^T)
    out = None
    for h in range(num_heads):
        sl = slice(h * head_dim, (h + 1) * head_dim)  # static lane slice of packed act
        q = q_all[:, sl].astype(MXU_DTYPE)
        k = k_all[:, sl].astype(MXU_DTYPE)
        v = v_all[:, sl].astype(MXU_DTYPE)
        s = jax.lax.dot_general(q, k, nt_dims,
                                preferred_element_type=jnp.float32) * scale
        s = s - jnp.max(s, axis=-1, keepdims=True)
        p = jnp.exp(s)
        p = p / jnp.sum(p, axis=-1, keepdims=True)        # exact softmax (f32)
        o = jnp.dot(p.astype(MXU_DTYPE), v, preferred_element_type=jnp.float32)
        c = jnp.dot(o.astype(MXU_DTYPE), wo_ref[h].astype(MXU_DTYPE),
                    preferred_element_type=jnp.float32)   # head-merge fused into proj
        out = c if out is None else out + c
    return out + bo_ref[...]


def _transformer_layer(x, it, *, num_heads, head_dim):
    """Pre-norm self-attention transformer encoder layer (dropout omitted: inference)."""
    (ln1_g, ln1_b, wqkv, bqkv, wo, bo,
     ln2_g, ln2_b, w1, b1, w2, b2) = (next(it) for _ in range(12))
    dht = num_heads * head_dim

    # LN1 + packed Q|K|V projection (single matmul), per-head split via lane slices.
    xn = _layer_norm(x, ln1_g, ln1_b)
    qkv = _mm(xn, wqkv, bqkv)                              # [n, 3*H*hd]
    attn = _mha_core(qkv[:, :dht], qkv[:, dht:2 * dht], qkv[:, 2 * dht:],
                     wo, bo, num_heads=num_heads, head_dim=head_dim)
    x = x + attn                                           # residual (f32)

    # LN2 + feed-forward (w1 + ReLU, w2) + residual; intermediate stays on-chip.
    xn2 = _layer_norm(x, ln2_g, ln2_b)
    h = jnp.maximum(_mm(xn2, w1, b1), 0.0)                 # [n, ff_dim]
    return x + _mm(h, w2, b2)


def _anp_fused_kernel(zc_ref, xc_ref, xt_ref, *rest,
                      num_layers, num_heads, head_dim):
    out_ref = rest[-1]
    it = iter(rest[:-1])

    # xy_encoder: 2-layer MLP on cat(xc, yc) (concatenated in the wrapper).
    zc = zc_ref[0].astype(jnp.float32)                     # [nc, dx+dy]
    xy_w1, xy_b1, xy_w2, xy_b2 = (next(it) for _ in range(4))
    zc = _mm(jnp.maximum(_mm(zc, xy_w1, xy_b1), 0.0), xy_w2, xy_b2)   # [nc, dz]

    # transformer_encoder over the context set.
    for _ in range(num_layers):
        zc = _transformer_layer(zc, it, num_heads=num_heads, head_dim=head_dim)

    # mha_layer: cross attention, Q <- xt, K <- xc, V <- zc.
    # TODO(synk): tnp's MultiHeadAttentionLayer can additionally wrap this in layer-norm
    # / feed-forward residual blocks depending on config; only the core cross-attention
    # is implemented here.
    xt = xt_ref[0].astype(jnp.float32)                     # [nt, dx]
    xc = xc_ref[0].astype(jnp.float32)                     # [nc, dx]
    wq, bq, wk, bk, wv, bv, wo_m, bo_m = (next(it) for _ in range(8))
    q_all = _mm(xt, wq, bq)                                # [nt, H*hd]
    k_all = _mm(xc, wk, bk)                                # [nc, H*hd]
    v_all = _mm(zc, wv, bv)                                # [nc, H*hd]
    zt = _mha_core(q_all, k_all, v_all, wo_m, bo_m,
                   num_heads=num_heads, head_dim=head_dim) # [nt, dz]
    out_ref[0] = zt.astype(out_ref.dtype)


# ----------------------------- wrapper (one pallas_call) -----------------------------

def _flatten_params(params):
    xy = params["xy"]
    flat = [xy["w1"], xy["b1"], xy["w2"], xy["b2"]]
    for p in params["layers"]:
        flat += [p["ln1_g"], p["ln1_b"], p["wqkv"], p["bqkv"], p["wo"], p["bo"],
                 p["ln2_g"], p["ln2_b"], p["w1"], p["b1"], p["w2"], p["b2"]]
    mp = params["mha"]
    flat += [mp["wq"], mp["bq"], mp["wk"], mp["bk"], mp["wv"], mp["bv"],
             mp["wo"], mp["bo"]]
    return flat


def anp_encoder_forward(params, xc, yc, xt, *, num_heads, head_dim):
    """xc: [m, nc, dx], yc: [m, nc, dy], xt: [m, nt, dx] -> zt: [m, nt, dz]."""
    m, nc, dx = xc.shape
    nt = xt.shape[1]
    dy = yc.shape[2]
    dz = params["xy"]["w2"].shape[1]

    # x = cat(xc, xt); x_encoder = Identity; split back (kept literal for fidelity).
    x = jnp.concatenate([xc, xt], axis=1)
    xc_encoded, xt_encoded = x[:, :nc], x[:, nc:]
    yc_encoded = yc                                        # y_encoder = nn.Identity()
    zc_in = jnp.concatenate([xc_encoded, yc_encoded], axis=-1)   # [m, nc, dx+dy]

    flat_w = _flatten_params(params)

    def _const_spec(w):
        nd = w.ndim
        return pl.BlockSpec(w.shape, lambda i, _nd=nd: (0,) * _nd)  # grid-invariant

    in_specs = [
        pl.BlockSpec((1, nc, dx + dy), lambda i: (i, 0, 0)),
        pl.BlockSpec((1, nc, dx), lambda i: (i, 0, 0)),
        pl.BlockSpec((1, nt, dx), lambda i: (i, 0, 0)),
    ] + [_const_spec(w) for w in flat_w]

    kernel = functools.partial(
        _anp_fused_kernel,
        num_layers=len(params["layers"]),
        num_heads=num_heads,
        head_dim=head_dim,
    )

    return pl.pallas_call(
        kernel,
        grid=(m,),                                          # one batch element per step
        in_specs=in_specs,
        out_specs=pl.BlockSpec((1, nt, dz), lambda i: (i, 0, 0)),
        out_shape=jax.ShapeDtypeStruct((m, nt, dz), jnp.float32),
        compiler_params=pltpu.CompilerParams(
            dimension_semantics=("parallel",),              # megacore: batch across TCs
            vmem_limit_bytes=_vmem_limit_bytes()),
    )(zc_in, xc_encoded, xt_encoded, *flat_w)


# ----------------------------- deterministic parameter init -----------------------------

def init_params(key, dx, dy, dz, num_heads, head_dim, ff_dim, num_layers):
    keys = iter(jax.random.split(key, 8 * num_layers + 16))

    def dense(din, dout):
        w = (jax.random.normal(next(keys), (din, dout), jnp.float32)
             * (1.0 / (din ** 0.5))).astype(MXU_DTYPE)      # matmul weights in bf16
        b = jnp.zeros((1, dout), jnp.float32)                # biases stay f32
        return w, b

    params = {}
    w1, b1 = dense(dx + dy, dz)
    w2, b2 = dense(dz, dz)
    params["xy"] = dict(w1=w1, b1=b1, w2=w2, b2=b2)

    dht = num_heads * head_dim
    layers = []
    for _ in range(num_layers):
        p = {
            "ln1_g": jnp.ones((1, dz), jnp.float32), "ln1_b": jnp.zeros((1, dz), jnp.float32),
            "ln2_g": jnp.ones((1, dz), jnp.float32), "ln2_b": jnp.zeros((1, dz), jnp.float32),
        }
        wq, bq = dense(dz, dht)
        wk, bk = dense(dz, dht)
        wv, bv = dense(dz, dht)
        p["wqkv"] = jnp.concatenate([wq, wk, wv], axis=1)    # packed Q|K|V projection
        p["bqkv"] = jnp.concatenate([bq, bk, bv], axis=1)
        wo, bo = dense(dht, dz)
        p["wo"] = wo.reshape(num_heads, head_dim, dz)        # per-head slabs for fused merge
        p["bo"] = bo
        p["w1"], p["b1"] = dense(dz, ff_dim)
        p["w2"], p["b2"] = dense(ff_dim, dz)
        layers.append(p)
    params["layers"] = layers

    mp = {}
    mp["wq"], mp["bq"] = dense(dx, dht)
    mp["wk"], mp["bk"] = dense(dx, dht)
    mp["wv"], mp["bv"] = dense(dz, dht)
    wo, bo = dense(dht, dz)
    mp["wo"] = wo.reshape(num_heads, head_dim, dz)
    mp["bo"] = bo
    params["mha"] = mp
    return params


# ----------------------------- main -----------------------------

if __name__ == "__main__":
    m, nc, nt, dx, dy = 2, 8, 8, 4, 4
    dz, num_heads, head_dim, ff_dim, num_layers = 32, 4, 8, 64, 2

    key = jax.random.PRNGKey(0)
    k_xc, k_yc, k_xt, k_par = jax.random.split(key, 4)
    xc = jax.random.normal(k_xc, (m, nc, dx), jnp.float32)
    yc = jax.random.normal(k_yc, (m, nc, dy), jnp.float32)
    xt = jax.random.normal(k_xt, (m, nt, dx), jnp.float32)

    params = init_params(k_par, dx, dy, dz, num_heads, head_dim, ff_dim, num_layers)

    fwd = jax.jit(functools.partial(anp_encoder_forward,
                                    num_heads=num_heads, head_dim=head_dim))
    zt = fwd(params, xc, yc, xt)
    jax.block_until_ready(zt)

    assert zt.shape == (m, nt, dz), zt.shape
    assert bool(jnp.all(jnp.isfinite(zt)))
    print("KERNEL_OK")
</pallas_src>

<mosaic_0001>
module attributes {stable_mosaic.version = 11 : i64} {
  func.func @_anp_fused_kernel(%arg0: i32, %arg1: memref<1x8x8xf32, #tpu.memory_space<vmem>>, %arg2: memref<1x8x4xf32, #tpu.memory_space<vmem>>, %arg3: memref<1x8x4xf32, #tpu.memory_space<vmem>>, %arg4: memref<8x32xbf16, #tpu.memory_space<vmem>>, %arg5: memref<1x32xf32, #tpu.memory_space<vmem>>, %arg6: memref<32x32xbf16, #tpu.memory_space<vmem>>, %arg7: memref<1x32xf32, #tpu.memory_space<vmem>>, %arg8: memref<1x32xf32, #tpu.memory_space<vmem>>, %arg9: memref<1x32xf32, #tpu.memory_space<vmem>>, %arg10: memref<32x96xbf16, #tpu.memory_space<vmem>>, %arg11: memref<1x96xf32, #tpu.memory_space<vmem>>, %arg12: memref<4x8x32xbf16, #tpu.memory_space<vmem>>, %arg13: memref<1x32xf32, #tpu.memory_space<vmem>>, %arg14: memref<1x32xf32, #tpu.memory_space<vmem>>, %arg15: memref<1x32xf32, #tpu.memory_space<vmem>>, %arg16: memref<32x64xbf16, #tpu.memory_space<vmem>>, %arg17: memref<1x64xf32, #tpu.memory_space<vmem>>, %arg18: memref<64x32xbf16, #tpu.memory_space<vmem>>, %arg19: memref<1x32xf32, #tpu.memory_space<vmem>>, %arg20: memref<1x32xf32, #tpu.memory_space<vmem>>, %arg21: memref<1x32xf32, #tpu.memory_space<vmem>>, %arg22: memref<32x96xbf16, #tpu.memory_space<vmem>>, %arg23: memref<1x96xf32, #tpu.memory_space<vmem>>, %arg24: memref<4x8x32xbf16, #tpu.memory_space<vmem>>, %arg25: memref<1x32xf32, #tpu.memory_space<vmem>>, %arg26: memref<1x32xf32, #tpu.memory_space<vmem>>, %arg27: memref<1x32xf32, #tpu.memory_space<vmem>>, %arg28: memref<32x64xbf16, #tpu.memory_space<vmem>>, %arg29: memref<1x64xf32, #tpu.memory_space<vmem>>, %arg30: memref<64x32xbf16, #tpu.memory_space<vmem>>, %arg31: memref<1x32xf32, #tpu.memory_space<vmem>>, %arg32: memref<4x32xbf16, #tpu.memory_space<vmem>>, %arg33: memref<1x32xf32, #tpu.memory_space<vmem>>, %arg34: memref<4x32xbf16, #tpu.memory_space<vmem>>, %arg35: memref<1x32xf32, #tpu.memory_space<vmem>>, %arg36: memref<32x32xbf16, #tpu.memory_space<vmem>>, %arg37: memref<1x32xf32, #tpu.memory_space<vmem>>, %arg38: memref<4x8x32xbf16, #tpu.memory_space<vmem>>, %arg39: memref<1x32xf32, #tpu.memory_space<vmem>>, %arg40: memref<1x8x32xf32, #tpu.memory_space<vmem>>) attributes {dimension_semantics = [#tpu.dimension_semantics<parallel>], iteration_bounds = array<i64: 2>, scalar_prefetch = 0 : i64, scratch_operands = 0 : i64, tpu.core_type = #tpu.core_type<tc>, window_params = [{transform_indices = @transform_0, window_bounds = array<i64: 1, 8, 8>}, {transform_indices = @transform_1, window_bounds = array<i64: 1, 8, 4>}, {transform_indices = @transform_2, window_bounds = array<i64: 1, 8, 4>}, {pipeline_mode = #tpu.pipeline_mode<synchronous>, transform_indices = @transform_3, window_bounds = array<i64: 8, 32>}, {pipeline_mode = #tpu.pipeline_mode<synchronous>, transform_indices = @transform_4, window_bounds = array<i64: 1, 32>}, {pipeline_mode = #tpu.pipeline_mode<synchronous>, transform_indices = @transform_5, window_bounds = array<i64: 32, 32>}, {pipeline_mode = #tpu.pipeline_mode<synchronous>, transform_indices = @transform_6, window_bounds = array<i64: 1, 32>}, {pipeline_mode = #tpu.pipeline_mode<synchronous>, transform_indices = @transform_7, window_bounds = array<i64: 1, 32>}, {pipeline_mode = #tpu.pipeline_mode<synchronous>, transform_indices = @transform_8, window_bounds = array<i64: 1, 32>}, {pipeline_mode = #tpu.pipeline_mode<synchronous>, transform_indices = @transform_9, window_bounds = array<i64: 32, 96>}, {pipeline_mode = #tpu.pipeline_mode<synchronous>, transform_indices = @transform_10, window_bounds = array<i64: 1, 96>}, {pipeline_mode = #tpu.pipeline_mode<synchronous>, transform_indices = @transform_11, window_bounds = array<i64: 4, 8, 32>}, {pipeline_mode = #tpu.pipeline_mode<synchronous>, transform_indices = @transform_12, window_bounds = array<i64: 1, 32>}, {pipeline_mode = #tpu.pipeline_mode<synchronous>, transform_indices = @transform_13, window_bounds = array<i64: 1, 32>}, {pipeline_mode = #tpu.pipeline_mode<synchronous>, transform_indices = @transform_14, window_bounds = array<i64: 1, 32>}, {pipeline_mode = #tpu.pipeline_mode<synchronous>, transform_indices = @transform_15, window_bounds = array<i64: 32, 64>}, {pipeline_mode = #tpu.pipeline_mode<synchronous>, transform_indices = @transform_16, window_bounds = array<i64: 1, 64>}, {pipeline_mode = #tpu.pipeline_mode<synchronous>, transform_indices = @transform_17, window_bounds = array<i64: 64, 32>}, {pipeline_mode = #tpu.pipeline_mode<synchronous>, transform_indices = @transform_18, window_bounds = array<i64: 1, 32>}, {pipeline_mode = #tpu.pipeline_mode<synchronous>, transform_indices = @transform_19, window_bounds = array<i64: 1, 32>}, {pipeline_mode = #tpu.pipeline_mode<synchronous>, transform_indices = @transform_20, window_bounds = array<i64: 1, 32>}, {pipeline_mode = #tpu.pipeline_mode<synchronous>, transform_indices = @transform_21, window_bounds = array<i64: 32, 96>}, {pipeline_mode = #tpu.pipeline_mode<synchronous>, transform_indices = @transform_22, window_bounds = array<i64: 1, 96>}, {pipeline_mode = #tpu.pipeline_mode<synchronous>, transform_indices = @transform_23, window_bounds = array<i64: 4, 8, 32>}, {pipeline_mode = #tpu.pipeline_mode<synchronous>, transform_indices = @transform_24, window_bounds = array<i64: 1, 32>}, {pipeline_mode = #tpu.pipeline_mode<synchronous>, transform_indices = @transform_25, window_bounds = array<i64: 1, 32>}, {pipeline_mode = #tpu.pipeline_mode<synchronous>, transform_indices = @transform_26, window_bounds = array<i64: 1, 32>}, {pipeline_mode = #tpu.pipeline_mode<synchronous>, transform_indices = @transform_27, window_bounds = array<i64: 32, 64>}, {pipeline_mode = #tpu.pipeline_mode<synchronous>, transform_indices = @transform_28, window_bounds = array<i64: 1, 64>}, {pipeline_mode = #tpu.pipeline_mode<synchronous>, transform_indices = @transform_29, window_bounds = array<i64: 64, 32>}, {pipeline_mode = #tpu.pipeline_mode<synchronous>, transform_indices = @transform_30, window_bounds = array<i64: 1, 32>}, {pipeline_mode = #tpu.pipeline_mode<synchronous>, transform_indices = @transform_31, window_bounds = array<i64: 4, 32>}, {pipeline_mode = #tpu.pipeline_mode<synchronous>, transform_indices = @transform_32, window_bounds = array<i64: 1, 32>}, {pipeline_mode = #tpu.pipeline_mode<synchronous>, transform_indices = @transform_33, window_bounds = array<i64: 4, 32>}, {pipeline_mode = #tpu.pipeline_mode<synchronous>, transform_indices = @transform_34, window_bounds = array<i64: 1, 32>}, {pipeline_mode = #tpu.pipeline_mode<synchronous>, transform_indices = @transform_35, window_bounds = array<i64: 32, 32>}, {pipeline_mode = #tpu.pipeline_mode<synchronous>, transform_indices = @transform_36, window_bounds = array<i64: 1, 32>}, {pipeline_mode = #tpu.pipeline_mode<synchronous>, transform_indices = @transform_37, window_bounds = array<i64: 4, 8, 32>}, {pipeline_mode = #tpu.pipeline_mode<synchronous>, transform_indices = @transform_38, window_bounds = array<i64: 1, 32>}, {transform_indices = @transform_39, window_bounds = array<i64: 1, 8, 32>}]} {
    %c0 = arith.constant 0 : index
    %c0_0 = arith.constant 0 : index
    %c0_1 = arith.constant 0 : index
    %0 = vector.load %arg1[%c0, %c0_0, %c0_1] : memref<1x8x8xf32, #tpu.memory_space<vmem>>, vector<1x8x8xf32>
    %1 = vector.shape_cast %0 : vector<1x8x8xf32> to vector<8x8xf32>
    %2 = arith.truncf %1 : vector<8x8xf32> to vector<8x8xbf16>
    %c0_2 = arith.constant 0 : index
    %c0_3 = arith.constant 0 : index
    %3 = vector.load %arg4[%c0_2, %c0_3] : memref<8x32xbf16, #tpu.memory_space<vmem>>, vector<8x32xbf16>
    %cst = arith.constant dense<0.000000e+00> : vector<8x32xf32>
    %4 = tpu.matmul %2, %3, %cst {dimension_numbers = #tpu.dot_dimension_numbers<[1], [0], [0], [1], [0, 0, 1, 1], [], []>} : vector<8x8xbf16>, vector<8x32xbf16>, vector<8x32xf32> -> vector<8x32xf32>
    %c0_4 = arith.constant 0 : index
    %c0_5 = arith.constant 0 : index
    %5 = vector.load %arg5[%c0_4, %c0_5] : memref<1x32xf32, #tpu.memory_space<vmem>>, vector<1x32xf32>
    %6 = vector.broadcast %5 : vector<1x32xf32> to vector<8x32xf32>
    %7 = arith.addf %4, %6 : vector<8x32xf32>
    %cst_6 = arith.constant 0.000000e+00 : f32
    %8 = vector.broadcast %cst_6 : f32 to vector<8x32xf32>
    %9 = arith.maximumf %7, %8 : vector<8x32xf32>
    %10 = arith.truncf %9 : vector<8x32xf32> to vector<8x32xbf16>
    %c0_7 = arith.constant 0 : index
    %c0_8 = arith.constant 0 : index
    %11 = vector.load %arg6[%c0_7, %c0_8] : memref<32x32xbf16, #tpu.memory_space<vmem>>, vector<32x32xbf16>
    %cst_9 = arith.constant dense<0.000000e+00> : vector<8x32xf32>
    %12 = tpu.matmul %10, %11, %cst_9 {dimension_numbers = #tpu.dot_dimension_numbers<[1], [0], [0], [1], [0, 0, 1, 1], [], []>} : vector<8x32xbf16>, vector<32x32xbf16>, vector<8x32xf32> -> vector<8x32xf32>
    %c0_10 = arith.constant 0 : index
    %c0_11 = arith.constant 0 : index
    %13 = vector.load %arg7[%c0_10, %c0_11] : memref<1x32xf32, #tpu.memory_space<vmem>>, vector<1x32xf32>
    %14 = vector.broadcast %13 : vector<1x32xf32> to vector<8x32xf32>
    %15 = arith.addf %12, %14 : vector<8x32xf32>
    %cst_12 = arith.constant dense<0.000000e+00> : vector<8xf32>
    %16 = vector.multi_reduction <add>, %15, %cst_12 [1] : vector<8x32xf32> to vector<8xf32>
    %17 = vector.shape_cast %16 : vector<8xf32> to vector<8x1xf32>
    %cst_13 = arith.constant 3.200000e+01 : f32
    %18 = vector.broadcast %cst_13 : f32 to vector<8x1xf32>
    %19 = arith.divf %17, %18 : vector<8x1xf32>
    %20 = vector.broadcast %19 : vector<8x1xf32> to vector<8x32xf32>
    %21 = arith.subf %15, %20 : vector<8x32xf32>
    %22 = arith.mulf %21, %21 : vector<8x32xf32>
    %cst_14 = arith.constant dense<0.000000e+00> : vector<8xf32>
    %23 = vector.multi_reduction <add>, %22, %cst_14 [1] : vector<8x32xf32> to vector<8xf32>
    %24 = vector.shape_cast %23 : vector<8xf32> to vector<8x1xf32>
    %cst_15 = arith.constant 3.200000e+01 : f32
    %25 = vector.broadcast %cst_15 : f32 to vector<8x1xf32>
    %26 = arith.divf %24, %25 : vector<8x1xf32>
    %27 = vector.broadcast %19 : vector<8x1xf32> to vector<8x32xf32>
    %28 = arith.subf %15, %27 : vector<8x32xf32>
    %cst_16 = arith.constant 9.99999974E-6 : f32
    %29 = vector.broadcast %cst_16 : f32 to vector<8x1xf32>
    %30 = arith.addf %26, %29 : vector<8x1xf32>
    %31 = math.rsqrt %30 : vector<8x1xf32>
    %32 = vector.broadcast %31 : vector<8x1xf32> to vector<8x32xf32>
    %33 = arith.mulf %28, %32 : vector<8x32xf32>
    %c0_17 = arith.constant 0 : index
    %c0_18 = arith.constant 0 : index
    %34 = vector.load %arg8[%c0_17, %c0_18] : memref<1x32xf32, #tpu.memory_space<vmem>>, vector<1x32xf32>
    %35 = vector.broadcast %34 : vector<1x32xf32> to vector<8x32xf32>
    %36 = arith.mulf %33, %35 : vector<8x32xf32>
    %c0_19 = arith.constant 0 : index
    %c0_20 = arith.constant 0 : index
    %37 = vector.load %arg9[%c0_19, %c0_20] : memref<1x32xf32, #tpu.memory_space<vmem>>, vector<1x32xf32>
    %38 = vector.broadcast %37 : vector<1x32xf32> to vector<8x32xf32>
    %39 = arith.addf %36, %38 : vector<8x32xf32>
    %40 = arith.truncf %39 : vector<8x32xf32> to vector<8x32xbf16>
    %c0_21 = arith.constant 0 : index
    %c0_22 = arith.constant 0 : index
    %41 = vector.load %arg10[%c0_21, %c0_22] : memref<32x96xbf16, #tpu.memory_space<vmem>>, vector<32x96xbf16>
    %cst_23 = arith.constant dense<0.000000e+00> : vector<8x96xf32>
    %42 = tpu.matmul %40, %41, %cst_23 {dimension_numbers = #tpu.dot_dimension_numbers<[1], [0], [0], [1], [0, 0, 1, 1], [], []>} : vector<8x32xbf16>, vector<32x96xbf16>, vector<8x96xf32> -> vector<8x96xf32>
    %c0_24 = arith.constant 0 : index
    %c0_25 = arith.constant 0 : index
    %43 = vector.load %arg11[%c0_24, %c0_25] : memref<1x96xf32, #tpu.memory_space<vmem>>, vector<1x96xf32>
    %44 = vector.broadcast %43 : vector<1x96xf32> to vector<8x96xf32>
    %45 = arith.addf %42, %44 : vector<8x96xf32>
    %46 = vector.extract_strided_slice %45 {offsets = [0, 0], sizes = [8, 32], strides = [1, 1]} : vector<8x96xf32> to vector<8x32xf32>
    %47 = vector.extract_strided_slice %45 {offsets = [0, 32], sizes = [8, 32], strides = [1, 1]} : vector<8x96xf32> to vector<8x32xf32>
    %48 = vector.extract_strided_slice %45 {offsets = [0, 64], sizes = [8, 32], strides = [1, 1]} : vector<8x96xf32> to vector<8x32xf32>
    %49 = vector.extract_strided_slice %46 {offsets = [0, 0], sizes = [8, 8], strides = [1, 1]} : vector<8x32xf32> to vector<8x8xf32>
    %50 = arith.truncf %49 : vector<8x8xf32> to vector<8x8xbf16>
    %51 = vector.extract_strided_slice %47 {offsets = [0, 0], sizes = [8, 8], strides = [1, 1]} : vector<8x32xf32> to vector<8x8xf32>
    %52 = arith.truncf %51 : vector<8x8xf32> to vector<8x8xbf16>
    %53 = vector.extract_strided_slice %48 {offsets = [0, 0], sizes = [8, 8], strides = [1, 1]} : vector<8x32xf32> to vector<8x8xf32>
    %54 = arith.truncf %53 : vector<8x8xf32> to vector<8x8xbf16>
    %cst_26 = arith.constant dense<0.000000e+00> : vector<8x8xf32>
    %55 = tpu.matmul %50, %52, %cst_26 {dimension_numbers = #tpu.dot_dimension_numbers<[1], [1], [0], [0], [0, 0, 1, 0], [], []>} : vector<8x8xbf16>, vector<8x8xbf16>, vector<8x8xf32> -> vector<8x8xf32>
    %cst_27 = arith.constant 0.353553385 : f32
    %56 = vector.broadcast %cst_27 : f32 to vector<8x8xf32>
    %57 = arith.mulf %55, %56 : vector<8x8xf32>
    %cst_28 = arith.constant dense<0xFF800000> : vector<8xf32>
    %58 = vector.multi_reduction <maximumf>, %57, %cst_28 [1] : vector<8x8xf32> to vector<8xf32>
    %59 = vector.shape_cast %58 : vector<8xf32> to vector<8x1xf32>
    %60 = vector.broadcast %59 : vector<8x1xf32> to vector<8x8xf32>
    %61 = arith.subf %57, %60 : vector<8x8xf32>
    %62 = math.exp %61 : vector<8x8xf32>
    %cst_29 = arith.constant dense<0.000000e+00> : vector<8xf32>
    %63 = vector.multi_reduction <add>, %62, %cst_29 [1] : vector<8x8xf32> to vector<8xf32>
    %64 = vector.shape_cast %63 : vector<8xf32> to vector<8x1xf32>
    %65 = vector.broadcast %64 : vector<8x1xf32> to vector<8x8xf32>
    %66 = arith.divf %62, %65 : vector<8x8xf32>
    %67 = arith.truncf %66 : vector<8x8xf32> to vector<8x8xbf16>
    %cst_30 = arith.constant dense<0.000000e+00> : vector<8x8xf32>
    %68 = tpu.matmul %67, %54, %cst_30 {dimension_numbers = #tpu.dot_dimension_numbers<[1], [0], [0], [1], [0, 0, 1, 1], [], []>} : vector<8x8xbf16>, vector<8x8xbf16>, vector<8x8xf32> -> vector<8x8xf32>
    %69 = arith.truncf %68 : vector<8x8xf32> to vector<8x8xbf16>
    %c0_31 = arith.constant 0 : index
    %c0_32 = arith.constant 0 : index
    %c0_33 = arith.constant 0 : index
    %70 = vector.load %arg12[%c0_31, %c0_32, %c0_33] : memref<4x8x32xbf16, #tpu.memory_space<vmem>>, vector<1x8x32xbf16>
    %71 = vector.shape_cast %70 : vector<1x8x32xbf16> to vector<8x32xbf16>
    %cst_34 = arith.constant dense<0.000000e+00> : vector<8x32xf32>
    %72 = tpu.matmul %69, %71, %cst_34 {dimension_numbers = #tpu.dot_dimension_numbers<[1], [0], [0], [1], [0, 0, 1, 1], [], []>} : vector<8x8xbf16>, vector<8x32xbf16>, vector<8x32xf32> -> vector<8x32xf32>
    %73 = vector.extract_strided_slice %46 {offsets = [0, 8], sizes = [8, 8], strides = [1, 1]} : vector<8x32xf32> to vector<8x8xf32>
    %74 = arith.truncf %73 : vector<8x8xf32> to vector<8x8xbf16>
    %75 = vector.extract_strided_slice %47 {offsets = [0, 8], sizes = [8, 8], strides = [1, 1]} : vector<8x32xf32> to vector<8x8xf32>
    %76 = arith.truncf %75 : vector<8x8xf32> to vector<8x8xbf16>
    %77 = vector.extract_strided_slice %48 {offsets = [0, 8], sizes = [8, 8], strides = [1, 1]} : vector<8x32xf32> to vector<8x8xf32>
    %78 = arith.truncf %77 : vector<8x8xf32> to vector<8x8xbf16>
    %cst_35 = arith.constant dense<0.000000e+00> : vector<8x8xf32>
    %79 = tpu.matmul %74, %76, %cst_35 {dimension_numbers = #tpu.dot_dimension_numbers<[1], [1], [0], [0], [0, 0, 1, 0], [], []>} : vector<8x8xbf16>, vector<8x8xbf16>, vector<8x8xf32> -> vector<8x8xf32>
    %cst_36 = arith.constant 0.353553385 : f32
    %80 = vector.broadcast %cst_36 : f32 to vector<8x8xf32>
    %81 = arith.mulf %79, %80 : vector<8x8xf32>
    %cst_37 = arith.constant dense<0xFF800000> : vector<8xf32>
    %82 = vector.multi_reduction <maximumf>, %81, %cst_37 [1] : vector<8x8xf32> to vector<8xf32>
    %83 = vector.shape_cast %82 : vector<8xf32> to vector<8x1xf32>
    %84 = vector.broadcast %83 : vector<8x1xf32> to vector<8x8xf32>
    %85 = arith.subf %81, %84 : vector<8x8xf32>
    %86 = math.exp %85 : vector<8x8xf32>
    %cst_38 = arith.constant dense<0.000000e+00> : vector<8xf32>
    %87 = vector.multi_reduction <add>, %86, %cst_38 [1] : vector<8x8xf32> to vector<8xf32>
    %88 = vector.shape_cast %87 : vector<8xf32> to vector<8x1xf32>
    %89 = vector.broadcast %88 : vector<8x1xf32> to vector<8x8xf32>
    %90 = arith.divf %86, %89 : vector<8x8xf32>
    %91 = arith.truncf %90 : vector<8x8xf32> to vector<8x8xbf16>
    %cst_39 = arith.constant dense<0.000000e+00> : vector<8x8xf32>
    %92 = tpu.matmul %91, %78, %cst_39 {dimension_numbers = #tpu.dot_dimension_numbers<[1], [0], [0], [1], [0, 0, 1, 1], [], []>} : vector<8x8xbf16>, vector<8x8xbf16>, vector<8x8xf32> -> vector<8x8xf32>
    %93 = arith.truncf %92 : vector<8x8xf32> to vector<8x8xbf16>
    %c1 = arith.constant 1 : index
    %c0_40 = arith.constant 0 : index
    %c0_41 = arith.constant 0 : index
    %94 = vector.load %arg12[%c1, %c0_40, %c0_41] : memref<4x8x32xbf16, #tpu.memory_space<vmem>>, vector<1x8x32xbf16>
    %95 = vector.shape_cast %94 : vector<1x8x32xbf16> to vector<8x32xbf16>
    %cst_42 = arith.constant dense<0.000000e+00> : vector<8x32xf32>
    %96 = tpu.matmul %93, %95, %cst_42 {dimension_numbers = #tpu.dot_dimension_numbers<[1], [0], [0], [1], [0, 0, 1, 1], [], []>} : vector<8x8xbf16>, vector<8x32xbf16>, vector<8x32xf32> -> vector<8x32xf32>
    %97 = arith.addf %72, %96 : vector<8x32xf32>
    %98 = vector.extract_strided_slice %46 {offsets = [0, 16], sizes = [8, 8], strides = [1, 1]} : vector<8x32xf32> to vector<8x8xf32>
    %99 = arith.truncf %98 : vector<8x8xf32> to vector<8x8xbf16>
    %100 = vector.extract_strided_slice %47 {offsets = [0, 16], sizes = [8, 8], strides = [1, 1]} : vector<8x32xf32> to vector<8x8xf32>
    %101 = arith.truncf %100 : vector<8x8xf32> to vector<8x8xbf16>
    %102 = vector.extract_strided_slice %48 {offsets = [0, 16], sizes = [8, 8], strides = [1, 1]} : vector<8x32xf32> to vector<8x8xf32>
    %103 = arith.truncf %102 : vector<8x8xf32> to vector<8x8xbf16>
    %cst_43 = arith.constant dense<0.000000e+00> : vector<8x8xf32>
    %104 = tpu.matmul %99, %101, %cst_43 {dimension_numbers = #tpu.dot_dimension_numbers<[1], [1], [0], [0], [0, 0, 1, 0], [], []>} : vector<8x8xbf16>, vector<8x8xbf16>, vector<8x8xf32> -> vector<8x8xf32>
    %cst_44 = arith.constant 0.353553385 : f32
    %105 = vector.broadcast %cst_44 : f32 to vector<8x8xf32>
    %106 = arith.mulf %104, %105 : vector<8x8xf32>
    %cst_45 = arith.constant dense<0xFF800000> : vector<8xf32>
    %107 = vector.multi_reduction <maximumf>, %106, %cst_45 [1] : vector<8x8xf32> to vector<8xf32>
    %108 = vector.shape_cast %107 : vector<8xf32> to vector<8x1xf32>
    %109 = vector.broadcast %108 : vector<8x1xf32> to vector<8x8xf32>
    %110 = arith.subf %106, %109 : vector<8x8xf32>
    %111 = math.exp %110 : vector<8x8xf32>
    %cst_46 = arith.constant dense<0.000000e+00> : vector<8xf32>
    %112 = vector.multi_reduction <add>, %111, %cst_46 [1] : vector<8x8xf32> to vector<8xf32>
    %113 = vector.shape_cast %112 : vector<8xf32> to vector<8x1xf32>
    %114 = vector.broadcast %113 : vector<8x1xf32> to vector<8x8xf32>
    %115 = arith.divf %111, %114 : vector<8x8xf32>
    %116 = arith.truncf %115 : vector<8x8xf32> to vector<8x8xbf16>
    %cst_47 = arith.constant dense<0.000000e+00> : vector<8x8xf32>
    %117 = tpu.matmul %116, %103, %cst_47 {dimension_numbers = #tpu.dot_dimension_numbers<[1], [0], [0], [1], [0, 0, 1, 1], [], []>} : vector<8x8xbf16>, vector<8x8xbf16>, vector<8x8xf32> -> vector<8x8xf32>
    %118 = arith.truncf %117 : vector<8x8xf32> to vector<8x8xbf16>
    %c2 = arith.constant 2 : index
    %c0_48 = arith.constant 0 : index
    %c0_49 = arith.constant 0 : index
    %119 = vector.load %arg12[%c2, %c0_48, %c0_49] : memref<4x8x32xbf16, #tpu.memory_space<vmem>>, vector<1x8x32xbf16>
    %120 = vector.shape_cast %119 : vector<1x8x32xbf16> to vector<8x32xbf16>
    %cst_50 = arith.constant dense<0.000000e+00> : vector<8x32xf32>
    %121 = tpu.matmul %118, %120, %cst_50 {dimension_numbers = #tpu.dot_dimension_numbers<[1], [0], [0], [1], [0, 0, 1, 1], [], []>} : vector<8x8xbf16>, vector<8x32xbf16>, vector<8x32xf32> -> vector<8x32xf32>
    %122 = arith.addf %97, %121 : vector<8x32xf32>
    %123 = vector.extract_strided_slice %46 {offsets = [0, 24], sizes = [8, 8], strides = [1, 1]} : vector<8x32xf32> to vector<8x8xf32>
    %124 = arith.truncf %123 : vector<8x8xf32> to vector<8x8xbf16>
    %125 = vector.extract_strided_slice %47 {offsets = [0, 24], sizes = [8, 8], strides = [1, 1]} : vector<8x32xf32> to vector<8x8xf32>
    %126 = arith.truncf %125 : vector<8x8xf32> to vector<8x8xbf16>
    %127 = vector.extract_strided_slice %48 {offsets = [0, 24], sizes = [8, 8], strides = [1, 1]} : vector<8x32xf32> to vector<8x8xf32>
    %128 = arith.truncf %127 : vector<8x8xf32> to vector<8x8xbf16>
    %cst_51 = arith.constant dense<0.000000e+00> : vector<8x8xf32>
    %129 = tpu.matmul %124, %126, %cst_51 {dimension_numbers = #tpu.dot_dimension_numbers<[1], [1], [0], [0], [0, 0, 1, 0], [], []>} : vector<8x8xbf16>, vector<8x8xbf16>, vector<8x8xf32> -> vector<8x8xf32>
    %cst_52 = arith.constant 0.353553385 : f32
    %130 = vector.broadcast %cst_52 : f32 to vector<8x8xf32>
    %131 = arith.mulf %129, %130 : vector<8x8xf32>
    %cst_53 = arith.constant dense<0xFF800000> : vector<8xf32>
    %132 = vector.multi_reduction <maximumf>, %131, %cst_53 [1] : vector<8x8xf32> to vector<8xf32>
    %133 = vector.shape_cast %132 : vector<8xf32> to vector<8x1xf32>
    %134 = vector.broadcast %133 : vector<8x1xf32> to vector<8x8xf32>
    %135 = arith.subf %131, %134 : vector<8x8xf32>
    %136 = math.exp %135 : vector<8x8xf32>
    %cst_54 = arith.constant dense<0.000000e+00> : vector<8xf32>
    %137 = vector.multi_reduction <add>, %136, %cst_54 [1] : vector<8x8xf32> to vector<8xf32>
    %138 = vector.shape_cast %137 : vector<8xf32> to vector<8x1xf32>
    %139 = vector.broadcast %138 : vector<8x1xf32> to vector<8x8xf32>
    %140 = arith.divf %136, %139 : vector<8x8xf32>
    %141 = arith.truncf %140 : vector<8x8xf32> to vector<8x8xbf16>
    %cst_55 = arith.constant dense<0.000000e+00> : vector<8x8xf32>
    %142 = tpu.matmul %141, %128, %cst_55 {dimension_numbers = #tpu.dot_dimension_numbers<[1], [0], [0], [1], [0, 0, 1, 1], [], []>} : vector<8x8xbf16>, vector<8x8xbf16>, vector<8x8xf32> -> vector<8x8xf32>
    %143 = arith.truncf %142 : vector<8x8xf32> to vector<8x8xbf16>
    %c3 = arith.constant 3 : index
    %c0_56 = arith.constant 0 : index
    %c0_57 = arith.constant 0 : index
    %144 = vector.load %arg12[%c3, %c0_56, %c0_57] : memref<4x8x32xbf16, #tpu.memory_space<vmem>>, vector<1x8x32xbf16>
    %145 = vector.shape_cast %144 : vector<1x8x32xbf16> to vector<8x32xbf16>
    %cst_58 = arith.constant dense<0.000000e+00> : vector<8x32xf32>
    %146 = tpu.matmul %143, %145, %cst_58 {dimension_numbers = #tpu.dot_dimension_numbers<[1], [0], [0], [1], [0, 0, 1, 1], [], []>} : vector<8x8xbf16>, vector<8x32xbf16>, vector<8x32xf32> -> vector<8x32xf32>
    %147 = arith.addf %122, %146 : vector<8x32xf32>
    %c0_59 = arith.constant 0 : index
    %c0_60 = arith.constant 0 : index
    %148 = vector.load %arg13[%c0_59, %c0_60] : memref<1x32xf32, #tpu.memory_space<vmem>>, vector<1x32xf32>
    %149 = vector.broadcast %148 : vector<1x32xf32> to vector<8x32xf32>
    %150 = arith.addf %147, %149 : vector<8x32xf32>
    %151 = arith.addf %15, %150 : vector<8x32xf32>
    %cst_61 = arith.constant dense<0.000000e+00> : vector<8xf32>
    %152 = vector.multi_reduction <add>, %151, %cst_61 [1] : vector<8x32xf32> to vector<8xf32>
    %153 = vector.shape_cast %152 : vector<8xf32> to vector<8x1xf32>
    %cst_62 = arith.constant 3.200000e+01 : f32
    %154 = vector.broadcast %cst_62 : f32 to vector<8x1xf32>
    %155 = arith.divf %153, %154 : vector<8x1xf32>
    %156 = vector.broadcast %155 : vector<8x1xf32> to vector<8x32xf32>
    %157 = arith.subf %151, %156 : vector<8x32xf32>
    %158 = arith.mulf %157, %157 : vector<8x32xf32>
    %cst_63 = arith.constant dense<0.000000e+00> : vector<8xf32>
    %159 = vector.multi_reduction <add>, %158, %cst_63 [1] : vector<8x32xf32> to vector<8xf32>
    %160 = vector.shape_cast %159 : vector<8xf32> to vector<8x1xf32>
    %cst_64 = arith.constant 3.200000e+01 : f32
    %161 = vector.broadcast %cst_64 : f32 to vector<8x1xf32>
    %162 = arith.divf %160, %161 : vector<8x1xf32>
    %163 = vector.broadcast %155 : vector<8x1xf32> to vector<8x32xf32>
    %164 = arith.subf %151, %163 : vector<8x32xf32>
    %cst_65 = arith.constant 9.99999974E-6 : f32
    %165 = vector.broadcast %cst_65 : f32 to vector<8x1xf32>
    %166 = arith.addf %162, %165 : vector<8x1xf32>
    %167 = math.rsqrt %166 : vector<8x1xf32>
    %168 = vector.broadcast %167 : vector<8x1xf32> to vector<8x32xf32>
    %169 = arith.mulf %164, %168 : vector<8x32xf32>
    %c0_66 = arith.constant 0 : index
    %c0_67 = arith.constant 0 : index
    %170 = vector.load %arg14[%c0_66, %c0_67] : memref<1x32xf32, #tpu.memory_space<vmem>>, vector<1x32xf32>
    %171 = vector.broadcast %170 : vector<1x32xf32> to vector<8x32xf32>
    %172 = arith.mulf %169, %171 : vector<8x32xf32>
    %c0_68 = arith.constant 0 : index
    %c0_69 = arith.constant 0 : index
    %173 = vector.load %arg15[%c0_68, %c0_69] : memref<1x32xf32, #tpu.memory_space<vmem>>, vector<1x32xf32>
    %174 = vector.broadcast %173 : vector<1x32xf32> to vector<8x32xf32>
    %175 = arith.addf %172, %174 : vector<8x32xf32>
    %176 = arith.truncf %175 : vector<8x32xf32> to vector<8x32xbf16>
    %c0_70 = arith.constant 0 : index
    %c0_71 = arith.constant 0 : index
    %177 = vector.load %arg16[%c0_70, %c0_71] : memref<32x64xbf16, #tpu.memory_space<vmem>>, vector<32x64xbf16>
    %cst_72 = arith.constant dense<0.000000e+00> : vector<8x64xf32>
    %178 = tpu.matmul %176, %177, %cst_72 {dimension_numbers = #tpu.dot_dimension_numbers<[1], [0], [0], [1], [0, 0, 1, 1], [], []>} : vector<8x32xbf16>, vector<32x64xbf16>, vector<8x64xf32> -> vector<8x64xf32>
    %c0_73 = arith.constant 0 : index
    %c0_74 = arith.constant 0 : index
    %179 = vector.load %arg17[%c0_73, %c0_74] : memref<1x64xf32, #tpu.memory_space<vmem>>, vector<1x64xf32>
    %180 = vector.broadcast %179 : vector<1x64xf32> to vector<8x64xf32>
    %181 = arith.addf %178, %180 : vector<8x64xf32>
    %cst_75 = arith.constant 0.000000e+00 : f32
    %182 = vector.broadcast %cst_75 : f32 to vector<8x64xf32>
    %183 = arith.maximumf %181, %182 : vector<8x64xf32>
    %184 = arith.truncf %183 : vector<8x64xf32> to vector<8x64xbf16>
    %c0_76 = arith.constant 0 : index
    %c0_77 = arith.constant 0 : index
    %185 = vector.load %arg18[%c0_76, %c0_77] : memref<64x32xbf16, #tpu.memory_space<vmem>>, vector<64x32xbf16>
    %cst_78 = arith.constant dense<0.000000e+00> : vector<8x32xf32>
    %186 = tpu.matmul %184, %185, %cst_78 {dimension_numbers = #tpu.dot_dimension_numbers<[1], [0], [0], [1], [0, 0, 1, 1], [], []>} : vector<8x64xbf16>, vector<64x32xbf16>, vector<8x32xf32> -> vector<8x32xf32>
    %c0_79 = arith.constant 0 : index
    %c0_80 = arith.constant 0 : index
    %187 = vector.load %arg19[%c0_79, %c0_80] : memref<1x32xf32, #tpu.memory_space<vmem>>, vector<1x32xf32>
    %188 = vector.broadcast %187 : vector<1x32xf32> to vector<8x32xf32>
    %189 = arith.addf %186, %188 : vector<8x32xf32>
    %190 = arith.addf %151, %189 : vector<8x32xf32>
    %cst_81 = arith.constant dense<0.000000e+00> : vector<8xf32>
    %191 = vector.multi_reduction <add>, %190, %cst_81 [1] : vector<8x32xf32> to vector<8xf32>
    %192 = vector.shape_cast %191 : vector<8xf32> to vector<8x1xf32>
    %cst_82 = arith.constant 3.200000e+01 : f32
    %193 = vector.broadcast %cst_82 : f32 to vector<8x1xf32>
    %194 = arith.divf %192, %193 : vector<8x1xf32>
    %195 = vector.broadcast %194 : vector<8x1xf32> to vector<8x32xf32>
    %196 = arith.subf %190, %195 : vector<8x32xf32>
    %197 = arith.mulf %196, %196 : vector<8x32xf32>
    %cst_83 = arith.constant dense<0.000000e+00> : vector<8xf32>
    %198 = vector.multi_reduction <add>, %197, %cst_83 [1] : vector<8x32xf32> to vector<8xf32>
    %199 = vector.shape_cast %198 : vector<8xf32> to vector<8x1xf32>
    %cst_84 = arith.constant 3.200000e+01 : f32
    %200 = vector.broadcast %cst_84 : f32 to vector<8x1xf32>
    %201 = arith.divf %199, %200 : vector<8x1xf32>
    %202 = vector.broadcast %194 : vector<8x1xf32> to vector<8x32xf32>
    %203 = arith.subf %190, %202 : vector<8x32xf32>
    %cst_85 = arith.constant 9.99999974E-6 : f32
    %204 = vector.broadcast %cst_85 : f32 to vector<8x1xf32>
    %205 = arith.addf %201, %204 : vector<8x1xf32>
    %206 = math.rsqrt %205 : vector<8x1xf32>
    %207 = vector.broadcast %206 : vector<8x1xf32> to vector<8x32xf32>
    %208 = arith.mulf %203, %207 : vector<8x32xf32>
    %c0_86 = arith.constant 0 : index
    %c0_87 = arith.constant 0 : index
    %209 = vector.load %arg20[%c0_86, %c0_87] : memref<1x32xf32, #tpu.memory_space<vmem>>, vector<1x32xf32>
    %210 = vector.broadcast %209 : vector<1x32xf32> to vector<8x32xf32>
    %211 = arith.mulf %208, %210 : vector<8x32xf32>
    %c0_88 = arith.constant 0 : index
    %c0_89 = arith.constant 0 : index
    %212 = vector.load %arg21[%c0_88, %c0_89] : memref<1x32xf32, #tpu.memory_space<vmem>>, vector<1x32xf32>
    %213 = vector.broadcast %212 : vector<1x32xf32> to vector<8x32xf32>
    %214 = arith.addf %211, %213 : vector<8x32xf32>
    %215 = arith.truncf %214 : vector<8x32xf32> to vector<8x32xbf16>
    %c0_90 = arith.constant 0 : index
    %c0_91 = arith.constant 0 : index
    %216 = vector.load %arg22[%c0_90, %c0_91] : memref<32x96xbf16, #tpu.memory_space<vmem>>, vector<32x96xbf16>
    %cst_92 = arith.constant dense<0.000000e+00> : vector<8x96xf32>
    %217 = tpu.matmul %215, %216, %cst_92 {dimension_numbers = #tpu.dot_dimension_numbers<[1], [0], [0], [1], [0, 0, 1, 1], [], []>} : vector<8x32xbf16>, vector<32x96xbf16>, vector<8x96xf32> -> vector<8x96xf32>
    %c0_93 = arith.constant 0 : index
    %c0_94 = arith.constant 0 : index
    %218 = vector.load %arg23[%c0_93, %c0_94] : memref<1x96xf32, #tpu.memory_space<vmem>>, vector<1x96xf32>
    %219 = vector.broadcast %218 : vector<1x96xf32> to vector<8x96xf32>
    %220 = arith.addf %217, %219 : vector<8x96xf32>
    %221 = vector.extract_strided_slice %220 {offsets = [0, 0], sizes = [8, 32], strides = [1, 1]} : vector<8x96xf32> to vector<8x32xf32>
    %222 = vector.extract_strided_slice %220 {offsets = [0, 32], sizes = [8, 32], strides = [1, 1]} : vector<8x96xf32> to vector<8x32xf32>
    %223 = vector.extract_strided_slice %220 {offsets = [0, 64], sizes = [8, 32], strides = [1, 1]} : vector<8x96xf32> to vector<8x32xf32>
    %224 = vector.extract_strided_slice %221 {offsets = [0, 0], sizes = [8, 8], strides = [1, 1]} : vector<8x32xf32> to vector<8x8xf32>
    %225 = arith.truncf %224 : vector<8x8xf32> to vector<8x8xbf16>
    %226 = vector.extract_strided_slice %222 {offsets = [0, 0], sizes = [8, 8], strides = [1, 1]} : vector<8x32xf32> to vector<8x8xf32>
    %227 = arith.truncf %226 : vector<8x8xf32> to vector<8x8xbf16>
    %228 = vector.extract_strided_slice %223 {offsets = [0, 0], sizes = [8, 8], strides = [1, 1]} : vector<8x32xf32> to vector<8x8xf32>
    %229 = arith.truncf %228 : vector<8x8xf32> to vector<8x8xbf16>
    %cst_95 = arith.constant dense<0.000000e+00> : vector<8x8xf32>
    %230 = tpu.matmul %225, %227, %cst_95 {dimension_numbers = #tpu.dot_dimension_numbers<[1], [1], [0], [0], [0, 0, 1, 0], [], []>} : vector<8x8xbf16>, vector<8x8xbf16>, vector<8x8xf32> -> vector<8x8xf32>
    %cst_96 = arith.constant 0.353553385 : f32
    %231 = vector.broadcast %cst_96 : f32 to vector<8x8xf32>
    %232 = arith.mulf %230, %231 : vector<8x8xf32>
    %cst_97 = arith.constant dense<0xFF800000> : vector<8xf32>
    %233 = vector.multi_reduction <maximumf>, %232, %cst_97 [1] : vector<8x8xf32> to vector<8xf32>
    %234 = vector.shape_cast %233 : vector<8xf32> to vector<8x1xf32>
    %235 = vector.broadcast %234 : vector<8x1xf32> to vector<8x8xf32>
    %236 = arith.subf %232, %235 : vector<8x8xf32>
    %237 = math.exp %236 : vector<8x8xf32>
    %cst_98 = arith.constant dense<0.000000e+00> : vector<8xf32>
    %238 = vector.multi_reduction <add>, %237, %cst_98 [1] : vector<8x8xf32> to vector<8xf32>
    %239 = vector.shape_cast %238 : vector<8xf32> to vector<8x1xf32>
    %240 = vector.broadcast %239 : vector<8x1xf32> to vector<8x8xf32>
    %241 = arith.divf %237, %240 : vector<8x8xf32>
    %242 = arith.truncf %241 : vector<8x8xf32> to vector<8x8xbf16>
    %cst_99 = arith.constant dense<0.000000e+00> : vector<8x8xf32>
    %243 = tpu.matmul %242, %229, %cst_99 {dimension_numbers = #tpu.dot_dimension_numbers<[1], [0], [0], [1], [0, 0, 1, 1], [], []>} : vector<8x8xbf16>, vector<8x8xbf16>, vector<8x8xf32> -> vector<8x8xf32>
    %244 = arith.truncf %243 : vector<8x8xf32> to vector<8x8xbf16>
    %c0_100 = arith.constant 0 : index
    %c0_101 = arith.constant 0 : index
    %c0_102 = arith.constant 0 : index
    %245 = vector.load %arg24[%c0_100, %c0_101, %c0_102] : memref<4x8x32xbf16, #tpu.memory_space<vmem>>, vector<1x8x32xbf16>
    %246 = vector.shape_cast %245 : vector<1x8x32xbf16> to vector<8x32xbf16>
    %cst_103 = arith.constant dense<0.000000e+00> : vector<8x32xf32>
    %247 = tpu.matmul %244, %246, %cst_103 {dimension_numbers = #tpu.dot_dimension_numbers<[1], [0], [0], [1], [0, 0, 1, 1], [], []>} : vector<8x8xbf16>, vector<8x32xbf16>, vector<8x32xf32> -> vector<8x32xf32>
    %248 = vector.extract_strided_slice %221 {offsets = [0, 8], sizes = [8, 8], strides = [1, 1]} : vector<8x32xf32> to vector<8x8xf32>
    %249 = arith.truncf %248 : vector<8x8xf32> to vector<8x8xbf16>
    %250 = vector.extract_strided_slice %222 {offsets = [0, 8], sizes = [8, 8], strides = [1, 1]} : vector<8x32xf32> to vector<8x8xf32>
    %251 = arith.truncf %250 : vector<8x8xf32> to vector<8x8xbf16>
    %252 = vector.extract_strided_slice %223 {offsets = [0, 8], sizes = [8, 8], strides = [1, 1]} : vector<8x32xf32> to vector<8x8xf32>
    %253 = arith.truncf %252 : vector<8x8xf32> to vector<8x8xbf16>
    %cst_104 = arith.constant dense<0.000000e+00> : vector<8x8xf32>
    %254 = tpu.matmul %249, %251, %cst_104 {dimension_numbers = #tpu.dot_dimension_numbers<[1], [1], [0], [0], [0, 0, 1, 0], [], []>} : vector<8x8xbf16>, vector<8x8xbf16>, vector<8x8xf32> -> vector<8x8xf32>
    %cst_105 = arith.constant 0.353553385 : f32
    %255 = vector.broadcast %cst_105 : f32 to vector<8x8xf32>
    %256 = arith.mulf %254, %255 : vector<8x8xf32>
    %cst_106 = arith.constant dense<0xFF800000> : vector<8xf32>
    %257 = vector.multi_reduction <maximumf>, %256, %cst_106 [1] : vector<8x8xf32> to vector<8xf32>
    %258 = vector.shape_cast %257 : vector<8xf32> to vector<8x1xf32>
    %259 = vector.broadcast %258 : vector<8x1xf32> to vector<8x8xf32>
    %260 = arith.subf %256, %259 : vector<8x8xf32>
    %261 = math.exp %260 : vector<8x8xf32>
    %cst_107 = arith.constant dense<0.000000e+00> : vector<8xf32>
    %262 = vector.multi_reduction <add>, %261, %cst_107 [1] : vector<8x8xf32> to vector<8xf32>
    %263 = vector.shape_cast %262 : vector<8xf32> to vector<8x1xf32>
    %264 = vector.broadcast %263 : vector<8x1xf32> to vector<8x8xf32>
    %265 = arith.divf %261, %264 : vector<8x8xf32>
    %266 = arith.truncf %265 : vector<8x8xf32> to vector<8x8xbf16>
    %cst_108 = arith.constant dense<0.000000e+00> : vector<8x8xf32>
    %267 = tpu.matmul %266, %253, %cst_108 {dimension_numbers = #tpu.dot_dimension_numbers<[1], [0], [0], [1], [0, 0, 1, 1], [], []>} : vector<8x8xbf16>, vector<8x8xbf16>, vector<8x8xf32> -> vector<8x8xf32>
    %268 = arith.truncf %267 : vector<8x8xf32> to vector<8x8xbf16>
    %c1_109 = arith.constant 1 : index
    %c0_110 = arith.constant 0 : index
    %c0_111 = arith.constant 0 : index
    %269 = vector.load %arg24[%c1_109, %c0_110, %c0_111] : memref<4x8x32xbf16, #tpu.memory_space<vmem>>, vector<1x8x32xbf16>
    %270 = vector.shape_cast %269 : vector<1x8x32xbf16> to vector<8x32xbf16>
    %cst_112 = arith.constant dense<0.000000e+00> : vector<8x32xf32>
    %271 = tpu.matmul %268, %270, %cst_112 {dimension_numbers = #tpu.dot_dimension_numbers<[1], [0], [0], [1], [0, 0, 1, 1], [], []>} : vector<8x8xbf16>, vector<8x32xbf16>, vector<8x32xf32> -> vector<8x32xf32>
    %272 = arith.addf %247, %271 : vector<8x32xf32>
    %273 = vector.extract_strided_slice %221 {offsets = [0, 16], sizes = [8, 8], strides = [1, 1]} : vector<8x32xf32> to vector<8x8xf32>
    %274 = arith.truncf %273 : vector<8x8xf32> to vector<8x8xbf16>
    %275 = vector.extract_strided_slice %222 {offsets = [0, 16], sizes = [8, 8], strides = [1, 1]} : vector<8x32xf32> to vector<8x8xf32>
    %276 = arith.truncf %275 : vector<8x8xf32> to vector<8x8xbf16>
    %277 = vector.extract_strided_slice %223 {offsets = [0, 16], sizes = [8, 8], strides = [1, 1]} : vector<8x32xf32> to vector<8x8xf32>
    %278 = arith.truncf %277 : vector<8x8xf32> to vector<8x8xbf16>
    %cst_113 = arith.constant dense<0.000000e+00> : vector<8x8xf32>
    %279 = tpu.matmul %274, %276, %cst_113 {dimension_numbers = #tpu.dot_dimension_numbers<[1], [1], [0], [0], [0, 0, 1, 0], [], []>} : vector<8x8xbf16>, vector<8x8xbf16>, vector<8x8xf32> -> vector<8x8xf32>
    %cst_114 = arith.constant 0.353553385 : f32
    %280 = vector.broadcast %cst_114 : f32 to vector<8x8xf32>
    %281 = arith.mulf %279, %280 : vector<8x8xf32>
    %cst_115 = arith.constant dense<0xFF800000> : vector<8xf32>
    %282 = vector.multi_reduction <maximumf>, %281, %cst_115 [1] : vector<8x8xf32> to vector<8xf32>
    %283 = vector.shape_cast %282 : vector<8xf32> to vector<8x1xf32>
    %284 = vector.broadcast %283 : vector<8x1xf32> to vector<8x8xf32>
    %285 = arith.subf %281, %284 : vector<8x8xf32>
    %286 = math.exp %285 : vector<8x8xf32>
    %cst_116 = arith.constant dense<0.000000e+00> : vector<8xf32>
    %287 = vector.multi_reduction <add>, %286, %cst_116 [1] : vector<8x8xf32> to vector<8xf32>
    %288 = vector.shape_cast %287 : vector<8xf32> to vector<8x1xf32>
    %289 = vector.broadcast %288 : vector<8x1xf32> to vector<8x8xf32>
    %290 = arith.divf %286, %289 : vector<8x8xf32>
    %291 = arith.truncf %290 : vector<8x8xf32> to vector<8x8xbf16>
    %cst_117 = arith.constant dense<0.000000e+00> : vector<8x8xf32>
    %292 = tpu.matmul %291, %278, %cst_117 {dimension_numbers = #tpu.dot_dimension_numbers<[1], [0], [0], [1], [0, 0, 1, 1], [], []>} : vector<8x8xbf16>, vector<8x8xbf16>, vector<8x8xf32> -> vector<8x8xf32>
    %293 = arith.truncf %292 : vector<8x8xf32> to vector<8x8xbf16>
    %c2_118 = arith.constant 2 : index
    %c0_119 = arith.constant 0 : index
    %c0_120 = arith.constant 0 : index
    %294 = vector.load %arg24[%c2_118, %c0_119, %c0_120] : memref<4x8x32xbf16, #tpu.memory_space<vmem>>, vector<1x8x32xbf16>
    %295 = vector.shape_cast %294 : vector<1x8x32xbf16> to vector<8x32xbf16>
    %cst_121 = arith.constant dense<0.000000e+00> : vector<8x32xf32>
    %296 = tpu.matmul %293, %295, %cst_121 {dimension_numbers = #tpu.dot_dimension_numbers<[1], [0], [0], [1], [0, 0, 1, 1], [], []>} : vector<8x8xbf16>, vector<8x32xbf16>, vector<8x32xf32> -> vector<8x32xf32>
    %297 = arith.addf %272, %296 : vector<8x32xf32>
    %298 = vector.extract_strided_slice %221 {offsets = [0, 24], sizes = [8, 8], strides = [1, 1]} : vector<8x32xf32> to vector<8x8xf32>
    %299 = arith.truncf %298 : vector<8x8xf32> to vector<8x8xbf16>
    %300 = vector.extract_strided_slice %222 {offsets = [0, 24], sizes = [8, 8], strides = [1, 1]} : vector<8x32xf32> to vector<8x8xf32>
    %301 = arith.truncf %300 : vector<8x8xf32> to vector<8x8xbf16>
    %302 = vector.extract_strided_slice %223 {offsets = [0, 24], sizes = [8, 8], strides = [1, 1]} : vector<8x32xf32> to vector<8x8xf32>
    %303 = arith.truncf %302 : vector<8x8xf32> to vector<8x8xbf16>
    %cst_122 = arith.constant dense<0.000000e+00> : vector<8x8xf32>
    %304 = tpu.matmul %299, %301, %cst_122 {dimension_numbers = #tpu.dot_dimension_numbers<[1], [1], [0], [0], [0, 0, 1, 0], [], []>} : vector<8x8xbf16>, vector<8x8xbf16>, vector<8x8xf32> -> vector<8x8xf32>
    %cst_123 = arith.constant 0.353553385 : f32
    %305 = vector.broadcast %cst_123 : f32 to vector<8x8xf32>
    %306 = arith.mulf %304, %305 : vector<8x8xf32>
    %cst_124 = arith.constant dense<0xFF800000> : vector<8xf32>
    %307 = vector.multi_reduction <maximumf>, %306, %cst_124 [1] : vector<8x8xf32> to vector<8xf32>
    %308 = vector.shape_cast %307 : vector<8xf32> to vector<8x1xf32>
    %309 = vector.broadcast %308 : vector<8x1xf32> to vector<8x8xf32>
    %310 = arith.subf %306, %309 : vector<8x8xf32>
    %311 = math.exp %310 : vector<8x8xf32>
    %cst_125 = arith.constant dense<0.000000e+00> : vector<8xf32>
    %312 = vector.multi_reduction <add>, %311, %cst_125 [1] : vector<8x8xf32> to vector<8xf32>
    %313 = vector.shape_cast %312 : vector<8xf32> to vector<8x1xf32>
    %314 = vector.broadcast %313 : vector<8x1xf32> to vector<8x8xf32>
    %315 = arith.divf %311, %314 : vector<8x8xf32>
    %316 = arith.truncf %315 : vector<8x8xf32> to vector<8x8xbf16>
    %cst_126 = arith.constant dense<0.000000e+00> : vector<8x8xf32>
    %317 = tpu.matmul %316, %303, %cst_126 {dimension_numbers = #tpu.dot_dimension_numbers<[1], [0], [0], [1], [0, 0, 1, 1], [], []>} : vector<8x8xbf16>, vector<8x8xbf16>, vector<8x8xf32> -> vector<8x8xf32>
    %318 = arith.truncf %317 : vector<8x8xf32> to vector<8x8xbf16>
    %c3_127 = arith.constant 3 : index
    %c0_128 = arith.constant 0 : index
    %c0_129 = arith.constant 0 : index
    %319 = vector.load %arg24[%c3_127, %c0_128, %c0_129] : memref<4x8x32xbf16, #tpu.memory_space<vmem>>, vector<1x8x32xbf16>
    %320 = vector.shape_cast %319 : vector<1x8x32xbf16> to vector<8x32xbf16>
    %cst_130 = arith.constant dense<0.000000e+00> : vector<8x32xf32>
    %321 = tpu.matmul %318, %320, %cst_130 {dimension_numbers = #tpu.dot_dimension_numbers<[1], [0], [0], [1], [0, 0, 1, 1], [], []>} : vector<8x8xbf16>, vector<8x32xbf16>, vector<8x32xf32> -> vector<8x32xf32>
    %322 = arith.addf %297, %321 : vector<8x32xf32>
    %c0_131 = arith.constant 0 : index
    %c0_132 = arith.constant 0 : index
    %323 = vector.load %arg25[%c0_131, %c0_132] : memref<1x32xf32, #tpu.memory_space<vmem>>, vector<1x32xf32>
    %324 = vector.broadcast %323 : vector<1x32xf32> to vector<8x32xf32>
    %325 = arith.addf %322, %324 : vector<8x32xf32>
    %326 = arith.addf %190, %325 : vector<8x32xf32>
    %cst_133 = arith.constant dense<0.000000e+00> : vector<8xf32>
    %327 = vector.multi_reduction <add>, %326, %cst_133 [1] : vector<8x32xf32> to vector<8xf32>
    %328 = vector.shape_cast %327 : vector<8xf32> to vector<8x1xf32>
    %cst_134 = arith.constant 3.200000e+01 : f32
    %329 = vector.broadcast %cst_134 : f32 to vector<8x1xf32>
    %330 = arith.divf %328, %329 : vector<8x1xf32>
    %331 = vector.broadcast %330 : vector<8x1xf32> to vector<8x32xf32>
    %332 = arith.subf %326, %331 : vector<8x32xf32>
    %333 = arith.mulf %332, %332 : vector<8x32xf32>
    %cst_135 = arith.constant dense<0.000000e+00> : vector<8xf32>
    %334 = vector.multi_reduction <add>, %333, %cst_135 [1] : vector<8x32xf32> to vector<8xf32>
    %335 = vector.shape_cast %334 : vector<8xf32> to vector<8x1xf32>
    %cst_136 = arith.constant 3.200000e+01 : f32
    %336 = vector.broadcast %cst_136 : f32 to vector<8x1xf32>
    %337 = arith.divf %335, %336 : vector<8x1xf32>
    %338 = vector.broadcast %330 : vector<8x1xf32> to vector<8x32xf32>
    %339 = arith.subf %326, %338 : vector<8x32xf32>
    %cst_137 = arith.constant 9.99999974E-6 : f32
    %340 = vector.broadcast %cst_137 : f32 to vector<8x1xf32>
    %341 = arith.addf %337, %340 : vector<8x1xf32>
    %342 = math.rsqrt %341 : vector<8x1xf32>
    %343 = vector.broadcast %342 : vector<8x1xf32> to vector<8x32xf32>
    %344 = arith.mulf %339, %343 : vector<8x32xf32>
    %c0_138 = arith.constant 0 : index
    %c0_139 = arith.constant 0 : index
    %345 = vector.load %arg26[%c0_138, %c0_139] : memref<1x32xf32, #tpu.memory_space<vmem>>, vector<1x32xf32>
    %346 = vector.broadcast %345 : vector<1x32xf32> to vector<8x32xf32>
    %347 = arith.mulf %344, %346 : vector<8x32xf32>
    %c0_140 = arith.constant 0 : index
    %c0_141 = arith.constant 0 : index
    %348 = vector.load %arg27[%c0_140, %c0_141] : memref<1x32xf32, #tpu.memory_space<vmem>>, vector<1x32xf32>
    %349 = vector.broadcast %348 : vector<1x32xf32> to vector<8x32xf32>
    %350 = arith.addf %347, %349 : vector<8x32xf32>
    %351 = arith.truncf %350 : vector<8x32xf32> to vector<8x32xbf16>
    %c0_142 = arith.constant 0 : index
    %c0_143 = arith.constant 0 : index
    %352 = vector.load %arg28[%c0_142, %c0_143] : memref<32x64xbf16, #tpu.memory_space<vmem>>, vector<32x64xbf16>
    %cst_144 = arith.constant dense<0.000000e+00> : vector<8x64xf32>
    %353 = tpu.matmul %351, %352, %cst_144 {dimension_numbers = #tpu.dot_dimension_numbers<[1], [0], [0], [1], [0, 0, 1, 1], [], []>} : vector<8x32xbf16>, vector<32x64xbf16>, vector<8x64xf32> -> vector<8x64xf32>
    %c0_145 = arith.constant 0 : index
    %c0_146 = arith.constant 0 : index
    %354 = vector.load %arg29[%c0_145, %c0_146] : memref<1x64xf32, #tpu.memory_space<vmem>>, vector<1x64xf32>
    %355 = vector.broadcast %354 : vector<1x64xf32> to vector<8x64xf32>
    %356 = arith.addf %353, %355 : vector<8x64xf32>
    %cst_147 = arith.constant 0.000000e+00 : f32
    %357 = vector.broadcast %cst_147 : f32 to vector<8x64xf32>
    %358 = arith.maximumf %356, %357 : vector<8x64xf32>
    %359 = arith.truncf %358 : vector<8x64xf32> to vector<8x64xbf16>
    %c0_148 = arith.constant 0 : index
    %c0_149 = arith.constant 0 : index
    %360 = vector.load %arg30[%c0_148, %c0_149] : memref<64x32xbf16, #tpu.memory_space<vmem>>, vector<64x32xbf16>
    %cst_150 = arith.constant dense<0.000000e+00> : vector<8x32xf32>
    %361 = tpu.matmul %359, %360, %cst_150 {dimension_numbers = #tpu.dot_dimension_numbers<[1], [0], [0], [1], [0, 0, 1, 1], [], []>} : vector<8x64xbf16>, vector<64x32xbf16>, vector<8x32xf32> -> vector<8x32xf32>
    %c0_151 = arith.constant 0 : index
    %c0_152 = arith.constant 0 : index
    %362 = vector.load %arg31[%c0_151, %c0_152] : memref<1x32xf32, #tpu.memory_space<vmem>>, vector<1x32xf32>
    %363 = vector.broadcast %362 : vector<1x32xf32> to vector<8x32xf32>
    %364 = arith.addf %361, %363 : vector<8x32xf32>
    %365 = arith.addf %326, %364 : vector<8x32xf32>
    %c0_153 = arith.constant 0 : index
    %c0_154 = arith.constant 0 : index
    %c0_155 = arith.constant 0 : index
    %366 = vector.load %arg3[%c0_153, %c0_154, %c0_155] : memref<1x8x4xf32, #tpu.memory_space<vmem>>, vector<1x8x4xf32>
    %367 = vector.shape_cast %366 : vector<1x8x4xf32> to vector<8x4xf32>
    %c0_156 = arith.constant 0 : index
    %c0_157 = arith.constant 0 : index
    %c0_158 = arith.constant 0 : index
    %368 = vector.load %arg2[%c0_156, %c0_157, %c0_158] : memref<1x8x4xf32, #tpu.memory_space<vmem>>, vector<1x8x4xf32>
    %369 = vector.shape_cast %368 : vector<1x8x4xf32> to vector<8x4xf32>
    %370 = arith.truncf %367 : vector<8x4xf32> to vector<8x4xbf16>
    %c0_159 = arith.constant 0 : index
    %c0_160 = arith.constant 0 : index
    %371 = vector.load %arg32[%c0_159, %c0_160] : memref<4x32xbf16, #tpu.memory_space<vmem>>, vector<4x32xbf16>
    %cst_161 = arith.constant dense<0.000000e+00> : vector<8x32xf32>
    %372 = tpu.matmul %370, %371, %cst_161 {dimension_numbers = #tpu.dot_dimension_numbers<[1], [0], [0], [1], [0, 0, 1, 1], [], []>} : vector<8x4xbf16>, vector<4x32xbf16>, vector<8x32xf32> -> vector<8x32xf32>
    %c0_162 = arith.constant 0 : index
    %c0_163 = arith.constant 0 : index
    %373 = vector.load %arg33[%c0_162, %c0_163] : memref<1x32xf32, #tpu.memory_space<vmem>>, vector<1x32xf32>
    %374 = vector.broadcast %373 : vector<1x32xf32> to vector<8x32xf32>
    %375 = arith.addf %372, %374 : vector<8x32xf32>
    %376 = arith.truncf %369 : vector<8x4xf32> to vector<8x4xbf16>
    %c0_164 = arith.constant 0 : index
    %c0_165 = arith.constant 0 : index
    %377 = vector.load %arg34[%c0_164, %c0_165] : memref<4x32xbf16, #tpu.memory_space<vmem>>, vector<4x32xbf16>
    %cst_166 = arith.constant dense<0.000000e+00> : vector<8x32xf32>
    %378 = tpu.matmul %376, %377, %cst_166 {dimension_numbers = #tpu.dot_dimension_numbers<[1], [0], [0], [1], [0, 0, 1, 1], [], []>} : vector<8x4xbf16>, vector<4x32xbf16>, vector<8x32xf32> -> vector<8x32xf32>
    %c0_167 = arith.constant 0 : index
    %c0_168 = arith.constant 0 : index
    %379 = vector.load %arg35[%c0_167, %c0_168] : memref<1x32xf32, #tpu.memory_space<vmem>>, vector<1x32xf32>
    %380 = vector.broadcast %379 : vector<1x32xf32> to vector<8x32xf32>
    %381 = arith.addf %378, %380 : vector<8x32xf32>
    %382 = arith.truncf %365 : vector<8x32xf32> to vector<8x32xbf16>
    %c0_169 = arith.constant 0 : index
    %c0_170 = arith.constant 0 : index
    %383 = vector.load %arg36[%c0_169, %c0_170] : memref<32x32xbf16, #tpu.memory_space<vmem>>, vector<32x32xbf16>
    %cst_171 = arith.constant dense<0.000000e+00> : vector<8x32xf32>
    %384 = tpu.matmul %382, %383, %cst_171 {dimension_numbers = #tpu.dot_dimension_numbers<[1], [0], [0], [1], [0, 0, 1, 1], [], []>} : vector<8x32xbf16>, vector<32x32xbf16>, vector<8x32xf32> -> vector<8x32xf32>
    %c0_172 = arith.constant 0 : index
    %c0_173 = arith.constant 0 : index
    %385 = vector.load %arg37[%c0_172, %c0_173] : memref<1x32xf32, #tpu.memory_space<vmem>>, vector<1x32xf32>
    %386 = vector.broadcast %385 : vector<1x32xf32> to vector<8x32xf32>
    %387 = arith.addf %384, %386 : vector<8x32xf32>
    %388 = vector.extract_strided_slice %375 {offsets = [0, 0], sizes = [8, 8], strides = [1, 1]} : vector<8x32xf32> to vector<8x8xf32>
    %389 = arith.truncf %388 : vector<8x8xf32> to vector<8x8xbf16>
    %390 = vector.extract_strided_slice %381 {offsets = [0, 0], sizes = [8, 8], strides = [1, 1]} : vector<8x32xf32> to vector<8x8xf32>
    %391 = arith.truncf %390 : vector<8x8xf32> to vector<8x8xbf16>
    %392 = vector.extract_strided_slice %387 {offsets = [0, 0], sizes = [8, 8], strides = [1, 1]} : vector<8x32xf32> to vector<8x8xf32>
    %393 = arith.truncf %392 : vector<8x8xf32> to vector<8x8xbf16>
    %cst_174 = arith.constant dense<0.000000e+00> : vector<8x8xf32>
    %394 = tpu.matmul %389, %391, %cst_174 {dimension_numbers = #tpu.dot_dimension_numbers<[1], [1], [0], [0], [0, 0, 1, 0], [], []>} : vector<8x8xbf16>, vector<8x8xbf16>, vector<8x8xf32> -> vector<8x8xf32>
    %cst_175 = arith.constant 0.353553385 : f32
    %395 = vector.broadcast %cst_175 : f32 to vector<8x8xf32>
    %396 = arith.mulf %394, %395 : vector<8x8xf32>
    %cst_176 = arith.constant dense<0xFF800000> : vector<8xf32>
    %397 = vector.multi_reduction <maximumf>, %396, %cst_176 [1] : vector<8x8xf32> to vector<8xf32>
    %398 = vector.shape_cast %397 : vector<8xf32> to vector<8x1xf32>
    %399 = vector.broadcast %398 : vector<8x1xf32> to vector<8x8xf32>
    %400 = arith.subf %396, %399 : vector<8x8xf32>
    %401 = math.exp %400 : vector<8x8xf32>
    %cst_177 = arith.constant dense<0.000000e+00> : vector<8xf32>
    %402 = vector.multi_reduction <add>, %401, %cst_177 [1] : vector<8x8xf32> to vector<8xf32>
    %403 = vector.shape_cast %402 : vector<8xf32> to vector<8x1xf32>
    %404 = vector.broadcast %403 : vector<8x1xf32> to vector<8x8xf32>
    %405 = arith.divf %401, %404 : vector<8x8xf32>
    %406 = arith.truncf %405 : vector<8x8xf32> to vector<8x8xbf16>
    %cst_178 = arith.constant dense<0.000000e+00> : vector<8x8xf32>
    %407 = tpu.matmul %406, %393, %cst_178 {dimension_numbers = #tpu.dot_dimension_numbers<[1], [0], [0], [1], [0, 0, 1, 1], [], []>} : vector<8x8xbf16>, vector<8x8xbf16>, vector<8x8xf32> -> vector<8x8xf32>
    %408 = arith.truncf %407 : vector<8x8xf32> to vector<8x8xbf16>
    %c0_179 = arith.constant 0 : index
    %c0_180 = arith.constant 0 : index
    %c0_181 = arith.constant 0 : index
    %409 = vector.load %arg38[%c0_179, %c0_180, %c0_181] : memref<4x8x32xbf16, #tpu.memory_space<vmem>>, vector<1x8x32xbf16>
    %410 = vector.shape_cast %409 : vector<1x8x32xbf16> to vector<8x32xbf16>
    %cst_182 = arith.constant dense<0.000000e+00> : vector<8x32xf32>
    %411 = tpu.matmul %408, %410, %cst_182 {dimension_numbers = #tpu.dot_dimension_numbers<[1], [0], [0], [1], [0, 0, 1, 1], [], []>} : vector<8x8xbf16>, vector<8x32xbf16>, vector<8x32xf32> -> vector<8x32xf32>
    %412 = vector.extract_strided_slice %375 {offsets = [0, 8], sizes = [8, 8], strides = [1, 1]} : vector<8x32xf32> to vector<8x8xf32>
    %413 = arith.truncf %412 : vector<8x8xf32> to vector<8x8xbf16>
    %414 = vector.extract_strided_slice %381 {offsets = [0, 8], sizes = [8, 8], strides = [1, 1]} : vector<8x32xf32> to vector<8x8xf32>
    %415 = arith.truncf %414 : vector<8x8xf32> to vector<8x8xbf16>
    %416 = vector.extract_strided_slice %387 {offsets = [0, 8], sizes = [8, 8], strides = [1, 1]} : vector<8x32xf32> to vector<8x8xf32>
    %417 = arith.truncf %416 : vector<8x8xf32> to vector<8x8xbf16>
    %cst_183 = arith.constant dense<0.000000e+00> : vector<8x8xf32>
    %418 = tpu.matmul %413, %415, %cst_183 {dimension_numbers = #tpu.dot_dimension_numbers<[1], [1], [0], [0], [0, 0, 1, 0], [], []>} : vector<8x8xbf16>, vector<8x8xbf16>, vector<8x8xf32> -> vector<8x8xf32>
    %cst_184 = arith.constant 0.353553385 : f32
    %419 = vector.broadcast %cst_184 : f32 to vector<8x8xf32>
    %420 = arith.mulf %418, %419 : vector<8x8xf32>
    %cst_185 = arith.constant dense<0xFF800000> : vector<8xf32>
    %421 = vector.multi_reduction <maximumf>, %420, %cst_185 [1] : vector<8x8xf32> to vector<8xf32>
    %422 = vector.shape_cast %421 : vector<8xf32> to vector<8x1xf32>
    %423 = vector.broadcast %422 : vector<8x1xf32> to vector<8x8xf32>
    %424 = arith.subf %420, %423 : vector<8x8xf32>
    %425 = math.exp %424 : vector<8x8xf32>
    %cst_186 = arith.constant dense<0.000000e+00> : vector<8xf32>
    %426 = vector.multi_reduction <add>, %425, %cst_186 [1] : vector<8x8xf32> to vector<8xf32>
    %427 = vector.shape_cast %426 : vector<8xf32> to vector<8x1xf32>
    %428 = vector.broadcast %427 : vector<8x1xf32> to vector<8x8xf32>
    %429 = arith.divf %425, %428 : vector<8x8xf32>
    %430 = arith.truncf %429 : vector<8x8xf32> to vector<8x8xbf16>
    %cst_187 = arith.constant dense<0.000000e+00> : vector<8x8xf32>
    %431 = tpu.matmul %430, %417, %cst_187 {dimension_numbers = #tpu.dot_dimension_numbers<[1], [0], [0], [1], [0, 0, 1, 1], [], []>} : vector<8x8xbf16>, vector<8x8xbf16>, vector<8x8xf32> -> vector<8x8xf32>
    %432 = arith.truncf %431 : vector<8x8xf32> to vector<8x8xbf16>
    %c1_188 = arith.constant 1 : index
    %c0_189 = arith.constant 0 : index
    %c0_190 = arith.constant 0 : index
    %433 = vector.load %arg38[%c1_188, %c0_189, %c0_190] : memref<4x8x32xbf16, #tpu.memory_space<vmem>>, vector<1x8x32xbf16>
    %434 = vector.shape_cast %433 : vector<1x8x32xbf16> to vector<8x32xbf16>
    %cst_191 = arith.constant dense<0.000000e+00> : vector<8x32xf32>
    %435 = tpu.matmul %432, %434, %cst_191 {dimension_numbers = #tpu.dot_dimension_numbers<[1], [0], [0], [1], [0, 0, 1, 1], [], []>} : vector<8x8xbf16>, vector<8x32xbf16>, vector<8x32xf32> -> vector<8x32xf32>
    %436 = arith.addf %411, %435 : vector<8x32xf32>
    %437 = vector.extract_strided_slice %375 {offsets = [0, 16], sizes = [8, 8], strides = [1, 1]} : vector<8x32xf32> to vector<8x8xf32>
    %438 = arith.truncf %437 : vector<8x8xf32> to vector<8x8xbf16>
    %439 = vector.extract_strided_slice %381 {offsets = [0, 16], sizes = [8, 8], strides = [1, 1]} : vector<8x32xf32> to vector<8x8xf32>
    %440 = arith.truncf %439 : vector<8x8xf32> to vector<8x8xbf16>
    %441 = vector.extract_strided_slice %387 {offsets = [0, 16], sizes = [8, 8], strides = [1, 1]} : vector<8x32xf32> to vector<8x8xf32>
    %442 = arith.truncf %441 : vector<8x8xf32> to vector<8x8xbf16>
    %cst_192 = arith.constant dense<0.000000e+00> : vector<8x8xf32>
    %443 = tpu.matmul %438, %440, %cst_192 {dimension_numbers = #tpu.dot_dimension_numbers<[1], [1], [0], [0], [0, 0, 1, 0], [], []>} : vector<8x8xbf16>, vector<8x8xbf16>, vector<8x8xf32> -> vector<8x8xf32>
    %cst_193 = arith.constant 0.353553385 : f32
    %444 = vector.broadcast %cst_193 : f32 to vector<8x8xf32>
    %445 = arith.mulf %443, %444 : vector<8x8xf32>
    %cst_194 = arith.constant dense<0xFF800000> : vector<8xf32>
    %446 = vector.multi_reduction <maximumf>, %445, %cst_194 [1] : vector<8x8xf32> to vector<8xf32>
    %447 = vector.shape_cast %446 : vector<8xf32> to vector<8x1xf32>
    %448 = vector.broadcast %447 : vector<8x1xf32> to vector<8x8xf32>
    %449 = arith.subf %445, %448 : vector<8x8xf32>
    %450 = math.exp %449 : vector<8x8xf32>
    %cst_195 = arith.constant dense<0.000000e+00> : vector<8xf32>
    %451 = vector.multi_reduction <add>, %450, %cst_195 [1] : vector<8x8xf32> to vector<8xf32>
    %452 = vector.shape_cast %451 : vector<8xf32> to vector<8x1xf32>
    %453 = vector.broadcast %452 : vector<8x1xf32> to vector<8x8xf32>
    %454 = arith.divf %450, %453 : vector<8x8xf32>
    %455 = arith.truncf %454 : vector<8x8xf32> to vector<8x8xbf16>
    %cst_196 = arith.constant dense<0.000000e+00> : vector<8x8xf32>
    %456 = tpu.matmul %455, %442, %cst_196 {dimension_numbers = #tpu.dot_dimension_numbers<[1], [0], [0], [1], [0, 0, 1, 1], [], []>} : vector<8x8xbf16>, vector<8x8xbf16>, vector<8x8xf32> -> vector<8x8xf32>
    %457 = arith.truncf %456 : vector<8x8xf32> to vector<8x8xbf16>
    %c2_197 = arith.constant 2 : index
    %c0_198 = arith.constant 0 : index
    %c0_199 = arith.constant 0 : index
    %458 = vector.load %arg38[%c2_197, %c0_198, %c0_199] : memref<4x8x32xbf16, #tpu.memory_space<vmem>>, vector<1x8x32xbf16>
    %459 = vector.shape_cast %458 : vector<1x8x32xbf16> to vector<8x32xbf16>
    %cst_200 = arith.constant dense<0.000000e+00> : vector<8x32xf32>
    %460 = tpu.matmul %457, %459, %cst_200 {dimension_numbers = #tpu.dot_dimension_numbers<[1], [0], [0], [1], [0, 0, 1, 1], [], []>} : vector<8x8xbf16>, vector<8x32xbf16>, vector<8x32xf32> -> vector<8x32xf32>
    %461 = arith.addf %436, %460 : vector<8x32xf32>
    %462 = vector.extract_strided_slice %375 {offsets = [0, 24], sizes = [8, 8], strides = [1, 1]} : vector<8x32xf32> to vector<8x8xf32>
    %463 = arith.truncf %462 : vector<8x8xf32> to vector<8x8xbf16>
    %464 = vector.extract_strided_slice %381 {offsets = [0, 24], sizes = [8, 8], strides = [1, 1]} : vector<8x32xf32> to vector<8x8xf32>
    %465 = arith.truncf %464 : vector<8x8xf32> to vector<8x8xbf16>
    %466 = vector.extract_strided_slice %387 {offsets = [0, 24], sizes = [8, 8], strides = [1, 1]} : vector<8x32xf32> to vector<8x8xf32>
    %467 = arith.truncf %466 : vector<8x8xf32> to vector<8x8xbf16>
    %cst_201 = arith.constant dense<0.000000e+00> : vector<8x8xf32>
    %468 = tpu.matmul %463, %465, %cst_201 {dimension_numbers = #tpu.dot_dimension_numbers<[1], [1], [0], [0], [0, 0, 1, 0], [], []>} : vector<8x8xbf16>, vector<8x8xbf16>, vector<8x8xf32> -> vector<8x8xf32>
    %cst_202 = arith.constant 0.353553385 : f32
    %469 = vector.broadcast %cst_202 : f32 to vector<8x8xf32>
    %470 = arith.mulf %468, %469 : vector<8x8xf32>
    %cst_203 = arith.constant dense<0xFF800000> : vector<8xf32>
    %471 = vector.multi_reduction <maximumf>, %470, %cst_203 [1] : vector<8x8xf32> to vector<8xf32>
    %472 = vector.shape_cast %471 : vector<8xf32> to vector<8x1xf32>
    %473 = vector.broadcast %472 : vector<8x1xf32> to vector<8x8xf32>
    %474 = arith.subf %470, %473 : vector<8x8xf32>
    %475 = math.exp %474 : vector<8x8xf32>
    %cst_204 = arith.constant dense<0.000000e+00> : vector<8xf32>
    %476 = vector.multi_reduction <add>, %475, %cst_204 [1] : vector<8x8xf32> to vector<8xf32>
    %477 = vector.shape_cast %476 : vector<8xf32> to vector<8x1xf32>
    %478 = vector.broadcast %477 : vector<8x1xf32> to vector<8x8xf32>
    %479 = arith.divf %475, %478 : vector<8x8xf32>
    %480 = arith.truncf %479 : vector<8x8xf32> to vector<8x8xbf16>
    %cst_205 = arith.constant dense<0.000000e+00> : vector<8x8xf32>
    %481 = tpu.matmul %480, %467, %cst_205 {dimension_numbers = #tpu.dot_dimension_numbers<[1], [0], [0], [1], [0, 0, 1, 1], [], []>} : vector<8x8xbf16>, vector<8x8xbf16>, vector<8x8xf32> -> vector<8x8xf32>
    %482 = arith.truncf %481 : vector<8x8xf32> to vector<8x8xbf16>
    %c3_206 = arith.constant 3 : index
    %c0_207 = arith.constant 0 : index
    %c0_208 = arith.constant 0 : index
    %483 = vector.load %arg38[%c3_206, %c0_207, %c0_208] : memref<4x8x32xbf16, #tpu.memory_space<vmem>>, vector<1x8x32xbf16>
    %484 = vector.shape_cast %483 : vector<1x8x32xbf16> to vector<8x32xbf16>
    %cst_209 = arith.constant dense<0.000000e+00> : vector<8x32xf32>
    %485 = tpu.matmul %482, %484, %cst_209 {dimension_numbers = #tpu.dot_dimension_numbers<[1], [0], [0], [1], [0, 0, 1, 1], [], []>} : vector<8x8xbf16>, vector<8x32xbf16>, vector<8x32xf32> -> vector<8x32xf32>
    %486 = arith.addf %461, %485 : vector<8x32xf32>
    %c0_210 = arith.constant 0 : index
    %c0_211 = arith.constant 0 : index
    %487 = vector.load %arg39[%c0_210, %c0_211] : memref<1x32xf32, #tpu.memory_space<vmem>>, vector<1x32xf32>
    %488 = vector.broadcast %487 : vector<1x32xf32> to vector<8x32xf32>
    %489 = arith.addf %486, %488 : vector<8x32xf32>
    %c0_212 = arith.constant 0 : index
    %c0_213 = arith.constant 0 : index
    %c0_214 = arith.constant 0 : index
    %490 = vector.load %arg40[%c0_212, %c0_213, %c0_214] : memref<1x8x32xf32, #tpu.memory_space<vmem>>, vector<1x8x32xf32>
    %491 = vector.shape_cast %490 : vector<1x8x32xf32> to vector<8x32xf32>
    %492 = vector.shape_cast %489 : vector<8x32xf32> to vector<1x8x32xf32>
    tpu.vector_store %arg40[%c0_212, %c0_213, %c0_214], %492 {strides = array<i32>} : memref<1x8x32xf32, #tpu.memory_space<vmem>>, vector<1x8x32xf32>,
    return
  }
  func.func @transform_0(%arg0: i32) -> (i32, i32, i32) {
    %c0_i32 = arith.constant 0 : i32
    %c0_i32_0 = arith.constant 0 : i32
    %c0_i32_1 = arith.constant 0 : i32
    return %arg0, %c0_i32, %c0_i32_0 : i32, i32, i32
  }
  func.func @transform_1(%arg0: i32) -> (i32, i32, i32) {
    %c0_i32 = arith.constant 0 : i32
    %c0_i32_0 = arith.constant 0 : i32
    %c0_i32_1 = arith.constant 0 : i32
    return %arg0, %c0_i32, %c0_i32_0 : i32, i32, i32
  }
  func.func @transform_2(%arg0: i32) -> (i32, i32, i32) {
    %c0_i32 = arith.constant 0 : i32
    %c0_i32_0 = arith.constant 0 : i32
    %c0_i32_1 = arith.constant 0 : i32
    return %arg0, %c0_i32, %c0_i32_0 : i32, i32, i32
  }
  func.func @transform_3(%arg0: i32) -> (i32, i32) {
    %c0_i32 = arith.constant 0 : i32
    %c0_i32_0 = arith.constant 0 : i32
    %c0_i32_1 = arith.constant 0 : i32
    return %c0_i32, %c0_i32_0 : i32, i32
  }
  func.func @transform_4(%arg0: i32) -> (i32, i32) {
    %c0_i32 = arith.constant 0 : i32
    %c0_i32_0 = arith.constant 0 : i32
    %c0_i32_1 = arith.constant 0 : i32
    return %c0_i32, %c0_i32_0 : i32, i32
  }
  func.func @transform_5(%arg0: i32) -> (i32, i32) {
    %c0_i32 = arith.constant 0 : i32
    %c0_i32_0 = arith.constant 0 : i32
    %c0_i32_1 = arith.constant 0 : i32
    return %c0_i32, %c0_i32_0 : i32, i32
  }
  func.func @transform_6(%arg0: i32) -> (i32, i32) {
    %c0_i32 = arith.constant 0 : i32
    %c0_i32_0 = arith.constant 0 : i32
    %c0_i32_1 = arith.constant 0 : i32
    return %c0_i32, %c0_i32_0 : i32, i32
  }
  func.func @transform_7(%arg0: i32) -> (i32, i32) {
    %c0_i32 = arith.constant 0 : i32
    %c0_i32_0 = arith.constant 0 : i32
    %c0_i32_1 = arith.constant 0 : i32
    return %c0_i32, %c0_i32_0 : i32, i32
  }
  func.func @transform_8(%arg0: i32) -> (i32, i32) {
    %c0_i32 = arith.constant 0 : i32
    %c0_i32_0 = arith.constant 0 : i32
    %c0_i32_1 = arith.constant 0 : i32
    return %c0_i32, %c0_i32_0 : i32, i32
  }
  func.func @transform_9(%arg0: i32) -> (i32, i32) {
    %c0_i32 = arith.constant 0 : i32
    %c0_i32_0 = arith.constant 0 : i32
    %c0_i32_1 = arith.constant 0 : i32
    return %c0_i32, %c0_i32_0 : i32, i32
  }
  func.func @transform_10(%arg0: i32) -> (i32, i32) {
    %c0_i32 = arith.constant 0 : i32
    %c0_i32_0 = arith.constant 0 : i32
    %c0_i32_1 = arith.constant 0 : i32
    return %c0_i32, %c0_i32_0 : i32, i32
  }
  func.func @transform_11(%arg0: i32) -> (i32, i32, i32) {
    %c0_i32 = arith.constant 0 : i32
    %c0_i32_0 = arith.constant 0 : i32
    %c0_i32_1 = arith.constant 0 : i32
    %c0_i32_2 = arith.constant 0 : i32
    return %c0_i32, %c0_i32_0, %c0_i32_1 : i32, i32, i32
  }
  func.func @transform_12(%arg0: i32) -> (i32, i32) {
    %c0_i32 = arith.constant 0 : i32
    %c0_i32_0 = arith.constant 0 : i32
    %c0_i32_1 = arith.constant 0 : i32
    return %c0_i32, %c0_i32_0 : i32, i32
  }
  func.func @transform_13(%arg0: i32) -> (i32, i32) {
    %c0_i32 = arith.constant 0 : i32
    %c0_i32_0 = arith.constant 0 : i32
    %c0_i32_1 = arith.constant 0 : i32
    return %c0_i32, %c0_i32_0 : i32, i32
  }
  func.func @transform_14(%arg0: i32) -> (i32, i32) {
    %c0_i32 = arith.constant 0 : i32
    %c0_i32_0 = arith.constant 0 : i32
    %c0_i32_1 = arith.constant 0 : i32
    return %c0_i32, %c0_i32_0 : i32, i32
  }
  func.func @transform_15(%arg0: i32) -> (i32, i32) {
    %c0_i32 = arith.constant 0 : i32
    %c0_i32_0 = arith.constant 0 : i32
    %c0_i32_1 = arith.constant 0 : i32
    return %c0_i32, %c0_i32_0 : i32, i32
  }
  func.func @transform_16(%arg0: i32) -> (i32, i32) {
    %c0_i32 = arith.constant 0 : i32
    %c0_i32_0 = arith.constant 0 : i32
    %c0_i32_1 = arith.constant 0 : i32
    return %c0_i32, %c0_i32_0 : i32, i32
  }
  func.func @transform_17(%arg0: i32) -> (i32, i32) {
    %c0_i32 = arith.constant 0 : i32
    %c0_i32_0 = arith.constant 0 : i32
    %c0_i32_1 = arith.constant 0 : i32
    return %c0_i32, %c0_i32_0 : i32, i32
  }
  func.func @transform_18(%arg0: i32) -> (i32, i32) {
    %c0_i32 = arith.constant 0 : i32
    %c0_i32_0 = arith.constant 0 : i32
    %c0_i32_1 = arith.constant 0 : i32
    return %c0_i32, %c0_i32_0 : i32, i32
  }
  func.func @transform_19(%arg0: i32) -> (i32, i32) {
    %c0_i32 = arith.constant 0 : i32
    %c0_i32_0 = arith.constant 0 : i32
    %c0_i32_1 = arith.constant 0 : i32
    return %c0_i32, %c0_i32_0 : i32, i32
  }
  func.func @transform_20(%arg0: i32) -> (i32, i32) {
    %c0_i32 = arith.constant 0 : i32
    %c0_i32_0 = arith.constant 0 : i32
    %c0_i32_1 = arith.constant 0 : i32
    return %c0_i32, %c0_i32_0 : i32, i32
  }
  func.func @transform_21(%arg0: i32) -> (i32, i32) {
    %c0_i32 = arith.constant 0 : i32
    %c0_i32_0 = arith.constant 0 : i32
    %c0_i32_1 = arith.constant 0 : i32
    return %c0_i32, %c0_i32_0 : i32, i32
  }
  func.func @transform_22(%arg0: i32) -> (i32, i32) {
    %c0_i32 = arith.constant 0 : i32
    %c0_i32_0 = arith.constant 0 : i32
    %c0_i32_1 = arith.constant 0 : i32
    return %c0_i32, %c0_i32_0 : i32, i32
  }
  func.func @transform_23(%arg0: i32) -> (i32, i32, i32) {
    %c0_i32 = arith.constant 0 : i32
    %c0_i32_0 = arith.constant 0 : i32
    %c0_i32_1 = arith.constant 0 : i32
    %c0_i32_2 = arith.constant 0 : i32
    return %c0_i32, %c0_i32_0, %c0_i32_1 : i32, i32, i32
  }
  func.func @transform_24(%arg0: i32) -> (i32, i32) {
    %c0_i32 = arith.constant 0 : i32
    %c0_i32_0 = arith.constant 0 : i32
    %c0_i32_1 = arith.constant 0 : i32
    return %c0_i32, %c0_i32_0 : i32, i32
  }
  func.func @transform_25(%arg0: i32) -> (i32, i32) {
    %c0_i32 = arith.constant 0 : i32
    %c0_i32_0 = arith.constant 0 : i32
    %c0_i32_1 = arith.constant 0 : i32
    return %c0_i32, %c0_i32_0 : i32, i32
  }
  func.func @transform_26(%arg0: i32) -> (i32, i32) {
    %c0_i32 = arith.constant 0 : i32
    %c0_i32_0 = arith.constant 0 : i32
    %c0_i32_1 = arith.constant 0 : i32
    return %c0_i32, %c0_i32_0 : i32, i32
  }
  func.func @transform_27(%arg0: i32) -> (i32, i32) {
    %c0_i32 = arith.constant 0 : i32
    %c0_i32_0 = arith.constant 0 : i32
    %c0_i32_1 = arith.constant 0 : i32
    return %c0_i32, %c0_i32_0 : i32, i32
  }
  func.func @transform_28(%arg0: i32) -> (i32, i32) {
    %c0_i32 = arith.constant 0 : i32
    %c0_i32_0 = arith.constant 0 : i32
    %c0_i32_1 = arith.constant 0 : i32
    return %c0_i32, %c0_i32_0 : i32, i32
  }
  func.func @transform_29(%arg0: i32) -> (i32, i32) {
    %c0_i32 = arith.constant 0 : i32
    %c0_i32_0 = arith.constant 0 : i32
    %c0_i32_1 = arith.constant 0 : i32
    return %c0_i32, %c0_i32_0 : i32, i32
  }
  func.func @transform_30(%arg0: i32) -> (i32, i32) {
    %c0_i32 = arith.constant 0 : i32
    %c0_i32_0 = arith.constant 0 : i32
    %c0_i32_1 = arith.constant 0 : i32
    return %c0_i32, %c0_i32_0 : i32, i32
  }
  func.func @transform_31(%arg0: i32) -> (i32, i32) {
    %c0_i32 = arith.constant 0 : i32
    %c0_i32_0 = arith.constant 0 : i32
    %c0_i32_1 = arith.constant 0 : i32
    return %c0_i32, %c0_i32_0 : i32, i32
  }
  func.func @transform_32(%arg0: i32) -> (i32, i32) {
    %c0_i32 = arith.constant 0 : i32
    %c0_i32_0 = arith.constant 0 : i32
    %c0_i32_1 = arith.constant 0 : i32
    return %c0_i32, %c0_i32_0 : i32, i32
  }
  func.func @transform_33(%arg0: i32) -> (i32, i32) {
    %c0_i32 = arith.constant 0 : i32
    %c0_i32_0 = arith.constant 0 : i32
    %c0_i32_1 = arith.constant 0 : i32
    return %c0_i32, %c0_i32_0 : i32, i32
  }
  func.func @transform_34(%arg0: i32) -> (i32, i32) {
    %c0_i32 = arith.constant 0 : i32
    %c0_i32_0 = arith.constant 0 : i32
    %c0_i32_1 = arith.constant 0 : i32
    return %c0_i32, %c0_i32_0 : i32, i32
  }
  func.func @transform_35(%arg0: i32) -> (i32, i32) {
    %c0_i32 = arith.constant 0 : i32
    %c0_i32_0 = arith.constant 0 : i32
    %c0_i32_1 = arith.constant 0 : i32
    return %c0_i32, %c0_i32_0 : i32, i32
  }
  func.func @transform_36(%arg0: i32) -> (i32, i32) {
    %c0_i32 = arith.constant 0 : i32
    %c0_i32_0 = arith.constant 0 : i32
    %c0_i32_1 = arith.constant 0 : i32
    return %c0_i32, %c0_i32_0 : i32, i32
  }
  func.func @transform_37(%arg0: i32) -> (i32, i32, i32) {
    %c0_i32 = arith.constant 0 : i32
    %c0_i32_0 = arith.constant 0 : i32
    %c0_i32_1 = arith.constant 0 : i32
    %c0_i32_2 = arith.constant 0 : i32
    return %c0_i32, %c0_i32_0, %c0_i32_1 : i32, i32, i32
  }
  func.func @transform_38(%arg0: i32) -> (i32, i32) {
    %c0_i32 = arith.constant 0 : i32
    %c0_i32_0 = arith.constant 0 : i32
    %c0_i32_1 = arith.constant 0 : i32
    return %c0_i32, %c0_i32_0 : i32, i32
  }
  func.func @transform_39(%arg0: i32) -> (i32, i32, i32) {
    %c0_i32 = arith.constant 0 : i32
    %c0_i32_0 = arith.constant 0 : i32
    %c0_i32_1 = arith.constant 0 : i32
    return %arg0, %c0_i32, %c0_i32_0 : i32, i32, i32
  }
}

</mosaic_0001>

<bundles_post_ra>
// kernel: anp_encoder_forward.1
= control target key start
LH: loop header
LB: loop body
LE: loop exit
PB: predicated region body
PF: predicated region fallthrough
CT: control target
= control target key end

     0   :  { %s4916_s6 = smov 1   ;;  %s4917_s10 = smov 2   ;;  %s5699_s0 = inlined_call_operand.smem [shape: u32[40], index: -1, kind: input, shape index: {}] }
   0x1   :  { %s4977_s5 = sld [smem:[%s5699_s0]]   ;;  %s4918_s14 = smov 3  }
   0x2   :  { %s4982_s9 = sld [smem:[%s5699_s0 + %s4916_s6]]   ;;  %s4919_s18 = smov 4  }
   0x3   :  { %s4987_s13 = sld [smem:[%s5699_s0 + %s4917_s10]]   ;;  %s4920_s22 = smov 5  }
   0x4   :  { %s4992_s17 = sld [smem:[%s5699_s0 + %s4918_s14]]   ;;  %s4921_s26 = smov 6  }
   0x5   :  { %s4997_s21 = sld [smem:[%s5699_s0 + %s4919_s18]]   ;;  %s4922_s30 = smov 7  }
   0x6   :  { %s5002_s25 = sld [smem:[%s5699_s0 + %s4920_s22]]   ;;  %s4923_s4 = smov 8  }
   0x7   :  { %5724 = sst [smem:[#allocation5_spill]] %s4977_s5  ;;  %s4924_s10 = smov 9  }
   0x8   :  { %5725 = sst [smem:[#allocation6_spill]] %s4982_s9  ;;  %s4925_s15 = smov 10  }
   0x9   :  { %5726 = sst [smem:[#allocation7_spill]] %s4987_s13  ;;  %s4926_s20 = smov 11  }
   0xa   :  { %5727 = sst [smem:[#allocation8_spill]] %s4992_s17  ;;  %s4928_s1 = smov 13  }
   0xb   :  { %s5007_s29 = sld [smem:[%s5699_s0 + %s4921_s26]]   ;;  %s4927_s26 = smov 12  }
   0xc   :  { %s5012_s3 = sld [smem:[%s5699_s0 + %s4922_s30]]   ;;  %s4929_s7 = smov 14  }
   0xd   :  { %s5017_s8 = sld [smem:[%s5699_s0 + %s4923_s4]]   ;;  %s4931_s22 = smov 16  }
   0xe   :  { %s5022_s14 = sld [smem:[%s5699_s0 + %s4924_s10]]   ;;  %s4932_s28 = smov 17  }
   0xf   :  { %s5027_s19 = sld [smem:[%s5699_s0 + %s4925_s15]]   ;;  %s4930_s15 = smov 15  }
  0x10   :  { %s5032_s24 = sld [smem:[%s5699_s0 + %s4926_s20]]  }
  0x11   :  { %s5037_s30 = sld [smem:[%s5699_s0 + %s4927_s26]]  }
  0x12   :  { %5728 = sst [smem:[#allocation9_spill]] %s5012_s3 }
  0x13   :  { %5729 = sst [smem:[#allocation10_spill]] %s5017_s8 }
  0x14   :  { %5730 = sst [smem:[#allocation11_spill]] %s5022_s14 }
  0x15   :  { %5731 = sst [smem:[#allocation12_spill]] %s5027_s19 }
  0x16   :  { %s5042_s6 = sld [smem:[%s5699_s0 + %s4928_s1]]  }
  0x17   :  { %s5047_s12 = sld [smem:[%s5699_s0 + %s4929_s7]]   ;;  %s4933_s7 = smov 18  }
  0x18   :  { %s5052_s20 = sld [smem:[%s5699_s0 + %s4930_s15]]   ;;  %s4934_s15 = smov 19  }
  0x19   :  { %s5057_s27 = sld [smem:[%s5699_s0 + %s4931_s22]]   ;;  %s4935_s22 = smov 20  }
  0x1a   :  { %s5062_s4 = sld [smem:[%s5699_s0 + %s4932_s28]]   ;;  %s4936_s28 = smov 21  }
  0x1b   :  { %s5067_s9 = sld [smem:[%s5699_s0 + %s4933_s7]]   ;;  %s4937_s7 = smov 22  }
  0x1c   :  { %5732 = sst [smem:[#allocation13_spill]] %s5042_s6 }
  0x1d   :  { %5733 = sst [smem:[#allocation14_spill]] %s5047_s12 }
  0x1e   :  { %s5072_s13 = sld [smem:[%s5699_s0 + %s4934_s15]]   ;;  %s4938_s15 = smov 23  }
  0x1f   :  { %5734 = sst [smem:[#allocation15_spill]] %s5057_s27 }
  0x20   :  { %5735 = sst [smem:[#allocation16_spill]] %s5062_s4 }
  0x21   :  { %5736 = sst [smem:[#allocation17_spill]] %s5067_s9 }
  0x22   :  { %s5077_s27 = sld [smem:[%s5699_s0 + %s4935_s22]]   ;;  %s4939_s22 = smov 24  }
  0x23   :  { %s5082_s12 = sld [smem:[%s5699_s0 + %s4936_s28]]   ;;  %s4940_s28 = smov 25  }
  0x24   :  { %5737 = sst [smem:[#allocation18_spill]] %s5072_s13 }
  0x25   :  { %s5087_s9 = sld [smem:[%s5699_s0 + %s4937_s7]]   ;;  %s4941_s7 = smov 26  }
  0x26   :  { %s5092_s13 = sld [smem:[%s5699_s0 + %s4938_s15]]   ;;  %s4942_s15 = smov 27  }
  0x28   :  { %5738 = sst [smem:[#allocation19_spill]] %s5077_s27 }
  0x29   :  { %5739 = sst [smem:[#allocation20_spill]] %s5082_s12 }
  0x2a   :  { %s5097_s27 = sld [smem:[%s5699_s0 + %s4939_s22]]   ;;  %s4943_s22 = smov 28  }
  0x2b   :  { %5740 = sst [smem:[#allocation21_spill]] %s5087_s9 }
  0x2c   :  { %5741 = sst [smem:[#allocation22_spill]] %s5092_s13 }
  0x2d   :  { %s5102_s12 = sld [smem:[%s5699_s0 + %s4940_s28]]   ;;  %s4944_s28 = smov 29  }
  0x2e   :  { %s5107_s9 = sld [smem:[%s5699_s0 + %s4941_s7]]   ;;  %s4945_s7 = smov 30  }
  0x2f   :  { %s5112_s13 = sld [smem:[%s5699_s0 + %s4942_s15]]   ;;  %s4946_s15 = smov 31  }
  0x30   :  { %5742 = sst [smem:[#allocation23_spill]] %s5097_s27 }
  0x31   :  { %s5117_s27 = sld [smem:[%s5699_s0 + %s4943_s22]]   ;;  %s4947_s22 = smov 32  }
  0x33   :  { %5743 = sst [smem:[#allocation24_spill]] %s5102_s12 }
  0x34   :  { %5744 = sst [smem:[#allocation25_spill]] %s5107_s9 }
  0x35   :  { %5745 = sst [smem:[#allocation26_spill]] %s5112_s13 }
  0x36   :  { %s5122_s12 = sld [smem:[%s5699_s0 + %s4944_s28]]   ;;  %s4948_s28 = smov 33  }
  0x37   :  { %5746 = sst [smem:[#allocation27_spill]] %s5117_s27 }
  0x38   :  { %s5127_s9 = sld [smem:[%s5699_s0 + %s4945_s7]]   ;;  %s4949_s7 = smov 34  }
  0x39   :  { %s5132_s13 = sld [smem:[%s5699_s0 + %s4946_s15]]   ;;  %s4950_s15 = smov 35  }
  0x3a   :  { %s5137_s27 = sld [smem:[%s5699_s0 + %s4947_s22]]   ;;  %s4951_s22 = smov 36  }
  0x3c   :  { %5747 = sst [smem:[#allocation28_spill]] %s5122_s12 }
  0x3d   :  { %s5142_s12 = sld [smem:[%s5699_s0 + %s4948_s28]]   ;;  %s4952_s28 = smov 37  }
  0x3e   :  { %5748 = sst [smem:[#allocation29_spill]] %s5127_s9 }
  0x3f   :  { %5749 = sst [smem:[#allocation30_spill]] %s5132_s13 }
  0x40   :  { %5750 = sst [smem:[#allocation31_spill]] %s5137_s27 }
  0x41   :  { %s5147_s9 = sld [smem:[%s5699_s0 + %s4949_s7]]   ;;  %s4953_s7 = smov 38  }
  0x42   :  { %s5152_s13 = sld [smem:[%s5699_s0 + %s4950_s15]]   ;;  %s4954_s15 = smov 39  }
  0x43   :  { %5751 = sst [smem:[#allocation32_spill]] %s5142_s12 }
  0x44   :  { %s5157_s27 = sld [smem:[%s5699_s0 + %s4951_s22]]  }
  0x45   :  { %s5162_s12 = sld [smem:[%s5699_s0 + %s4952_s28]]  }
  0x47   :  { %5752 = sst [smem:[#allocation33_spill]] %s5147_s9 }
  0x48   :  { %5753 = sst [smem:[#allocation34_spill]] %s5152_s13 }
  0x49   :  { %s5167_s9 = sld [smem:[%s5699_s0 + %s4953_s7]]  }
  0x4a   :  { %s5172_s13 = sld [smem:[%s5699_s0 + %s4954_s15]]  }
  0x4b   :  { %84 = vsyncpa [#allocation3], 0 }
  0x4c   :  { %86 = vsyncpa [#allocation3 + $0x1], 0  ;;  %s5174_s22 = smov 0   ;;  %s5176_s23 = smov 0  }
  0x4d   :  { %s5178_s26 = smov 0   ;;  %s5180_s28 = smov 0  }
  0x4e LB: > { %s5754_s14 = sld [smem:[#allocation11_spill]]  ;;  %s5755_s4 = sld [smem:[#allocation16_spill]]  ;;  %s4906_s23 = sphi %s5176_s23, %s5798_s23   ;;  %s4902_s22 = sphi %s5174_s22, %s5797_s22   ;;  %s4914_s28 = sphi %s5180_s28, %s5800_s28   ;;  %s4910_s26 = sphi %s5178_s26, %s5799_s26  }
  0x4f   : > { %s5195_s0 = sadd.s32 4294967295, %s4914_s28   ;;  %s4163_s1 = sadd.s32 4294967294, %s4914_s28  }
  0x50   : > { %s5199_s2 = sadd.s32 1, %s4914_s28   ;;  %s933_s7 = sadd.s32 1, %s4910_s26 }
  0x51   : > { %s930_s10 = ssub.s32 %s4914_s28, %s5199_s2  ;;  %p943_p0 = scmp.ne.s32.totalorder %s4910_s26, %s4906_s23 }
  0x52   : > { %p931_p1 = scmp.eq.s32.totalorder %s930_s10, 0  ;;  %p944_p2 = scmp.eq.s32.totalorder %s5195_s0, 1 }
  0x53   : > { %p949_p3 = scmp.ne.s32.totalorder %s4906_s23, %s4902_s22  ;;  %p950_p4 = scmp.eq.s32.totalorder %s4163_s1, 1 }
  0x54   : > { %s5210_s11 = scalar_select %p931_p1, %s4910_s26, %s933_s7  }
  0x55   : > { %p5212_p5 = por %p944_p2, %p943_p0  ;;  %p5216_p6 = por %p950_p4, %p949_p3 }
  0x56   : > { %p4166_p7 = scmp.ge.s32.totalorder %s4914_s28, 1  ;;  %p1097_p8 = scmp.lt.s32.totalorder %s4914_s28, 3 }
  0x58   : > { %p1098_p9 = pnand %p4166_p7, %p1097_p8 }
  0x59   : > { %s5758_s17 = sld [smem:[#allocation8_spill]] (!%p1098_p9)  ;;  %s5759_s5 = sld [smem:[#allocation5_spill]] (!%p1098_p9)  ;;  %vm1227_vm0 = vcmask (!%p1098_p9), 1043456   ;;  %v4955_v1 = vmov (!%p1098_p9), 0.0   ;;  %vm4956_vm1 = vmmov (!%p1098_p9), 0   ;;  %vm1223_vm2 = vcmask (!%p1098_p9), 64512  }
  0x5a   : > { %1101 = sbr.rel (%p1098_p9) target bundleno = 10049 (0x2741), region = 176  ;;  %p1200_p10 = scmp.lt.s32.totalorder (!%p1098_p9), %s5195_s0, 1  ;;  %4379 = vmatprep.subr.bf16.mxu0 (!%p1098_p9), %v4955_v1  ;;  %4381 = vmatprep.mubr.msk.bf16.mxu0 (!%p1098_p9), %vm4956_vm1, %v4955_v1  ;;  %v4776_v5 = vld [vmem:[%s5002_s25] sm:$0xff] (!%p1098_p9)   ;;  %v4777_v6 = vld [vmem:[%s5002_s25 + $0x8] sm:$0xff] (!%p1098_p9)   ;;  %vm1296_vm3 = vcmask (!%p1098_p9), 261120   ;;  %vm2224_vm4 = vcmask (!%p1098_p9), 523264  }
  0x5b   : > { %4385 = vmatprep.subr.bf16.mxu1 (!%p1098_p9), %v4955_v1  ;;  %4389 = vmatprep.mubr.msk.bf16.mxu1 (!%p1098_p9), %vm4956_vm1, %v4955_v1  ;;  %v4171_v7 = vld [vmem:[%s4997_s21] ss:$0 sm:$0xff] (!%p1098_p9)  ;;  %s5760_s3 = sld [smem:[#allocation9_spill]] (!%p1098_p9)  ;;  %s5761_s8 = sld [smem:[#allocation10_spill]] (!%p1098_p9)  ;;  %v4779_v28 = vld [vmem:[%s5754_s14 + $0x8] sm:$0xff] (!%p1098_p9)   ;;  %vm3211_vm5 = vcmask (!%p1098_p9), 1041408  }
  0x5c   : > { %4386 = vmatpush3.bf16.msra.mxu1 (!%p1098_p9), %v4776_v5  ;;  %v4173_v15 = vld [vmem:[%s5007_s29] ss:$0 sm:$0xff] (!%p1098_p9)  ;;  %s5762_s19 = sld [smem:[#allocation12_spill]] (!%p1098_p9)  ;;  %s5705_s10 = smov (!%p1098_p9), 120   ;;  %vm3207_vm6 = vcmask (!%p1098_p9), 31744  }
  0x5d   : > { %4387 = vmatprep.subr.bf16.mxu1 (!%p1098_p9), %v4955_v1  ;;  %v4778_v27 = vld [vmem:[%s5754_s14] sm:$0xff] (!%p1098_p9)   ;;  %s5763_s6 = sld [smem:[#allocation13_spill]] (!%p1098_p9)  ;;  %s5789_s14 = sld [smem:[#allocation7_spill]] (!%p1098_p9) }
  0x5f   : > { %v1215_v0 = vld [vmem:[%s5758_s17] sm:$0xf] (!%p1098_p9)  ;;  %s5791_s17 = sld [smem:[#allocation6_spill]] (!%p1098_p9) }
  0x60   : > { %v1229_v2 = vsel (!%p1098_p9), %vm1227_vm0, %v1215_v0, 0  ;;  %4388 = vmatpush3.bf16.msra.mxu1 (!%p1098_p9), %v4777_v6 }
  0x61   : > { %4380 = vmatpush3.bf16.msra.mxu0 %v1229_v2  ;;  %s1201_s18 = scalar_select %p1200_p10, %s5195_s0, 1  ;;  %4401 = vmatprep.subr.bf16.mxu1 %v4955_v1  ;;  %v4177_v33 = vld [vmem:[%s5760_s3] ss:$0 sm:$0xff] }
  0x62   : > { %4393 = vmatprep.subr.bf16.mxu0 %v4955_v1  ;;  %v4178_v35 = vld [vmem:[%s5761_s8] ss:$0 sm:$0xff]  ;;  %s5770_s3 = sld [smem:[#allocation21_spill]]  ;;  %s5788_s8 = sld [smem:[#allocation30_spill]] }
  0x63   : > { %s5233_s1 = sshll.u32 %s1201_s18, 3  ;;  %v4179_v39 = vld [vmem:[%s5762_s19] ss:$0 sm:$0xff]  ;;  %s5707_s18 = smov 96  }
  0x64   : > { %s1203_s7 = scalar_lea.vmem %s5759_s5, %s5233_s1  ;;  %s5780_s5 = smov 104  }
  0x65   : > { %v1213_v3 = vld [vmem:[%s1203_s7] sm:$0xff]  ;;  %s5709_s7 = smov 88   ;;  %s1211_s19 = scalar_lea.vmem %s5789_s14, %s5233_s1 }
  0x66   : > { %v1214_v4 = vpack.c.bf16 %v1213_v3, %v1213_v3  ;;  %s5793_s14 = sld [smem:[#allocation31_spill]] }
  0x68   : > { %4382 = vmatmul.mubr.msk.bf16.vlgmr.msra.gmra.mrb[0].mxu0 %vm1223_vm2, %v1214_v4 }
  0x69   : > { %4397 = vmatprep.mubr.msk.bf16.mxu0 %vm4956_vm1, %v4955_v1  ;;  %4394 = vmatpush3.bf16.msra.mxu0 %v4778_v27 }
  0x6a   : > { %4395 = vmatprep.subr.bf16.mxu0 %v4955_v1 }
  0x6d   : > { %4396 = vmatpush3.bf16.msra.mxu0 %v4779_v28 }
  0x6e   : > { %4407 = vmatprep.subr.bf16.mxu0 %v4955_v1 }
 0x13b   : > { %v1265_v8 = vpop.f32.mrb[0].mxu0 }
 0x13c   : > { %v1266_v9 = vadd.f32 %v4171_v7, %v1265_v8  ;;  %v4383_v10 = vpop.f32.mrb[1].mxu0 }
 0x13d   : > { %v1268_v11 = vpop.f32.mrb[2].mxu0 }
 0x13e   : > { %v1271_v12 = vmax.f32 %v1266_v9, 0.0  ;;  %v4384_v13 = vpop.f32.mrb[3].mxu0 }
 0x140   : > { %v1272_v14 = vpack.c.bf16 %v1271_v12, %v1271_v12 }
 0x142   : > { %4390 = vmatmul.mubr.msk.bf16.vlgmr.msra.gmra.mrb[0].mxu1 %vm1296_vm3, %v1272_v14 }
 0x143   : > { %4403 = vmatprep.mubr.msk.bf16.mxu1 %vm4956_vm1, %v4955_v1 }
 0x215   : > { %v1334_v16 = vpop.f32.mrb[0].mxu1 }
 0x216   : > { %v5249_v17 = vadd.f32 %v4173_v15, %v1334_v16  ;;  %v4391_v18 = vpop.f32.mrb[1].mxu1 }
 0x217   : > { %v1337_v19 = vpop.f32.mrb[2].mxu1 }
 0x218   : > { %v4392_v20 = vpop.f32.mrb[3].mxu1  ;;  %v1340_v21 = vsel %vm1296_vm3, %v5249_v17, 0.0 }
 0x219   : > { %1341 = vadd.xlane.f32.xlu0 %v1340_v21 }
 0x2a6   : > { %v1342_v22 = vpop.xlane.xlu0 %1341 }
 0x2a7   : > { %v1344_v23 = vmul.f32 0.03125, %v1342_v22 }
 0x2a9   : > { %v1345_v24 = vsub.f32 %v5249_v17, %v1344_v23  ;;  %v1549_v23 = vld [vmem:[%s5032_s24] sm:$0xf] }
 0x2ab   : > { %v1346_v25 = vmul.f32 %v1345_v24, %v1345_v24 }
 0x2ad   : > { %v1347_v26 = vsel %vm1296_vm3, %v1346_v25, 0.0  ;;  %v4187_v25 = vld [vmem:[%s5032_s24 + $0x4] sm:$0xf] }
 0x2ae   : > { %1348 = vadd.xlane.f32.xlu0 %v1347_v26  ;;  %v1668_v26 = vsel %vm1227_vm0, %v4187_v25, 0 }
 0x33b   : > { %v1349_v29 = vpop.xlane.xlu0 %1348 }
 0x33c   : > { %v1350_v30 = vmul.f32 0.03125, %v1349_v29 }
 0x33e   : > { %v1351_v31 = vadd.f32 1e-05, %v1350_v30 }
 0x340   : > { %4796 = vrsqrt.f32 %v1351_v31 }
 0x34a   : > { %v4797_v32 = vpop.eup %4796 }
 0x34b   : > { %v1353_v34 = vmul.f32 %v4797_v32, %v1345_v24  ;;  %v1714_v24 = vsel %vm1227_vm0, %v1549_v23, 0 }
 0x34d   : > { %v1361_v36 = vmul.f32 %v4177_v33, %v1353_v34 }
 0x34f   : > { %v1369_v37 = vadd.f32 %v4178_v35, %v1361_v36 }
 0x351   : > { %v1370_v38 = vpack.c.bf16 %v1369_v37, %v1369_v37 }
 0x353   : > { %4398 = vmatmul.mubr.msk.bf16.vlgmr.msra.gmra.mrb[4].mxu0 %vm1296_vm3, %v1370_v38 }
 0x354   : > { %4409 = vmatprep.mubr.msk.bf16.mxu0 %vm4956_vm1, %v4955_v1 }
 0x426   : > { %v1431_v40 = vpop.f32.mrb[4].mxu0 }
 0x427   : > { %v1432_v41 = vadd.f32 %v4179_v39, %v1431_v40  ;;  %v4399_v42 = vpop.f32.mrb[5].mxu0 }
 0x428   : > { %v1434_v43 = vpop.f32.mrb[6].mxu0 }
 0x429   : > { %v5265_v44 = vpack.c.bf16 %v1432_v41, %v1432_v41  ;;  %v4400_v45 = vpop.f32.mrb[7].mxu0 }
 0x42b   : > { %1550 = vrot.lane.b32.xlu0 %v5265_v44, %s5705_s10  ;;  %1439 = vrot.lane.b32.xlu1 %v5265_v44, %s5707_s18  ;;  %s5708_s10 = smov 56   ;;  %s5712_s18 = smov 64  }
 0x42f   : > { %1552 = vrot.lane.b32.xlu1 %v5265_v44, %s5709_s7  ;;  %s5710_s7 = smov 112  }
 0x49d   : > { %v1440_v46 = vpop.permute.xlu1 %1439  ;;  %v1551_v50 = vpop.permute.xlu0 %1550 }
 0x49e   : > { %v1445_v47 = vsel %vm1223_vm2, %v1440_v46, 0 }
 0x49f   : > { %4402 = vmatpush3.bf16.xpose.msra.mxu1 %v1445_v47 }
 0x4a0   : > { %4413 = vmatprep.subr.bf16.mxu1 %v4955_v1 }
 0x4a1   : > { %v1553_v48 = vpop.permute.xlu1 %1552 }
 0x4a2   : > { %v1558_v49 = vsel %vm1223_vm2, %v1553_v48, 0 }
 0x4a6   : > { %4404 = vmatmul.mubr.msk.bf16.vlgmr.msra.gmra.mrb[4].mxu1 %vm1223_vm2, %v5265_v44 }
 0x4a7   : > { %4414 = vmatpush3.bf16.xpose.msra.mxu1 %v1558_v49  ;;  %4415 = vmatprep.mubr.msk.bf16.mxu1 %vm4956_vm1, %v4955_v1 }
 0x4a8   : > { %4425 = vmatprep.subr.bf16.mxu1 %v4955_v1 }
 0x4ae   : > { %4416 = vmatmul.mubr.msk.bf16.vlgmr.msra.gmra.mrb[8].mxu1 %vm1223_vm2, %v1551_v50 }
 0x4af   : > { %4427 = vmatprep.mubr.msk.bf16.mxu1 %vm4956_vm1, %v4955_v1  ;;  %4426 = vmatpush3.bf16.msra.mxu1 %v1668_v26 }
 0x4b0   : > { %4437 = vmatprep.subr.bf16.mxu1 %v4955_v1 }
 0x579   : > { %v1481_v51 = vpop.f32.mrb[4].mxu1 }
 0x57a   : > { %v1487_v52 = vmul.f32 0.35355338, %v1481_v51  ;;  %v4405_v53 = vpop.f32.mrb[5].mxu1 }
 0x57b   : > { %v1484_v54 = vpop.f32.mrb[6].mxu1 }
 0x57c   : > { %v4406_v55 = vpop.f32.mrb[7].mxu1  ;;  %v1488_v56 = vsel %vm1223_vm2, %v1487_v52, -inf }
 0x57d   : > { %1489 = vmax.xlane.f32.xlu1 %v1488_v56 }
 0x581   : > { %v1594_v57 = vpop.f32.mrb[8].mxu1 }
 0x582   : > { %v1600_v58 = vmul.f32 0.35355338, %v1594_v57  ;;  %v4417_v59 = vpop.f32.mrb[9].mxu1 }
 0x583   : > { %v1597_v60 = vpop.f32.mrb[10].mxu1 }
 0x584   : > { %v4418_v61 = vpop.f32.mrb[11].mxu1  ;;  %v1601_v62 = vsel %vm1223_vm2, %v1600_v58, -inf }
 0x585   : > { %1602 = vmax.xlane.f32.xlu0 %v1601_v62 }
 0x59b   : > { %1613 = vrot.lane.b32.xlu0 %v5265_v44, %s5708_s10  ;;  %s5713_s10 = smov 80  }
 0x60a   : > { %v1490_v63 = vpop.xlane.xlu1 %1489 }
 0x60b   : > { %v1491_v0 = vsub.f32 %v1487_v52, %v1490_v63 }
 0x60d   : > { %v1492_v2 = vmul.f32 1.442695, %v1491_v0 }
 0x60f   : > { %4798 = vpow2.f32 %v1492_v2 }
 0x612   : > { %v1603_v3 = vpop.xlane.xlu0 %1602 }
 0x613   : > { %v1604_v4 = vsub.f32 %v1600_v58, %v1603_v3 }
 0x615   : > { %v1605_v5 = vmul.f32 1.442695, %v1604_v4 }
 0x616   : > { %v1614_v16 = vpop.permute.xlu0 %1613 }
 0x617   : > { %4800 = vpow2.f32 %v1605_v5  ;;  %v1619_v19 = vsel %vm1227_vm0, %v1614_v16, 0 }
 0x619   : > { %v4799_v6 = vpop.eup %4798 }
 0x61a   : > { %v1494_v7 = vsel %vm1223_vm2, %v4799_v6, 0.0 }
 0x61b   : > { %1495 = vadd.xlane.f32.xlu1 %v1494_v7  ;;  %v4192_v7 = vld [vmem:[%s5032_s24 + $0x8] sm:$0xf] }
 0x621   : > { %v4801_v8 = vpop.eup %4800 }
 0x622   : > { %v1607_v9 = vsel %vm1223_vm2, %v4801_v8, 0.0 }
 0x623   : > { %1608 = vadd.xlane.f32.xlu1 %v1607_v9 }
 0x634   : > { %1500 = vrot.lane.b32.xlu1 %v5265_v44, %s5712_s18  ;;  %s5716_s18 = smov 104  }
 0x638   : > { %1758 = vrot.lane.b32.xlu1 %v5265_v44, %s5713_s10  ;;  %s5718_s10 = smov 72  }
 0x63c   : > { %1756 = vrot.lane.b32.xlu1 %v5265_v44, %s5710_s7  ;;  %s5714_s7 = smov 48  }
 0x6a8   : > { %v1496_v10 = vpop.xlane.xlu1 %1495 }
 0x6a9   : > { %4802 = vrcp.f32 %v1496_v10 }
 0x6b0   : > { %v1609_v11 = vpop.xlane.xlu1 %1608 }
 0x6b1   : > { %4804 = vrcp.f32 %v1609_v11 }
 0x6b3   : > { %v4803_v12 = vpop.eup %4802 }
 0x6b4   : > { %v1498_v13 = vmul.f32 %v4803_v12, %v4799_v6  ;;  %v1501_v14 = vpop.permute.xlu1 %1500 }
 0x6b5   : > { %v1506_v15 = vsel %vm1227_vm0, %v1501_v14, 0 }
 0x6b6   : > { %4408 = vmatpush3.bf16.msra.mxu0 %v1506_v15  ;;  %v1499_v18 = vpack.c.bf16 %v1498_v13, %v1498_v13 }
 0x6b7   : > { %4419 = vmatprep.subr.bf16.mxu0 %v4955_v1 }
 0x6b8   : > { %v1759_v32 = vpop.permute.xlu1 %1758 }
 0x6b9   : > { %4410 = vmatmul.mubr.msk.bf16.vlgmr.msra.gmra.mrb[8].mxu0 %vm1223_vm2, %v1499_v18  ;;  %v1764_v37 = vsel %vm1223_vm2, %v1759_v32, 0 }
 0x6ba   : > { %4420 = vmatpush3.bf16.msra.mxu0 %v1619_v19  ;;  %4421 = vmatprep.mubr.msk.bf16.mxu0 %vm4956_vm1, %v4955_v1 }
 0x6bb   : > { %v4805_v20 = vpop.eup %4804  ;;  %4431 = vmatprep.subr.bf16.mxu0 %v4955_v1 }
 0x6bc   : > { %v1611_v21 = vmul.f32 %v4805_v20, %v4801_v8  ;;  %v1757_v39 = vpop.permute.xlu1 %1756  ;;  %v1874_v8 = vsel %vm1227_vm0, %v4192_v7, 0 }
 0x6be   : > { %v1612_v22 = vpack.c.bf16 %v1611_v21, %v1611_v21 }
 0x6c1   : > { %4422 = vmatmul.mubr.msk.bf16.vlgmr.msra.gmra.mrb[12].mxu0 %vm1223_vm2, %v1612_v22 }
 0x6c2   : > { %4433 = vmatprep.mubr.msk.bf16.mxu0 %vm4956_vm1, %v4955_v1  ;;  %4432 = vmatpush3.bf16.msra.mxu0 %v1714_v24 }
 0x6c3   : > { %4443 = vmatprep.subr.bf16.mxu0 %v4955_v1 }
 0x78c   : > { %v1542_v27 = vpop.f32.mrb[8].mxu0 }
 0x78d   : > { %v1548_v28 = vpack.c.bf16 %v1542_v27, %v1542_v27  ;;  %v4411_v29 = vpop.f32.mrb[9].mxu0 }
 0x78e   : > { %v1545_v30 = vpop.f32.mrb[10].mxu0 }
 0x78f   : > { %v4412_v31 = vpop.f32.mrb[11].mxu0  ;;  %4434 = vmatmul.mubr.msk.bf16.vlgmr.msra.gmra.mrb[16].mxu0 %vm1223_vm2, %v1548_v28 }
 0x790   : > { %4445 = vmatprep.mubr.msk.bf16.mxu0 %vm4956_vm1, %v4955_v1 }
 0x794   : > { %v1655_v33 = vpop.f32.mrb[12].mxu0 }
 0x795   : > { %v1661_v34 = vpack.c.bf16 %v1655_v33, %v1655_v33  ;;  %v4423_v35 = vpop.f32.mrb[13].mxu0 }
 0x796   : > { %v1658_v36 = vpop.f32.mrb[14].mxu0 }
 0x797   : > { %v4424_v38 = vpop.f32.mrb[15].mxu0  ;;  %4428 = vmatmul.mubr.msk.bf16.vlgmr.msra.gmra.mrb[12].mxu1 %vm1223_vm2, %v1661_v34 }
 0x798   : > { %4438 = vmatpush3.bf16.xpose.msra.mxu1 %v1764_v37  ;;  %4439 = vmatprep.mubr.msk.bf16.mxu1 %vm4956_vm1, %v4955_v1 }
 0x799   : > { %4449 = vmatprep.subr.bf16.mxu1 %v4955_v1 }
 0x79f   : > { %4440 = vmatmul.mubr.msk.bf16.vlgmr.msra.gmra.mrb[16].mxu1 %vm1223_vm2, %v1757_v39 }
 0x7a0   : > { %4451 = vmatprep.mubr.msk.bf16.mxu1 %vm4956_vm1, %v4955_v1  ;;  %4450 = vmatpush3.bf16.msra.mxu1 %v1874_v8  ;;  %v4784_v8 = vld [vmem:[%s5755_s4 + $0x10] sm:$0xff]  }
 0x7a1   : > { %4461 = vmatprep.subr.bf16.mxu1 %v4955_v1 }
 0x862   : > { %v1750_v40 = vpop.f32.mrb[16].mxu0 }
 0x863   : > { %v4435_v41 = vpop.f32.mrb[17].mxu0 }
 0x864   : > { %v1753_v42 = vpop.f32.mrb[18].mxu0 }
 0x865   : > { %v4436_v43 = vpop.f32.mrb[19].mxu0 }
 0x86a   : > { %v1704_v45 = vpop.f32.mrb[12].mxu1 }
 0x86b   : > { %v5323_v46 = vadd.f32 %v1750_v40, %v1704_v45  ;;  %v4429_v47 = vpop.f32.mrb[13].mxu1  ;;  %v4198_v45 = vld [vmem:[%s5037_s30] ss:$0 sm:$0xff] }
 0x86c   : > { %v1707_v48 = vpop.f32.mrb[14].mxu1 }
 0x86d   : > { %v4430_v49 = vpop.f32.mrb[15].mxu1 }
 0x872   : > { %v1800_v50 = vpop.f32.mrb[16].mxu1 }
 0x873   : > { %v1806_v51 = vmul.f32 0.35355338, %v1800_v50  ;;  %v4441_v52 = vpop.f32.mrb[17].mxu1 }
 0x874   : > { %v1803_v53 = vpop.f32.mrb[18].mxu1 }
 0x875   : > { %v4442_v54 = vpop.f32.mrb[19].mxu1  ;;  %v1807_v55 = vsel %vm1223_vm2, %v1806_v51, -inf }
 0x876   : > { %1808 = vmax.xlane.f32.xlu1 %v1807_v55 }
 0x887   : > { %1819 = vrot.lane.b32.xlu1 %v5265_v44, %s5714_s7  ;;  %s5715_s7 = smov 40  }
 0x88b   : > { %1917 = vrot.lane.b32.xlu1 %v5265_v44, %s5716_s18  ;;  %s5765_s18 = sld [smem:[#allocation15_spill]] }
 0x903   : > { %v1809_v56 = vpop.xlane.xlu1 %1808 }
 0x904   : > { %v1810_v57 = vsub.f32 %v1806_v51, %v1809_v56 }
 0x906   : > { %v1811_v58 = vmul.f32 1.442695, %v1810_v57 }
 0x907   : > { %v1820_v59 = vpop.permute.xlu1 %1819 }
 0x908   : > { %4806 = vpow2.f32 %v1811_v58  ;;  %v1825_v60 = vsel %vm1227_vm0, %v1820_v59, 0  ;;  %v4780_v58 = vld [vmem:[%s5052_s20] sm:$0xff]   ;;  %v4781_v59 = vld [vmem:[%s5052_s20 + $0x8] sm:$0xff]  }
 0x909   : > { %4444 = vmatpush3.bf16.msra.mxu0 %v1825_v60  ;;  %v4783_v60 = vld [vmem:[%s5755_s4 + $0x8] sm:$0xff]  }
 0x90a   : > { %4455 = vmatprep.subr.bf16.mxu0 %v4955_v1 }
 0x90b   : > { %v1918_v6 = vpop.permute.xlu1 %1917 }
 0x912   : > { %v4807_v61 = vpop.eup %4806 }
 0x913   : > { %v1813_v62 = vsel %vm1223_vm2, %v4807_v61, 0.0 }
 0x914   : > { %1814 = vadd.xlane.f32.xlu0 %v1813_v62 }
 0x92a   : > { %1919 = vrot.lane.b32.xlu0 %v5265_v44, %s5718_s10  ;;  %s5766_s10 = sld [smem:[#allocation17_spill]] }
 0x9a1   : > { %v1815_v63 = vpop.xlane.xlu0 %1814 }
 0x9a2   : > { %4808 = vrcp.f32 %v1815_v63 }
 0x9a5   : > { %v1920_v3 = vpop.permute.xlu0 %1919 }
 0x9a6   : > { %v1925_v5 = vsel %vm1223_vm2, %v1920_v3, 0 }
 0x9ac   : > { %v4809_v0 = vpop.eup %4808 }
 0x9ad   : > { %v1817_v2 = vmul.f32 %v4809_v0, %v4807_v61 }
 0x9af   : > { %v1818_v4 = vpack.c.bf16 %v1817_v2, %v1817_v2  ;;  %v4199_v2 = vld [vmem:[%s5763_s6] ss:$0 sm:$0xff]  ;;  %s5781_s6 = smov 48  }
 0x9b1   : > { %4446 = vmatmul.mubr.msk.bf16.vlgmr.msra.gmra.mrb[20].mxu0 %vm1223_vm2, %v1818_v4 }
 0x9b2   : > { %4456 = vmatpush3.bf16.xpose.msra.mxu0 %v1925_v5  ;;  %4457 = vmatprep.mubr.msk.bf16.mxu0 %vm4956_vm1, %v4955_v1 }
 0x9b3   : > { %4467 = vmatprep.subr.bf16.mxu0 %v4955_v1 }
 0x9b9   : > { %4458 = vmatmul.mubr.msk.bf16.vlgmr.msra.gmra.mrb[24].mxu0 %vm1223_vm2, %v1918_v6 }
 0x9ba   : > { %4469 = vmatprep.mubr.msk.bf16.mxu0 %vm4956_vm1, %v4955_v1 }
 0xa84   : > { %v1861_v9 = vpop.f32.mrb[20].mxu0 }
 0xa85   : > { %v1867_v10 = vpack.c.bf16 %v1861_v9, %v1861_v9  ;;  %v4447_v11 = vpop.f32.mrb[21].mxu0  ;;  %v4785_v9 = vld [vmem:[%s5755_s4 + $0x18] sm:$0xff]  }
 0xa86   : > { %v1864_v12 = vpop.f32.mrb[22].mxu0 }
 0xa87   : > { %v4448_v13 = vpop.f32.mrb[23].mxu0  ;;  %4452 = vmatmul.mubr.msk.bf16.vlgmr.msra.gmra.mrb[20].mxu1 %vm1223_vm2, %v1867_v10  ;;  %v4201_v10 = vld [vmem:[%s5765_s18] ss:$0 sm:$0xff]  ;;  %s5768_s18 = sld [smem:[#allocation18_spill]] }
 0xa88   : > { %4463 = vmatprep.mubr.msk.bf16.mxu1 %vm4956_vm1, %v4955_v1 }
 0xa8c   : > { %v1961_v14 = vpop.f32.mrb[24].mxu0 }
 0xa8d   : > { %v1967_v15 = vmul.f32 0.35355338, %v1961_v14  ;;  %v4459_v16 = vpop.f32.mrb[25].mxu0 }
 0xa8e   : > { %v1964_v18 = vpop.f32.mrb[26].mxu0 }
 0xa8f   : > { %v4460_v19 = vpop.f32.mrb[27].mxu0  ;;  %v1968_v20 = vsel %vm1223_vm2, %v1967_v15, -inf }
 0xa90   : > { %1969 = vmax.xlane.f32.xlu1 %v1968_v20  ;;  %v4205_v19 = vld [vmem:[%s5766_s10] ss:$0 sm:$0xff]  ;;  %s5769_s10 = sld [smem:[#allocation19_spill]] }
 0xb1d   : > { %v1970_v21 = vpop.xlane.xlu1 %1969 }
 0xb1e   : > { %v1971_v22 = vsub.f32 %v1967_v15, %v1970_v21 }
 0xb20   : > { %v1972_v23 = vmul.f32 1.442695, %v1971_v22 }
 0xb22   : > { %4810 = vpow2.f32 %v1972_v23 }
 0xb2c   : > { %v4811_v24 = vpop.eup %4810 }
 0xb2d   : > { %v1974_v25 = vsel %vm1223_vm2, %v4811_v24, 0.0 }
 0xb2e   : > { %1975 = vadd.xlane.f32.xlu0 %v1974_v25 }
 0xb44   : > { %1980 = vrot.lane.b32.xlu0 %v5265_v44, %s5715_s7  ;;  %v4196_v44 = vld [vmem:[%s5032_s24 + $0xc] sm:$0xf]  ;;  %s5764_s7 = sld [smem:[#allocation14_spill]] }
 0xb45   : > { %v2035_v37 = vsel %vm1227_vm0, %v4196_v44, 0 }
 0xb46   : > { %4468 = vmatpush3.bf16.msra.mxu0 %v2035_v37  ;;  %v4211_v37 = vld [vmem:[%s5768_s18] ss:$0 sm:$0xff]  ;;  %s5772_s18 = smov 96  }
 0xb47   : > { %4481 = vmatprep.subr.bf16.mxu0 %v4955_v1 }
 0xb4a   : > { %v4200_v4 = vld [vmem:[%s5764_s7] ss:$0 sm:$0xff]  ;;  %s5767_s7 = sld [smem:[#allocation20_spill]] }
 0xb5a   : > { %v1910_v26 = vpop.f32.mrb[20].mxu1 }
 0xb5b   : > { %v1916_v27 = vadd.f32 %v1910_v26, %v5323_v46  ;;  %v4453_v28 = vpop.f32.mrb[21].mxu1 }
 0xb5c   : > { %v1913_v29 = vpop.f32.mrb[22].mxu1 }
 0xb5d   : > { %v4454_v30 = vpop.f32.mrb[23].mxu1 }
 0xbbb   : > { %v1976_v31 = vpop.xlane.xlu0 %1975 }
 0xbbc   : > { %4812 = vrcp.f32 %v1976_v31 }
 0xbbf   : > { %v1981_v32 = vpop.permute.xlu0 %1980 }
 0xbc0   : > { %v1986_v33 = vsel %vm1227_vm0, %v1981_v32, 0  ;;  %v4786_v32 = vld [vmem:[%s5767_s7] sm:$0xff]  }
 0xbc1   : > { %4462 = vmatpush3.bf16.msra.mxu1 %v1986_v33  ;;  %v4787_v33 = vld [vmem:[%s5767_s7 + $0x8] sm:$0xff]   ;;  %s5787_s7 = sld [smem:[#allocation25_spill]] }
 0xbc2   : > { %4473 = vmatprep.subr.bf16.mxu1 %v4955_v1 }
 0xbc6   : > { %v4813_v34 = vpop.eup %4812 }
 0xbc7   : > { %v1978_v35 = vmul.f32 %v4813_v34, %v4811_v24 }
 0xbc9   : > { %v1979_v36 = vpack.c.bf16 %v1978_v35, %v1978_v35 }
 0xbcb   : > { %4464 = vmatmul.mubr.msk.bf16.vlgmr.msra.gmra.mrb[24].mxu1 %vm1223_vm2, %v1979_v36 }
 0xbcc   : > { %4477 = vmatprep.mubr.msk.bf16.mxu1 %vm4956_vm1, %v4955_v1  ;;  %4474 = vmatpush3.bf16.msra.mxu1 %v4780_v58 }
 0xbcd   : > { %4475 = vmatprep.subr.bf16.mxu1 %v4955_v1 }
 0xbd0   : > { %4476 = vmatpush3.bf16.msra.mxu1 %v4781_v59 }
 0xbd1   : > { %4493 = vmatprep.subr.bf16.mxu1 %v4955_v1 }
 0xc9e   : > { %v2022_v38 = vpop.f32.mrb[24].mxu1 }
 0xc9f   : > { %v2028_v39 = vpack.c.bf16 %v2022_v38, %v2022_v38  ;;  %v4465_v40 = vpop.f32.mrb[25].mxu1 }
 0xca0   : > { %v2025_v41 = vpop.f32.mrb[26].mxu1 }
 0xca1   : > { %v4466_v42 = vpop.f32.mrb[27].mxu1  ;;  %4470 = vmatmul.mubr.msk.bf16.vlgmr.msra.gmra.mrb[28].mxu0 %vm1223_vm2, %v2028_v39  ;;  %v4212_v39 = vld [vmem:[%s5769_s10] ss:$0 sm:$0xff]  ;;  %s5773_s10 = smov 120  }
 0xca2   : > { %4489 = vmatprep.mubr.msk.bf16.mxu0 %vm4956_vm1, %v4955_v1 }
 0xd74   : > { %v2071_v43 = vpop.f32.mrb[28].mxu0 }
 0xd75   : > { %v2077_v46 = vadd.f32 %v2071_v43, %v1916_v27  ;;  %v4471_v47 = vpop.f32.mrb[29].mxu0  ;;  %v4213_v43 = vld [vmem:[%s5770_s3] ss:$0 sm:$0xff]  ;;  %s5774_s3 = smov 56  }
 0xd76   : > { %v2074_v48 = vpop.f32.mrb[30].mxu0 }
 0xd77   : > { %v2085_v49 = vadd.f32 %v4198_v45, %v2077_v46  ;;  %v4472_v50 = vpop.f32.mrb[31].mxu0 }
 0xd79   : > { %v2086_v51 = vadd.f32 %v2085_v49, %v5249_v17  ;;  %v4782_v17 = vld [vmem:[%s5755_s4] sm:$0xff]   ;;  %s5771_s4 = smov 88  }
 0xd7a   : > { %4482 = vmatpush3.bf16.msra.mxu0 %v4782_v17 }
 0xd7b   : > { %v2087_v52 = vsel %vm1296_vm3, %v2086_v51, 0.0  ;;  %4483 = vmatprep.subr.bf16.mxu0 %v4955_v1 }
 0xd7c   : > { %2088 = vadd.xlane.f32.xlu1 %v2087_v52 }
 0xd7e   : > { %4484 = vmatpush3.bf16.msra.mxu0 %v4783_v60 }
 0xd7f   : > { %4485 = vmatprep.subr.bf16.mxu0 %v4955_v1 }
 0xd82   : > { %4486 = vmatpush3.bf16.msra.mxu0 %v4784_v8 }
 0xd83   : > { %4487 = vmatprep.subr.bf16.mxu0 %v4955_v1 }
 0xd86   : > { %4488 = vmatpush3.bf16.msra.mxu0 %v4785_v9 }
 0xd87   : > { %4507 = vmatprep.subr.bf16.mxu0 %v4955_v1 }
 0xe09   : > { %v2089_v53 = vpop.xlane.xlu1 %2088 }
 0xe0a   : > { %v2090_v54 = vmul.f32 0.03125, %v2089_v53 }
 0xe0c   : > { %v2091_v55 = vsub.f32 %v2086_v51, %v2090_v54 }
 0xe0e   : > { %v2092_v56 = vmul.f32 %v2091_v55, %v2091_v55 }
 0xe10   : > { %v2093_v57 = vsel %vm1296_vm3, %v2092_v56, 0.0 }
 0xe11   : > { %2094 = vadd.xlane.f32.xlu1 %v2093_v57 }
 0xe9e   : > { %v2095_v61 = vpop.xlane.xlu1 %2094 }
 0xe9f   : > { %v2096_v62 = vmul.f32 0.03125, %v2095_v61 }
 0xea1   : > { %v2097_v63 = vadd.f32 1e-05, %v2096_v62 }
 0xea3   : > { %4814 = vrsqrt.f32 %v2097_v63 }
 0xead   : > { %v4815_v0 = vpop.eup %4814 }
 0xeae   : > { %v2099_v3 = vmul.f32 %v4815_v0, %v2091_v55 }
 0xeb0   : > { %v2107_v5 = vmul.f32 %v4199_v2, %v2099_v3 }
 0xeb2   : > { %v2115_v6 = vadd.f32 %v4200_v4, %v2107_v5 }
 0xeb4   : > { %v2116_v7 = vpack.c.bf16 %v2115_v6, %v2115_v6 }
 0xeb6   : > { %4478 = vmatmul.mubr.msk.bf16.vlgmr.msra.gmra.mrb[28].mxu1 %vm1296_vm3, %v2116_v7 }
 0xeb7   : > { %4497 = vmatprep.mubr.msk.bf16.mxu1 %vm4956_vm1, %v4955_v1  ;;  %4494 = vmatpush3.bf16.msra.mxu1 %v4786_v32 }
 0xeb8   : > { %4495 = vmatprep.subr.bf16.mxu1 %v4955_v1 }
 0xebb   : > { %4496 = vmatpush3.bf16.msra.mxu1 %v4787_v33 }
 0xebc   : > { %4501 = vmatprep.subr.bf16.mxu1 %v4955_v1 }
 0xf89   : > { %v2177_v11 = vpop.f32.mrb[28].mxu1 }
 0xf8a   : > { %v2178_v12 = vadd.f32 %v4201_v10, %v2177_v11  ;;  %v4479_v13 = vpop.f32.mrb[29].mxu1 }
 0xf8b   : > { %v2180_v14 = vpop.f32.mrb[30].mxu1 }
 0xf8c   : > { %v2183_v15 = vmax.f32 %v2178_v12, 0.0  ;;  %v4480_v16 = vpop.f32.mrb[31].mxu1 }
 0xf8e   : > { %v2184_v18 = vpack.c.bf16 %v2183_v15, %v2183_v15 }
 0xf90   : > { %4490 = vmatmul.mubr.msk.bf16.vlgmr.msra.gmra.mrb[32].mxu0 %vm2224_vm4, %v2184_v18 }
 0xf91   : > { %4509 = vmatprep.mubr.msk.bf16.mxu0 %vm4956_vm1, %v4955_v1 }
0x1063   : > { %v2262_v20 = vpop.f32.mrb[32].mxu0 }
0x1064   : > { %v2263_v21 = vadd.f32 %v4205_v19, %v2262_v20  ;;  %v4491_v22 = vpop.f32.mrb[33].mxu0 }
0x1065   : > { %v2265_v23 = vpop.f32.mrb[34].mxu0 }
0x1066   : > { %v5391_v24 = vadd.f32 %v2263_v21, %v2086_v51  ;;  %v4492_v25 = vpop.f32.mrb[35].mxu0 }
0x1068   : > { %v2269_v26 = vsel %vm1296_vm3, %v5391_v24, 0.0 }
0x1069   : > { %2270 = vadd.xlane.f32.xlu1 %v2269_v26 }
0x10f6   : > { %v2271_v27 = vpop.xlane.xlu1 %2270 }
0x10f7   : > { %v2272_v28 = vmul.f32 0.03125, %v2271_v27 }
0x10f9   : > { %v2273_v29 = vsub.f32 %v5391_v24, %v2272_v28 }
0x10fb   : > { %v2274_v30 = vmul.f32 %v2273_v29, %v2273_v29 }
0x10fd   : > { %v2275_v31 = vsel %vm1296_vm3, %v2274_v30, 0.0 }
0x10fe   : > { %2276 = vadd.xlane.f32.xlu1 %v2275_v31 }
0x118b   : > { %v2277_v34 = vpop.xlane.xlu1 %2276 }
0x118c   : > { %v2278_v35 = vmul.f32 0.03125, %v2277_v34 }
0x118e   : > { %v2279_v36 = vadd.f32 1e-05, %v2278_v35 }
0x1190   : > { %4816 = vrsqrt.f32 %v2279_v36 }
0x119a   : > { %v4817_v44 = vpop.eup %4816 }
0x119b   : > { %v2281_v38 = vmul.f32 %v4817_v44, %v2273_v29 }
0x119d   : > { %v2289_v40 = vmul.f32 %v4211_v37, %v2281_v38 }
0x119f   : > { %v2297_v41 = vadd.f32 %v4212_v39, %v2289_v40 }
0x11a1   : > { %v2298_v42 = vpack.c.bf16 %v2297_v41, %v2297_v41 }
0x11a3   : > { %4498 = vmatmul.mubr.msk.bf16.vlgmr.msra.gmra.mrb[32].mxu1 %vm1296_vm3, %v2298_v42 }
0x11a4   : > { %4503 = vmatprep.mubr.msk.bf16.mxu1 %vm4956_vm1, %v4955_v1 }
0x1276   : > { %v2359_v45 = vpop.f32.mrb[32].mxu1 }
0x1277   : > { %v2360_v46 = vadd.f32 %v4213_v43, %v2359_v45  ;;  %v4499_v47 = vpop.f32.mrb[33].mxu1 }
0x1278   : > { %v2362_v48 = vpop.f32.mrb[34].mxu1 }
0x1279   : > { %v5407_v49 = vpack.c.bf16 %v2360_v46, %v2360_v46  ;;  %v4500_v50 = vpop.f32.mrb[35].mxu1 }
0x127b   : > { %2480 = vrot.lane.b32.xlu0 %v5407_v49, %s5771_s4  ;;  %2367 = vrot.lane.b32.xlu1 %v5407_v49, %s5772_s18  ;;  %s5775_s4 = smov 80   ;;  %s5776_s18 = smov 64  }
0x127f   : > { %2478 = vrot.lane.b32.xlu0 %v5407_v49, %s5773_s10 }
0x12ed   : > { %v2368_v51 = vpop.permute.xlu1 %2367  ;;  %v2481_v53 = vpop.permute.xlu0 %2480 }
0x12ee   : > { %v2373_v52 = vsel %vm1223_vm2, %v2368_v51, 0  ;;  %v2486_v54 = vsel %vm1223_vm2, %v2481_v53, 0 }
0x12ef   : > { %4502 = vmatpush3.bf16.xpose.msra.mxu1 %v2373_v52 }
0x12f0   : > { %4513 = vmatprep.subr.bf16.mxu1 %v4955_v1 }
0x12f1   : > { %v2479_v55 = vpop.permute.xlu0 %2478 }
0x12f6   : > { %4504 = vmatmul.mubr.msk.bf16.vlgmr.msra.gmra.mrb[36].mxu1 %vm1223_vm2, %v5407_v49 }
0x12f7   : > { %4514 = vmatpush3.bf16.xpose.msra.mxu1 %v2486_v54  ;;  %4515 = vmatprep.mubr.msk.bf16.mxu1 %vm4956_vm1, %v4955_v1 }
0x12f8   : > { %4525 = vmatprep.subr.bf16.mxu1 %v4955_v1 }
0x12fe   : > { %4516 = vmatmul.mubr.msk.bf16.vlgmr.msra.gmra.mrb[40].mxu1 %vm1223_vm2, %v2479_v55 }
0x12ff   : > { %4527 = vmatprep.mubr.msk.bf16.mxu1 %vm4956_vm1, %v4955_v1 }
0x13c9   : > { %v2409_v56 = vpop.f32.mrb[36].mxu1 }
0x13ca   : > { %v2415_v57 = vmul.f32 0.35355338, %v2409_v56  ;;  %v4505_v58 = vpop.f32.mrb[37].mxu1 }
0x13cb   : > { %v2412_v59 = vpop.f32.mrb[38].mxu1 }
0x13cc   : > { %v4506_v17 = vpop.f32.mrb[39].mxu1  ;;  %v2416_v60 = vsel %vm1223_vm2, %v2415_v57, -inf }
0x13cd   : > { %2417 = vmax.xlane.f32.xlu0 %v2416_v60 }
0x13d1   : > { %v2522_v61 = vpop.f32.mrb[40].mxu1 }
0x13d2   : > { %v2528_v62 = vmul.f32 0.35355338, %v2522_v61  ;;  %v4517_v63 = vpop.f32.mrb[41].mxu1 }
0x13d3   : > { %v2525_v0 = vpop.f32.mrb[42].mxu1 }
0x13d4   : > { %v4518_v2 = vpop.f32.mrb[43].mxu1  ;;  %v2529_v3 = vsel %vm1223_vm2, %v2528_v62, -inf }
0x13d5   : > { %2530 = vmax.xlane.f32.xlu1 %v2529_v3 }
0x13e6   : > { %2541 = vrot.lane.b32.xlu1 %v5407_v49, %s5774_s3  ;;  %s5777_s3 = smov 112  }
0x13ea   : > { %2686 = vrot.lane.b32.xlu1 %v5407_v49, %s5775_s4  ;;  %s5778_s4 = sld [smem:[#allocation22_spill]] }
0x13f0   : > { %v2477_v28 = vld [vmem:[%s5778_s4] sm:$0xf]  ;;  %v4221_v30 = vld [vmem:[%s5778_s4 + $0x4] sm:$0xf] }
0x13f1   : > { %v2642_v29 = vsel %vm1227_vm0, %v2477_v28, 0  ;;  %v2596_v31 = vsel %vm1227_vm0, %v4221_v30, 0 }
0x13f2   : > { %4526 = vmatpush3.bf16.msra.mxu1 %v2596_v31 }
0x13f3   : > { %4537 = vmatprep.subr.bf16.mxu1 %v4955_v1 }
0x145a   : > { %v2418_v4 = vpop.xlane.xlu0 %2417 }
0x145b   : > { %v2419_v5 = vsub.f32 %v2415_v57, %v2418_v4 }
0x145d   : > { %v2420_v6 = vmul.f32 1.442695, %v2419_v5 }
0x145f   : > { %4818 = vpow2.f32 %v2420_v6 }
0x1462   : > { %v2531_v7 = vpop.xlane.xlu1 %2530 }
0x1463   : > { %v2532_v8 = vsub.f32 %v2528_v62, %v2531_v7 }
0x1465   : > { %v2533_v9 = vmul.f32 1.442695, %v2532_v8 }
0x1466   : > { %v2542_v21 = vpop.permute.xlu1 %2541 }
0x1467   : > { %4820 = vpow2.f32 %v2533_v9  ;;  %v2547_v23 = vsel %vm1227_vm0, %v2542_v21, 0 }
0x1469   : > { %v4819_v10 = vpop.eup %4818 }
0x146a   : > { %v2422_v11 = vsel %vm1223_vm2, %v4819_v10, 0.0  ;;  %v2687_v44 = vpop.permute.xlu1 %2686 }
0x146b   : > { %2423 = vadd.xlane.f32.xlu0 %v2422_v11  ;;  %v2692_v41 = vsel %vm1223_vm2, %v2687_v44, 0  ;;  %v4226_v11 = vld [vmem:[%s5778_s4 + $0x8] sm:$0xf] }
0x1471   : > { %v4821_v12 = vpop.eup %4820 }
0x1472   : > { %v2535_v13 = vsel %vm1223_vm2, %v4821_v12, 0.0 }
0x1473   : > { %2536 = vadd.xlane.f32.xlu0 %v2535_v13 }
0x1489   : > { %2428 = vrot.lane.b32.xlu0 %v5407_v49, %s5776_s18  ;;  %s5779_s18 = smov 72  }
0x148d   : > { %2684 = vrot.lane.b32.xlu0 %v5407_v49, %s5777_s3 }
0x14f8   : > { %v2424_v14 = vpop.xlane.xlu0 %2423 }
0x14f9   : > { %4822 = vrcp.f32 %v2424_v14 }
0x1500   : > { %v2537_v15 = vpop.xlane.xlu0 %2536 }
0x1501   : > { %4824 = vrcp.f32 %v2537_v15 }
0x1503   : > { %v4823_v16 = vpop.eup %4822 }
0x1504   : > { %v2426_v18 = vmul.f32 %v4823_v16, %v4819_v10  ;;  %v2429_v19 = vpop.permute.xlu0 %2428 }
0x1505   : > { %v2434_v20 = vsel %vm1227_vm0, %v2429_v19, 0 }
0x1506   : > { %4508 = vmatpush3.bf16.msra.mxu0 %v2434_v20  ;;  %v2427_v22 = vpack.c.bf16 %v2426_v18, %v2426_v18 }
0x1507   : > { %4519 = vmatprep.subr.bf16.mxu0 %v4955_v1 }
0x1508   : > { %v2685_v43 = vpop.permute.xlu0 %2684 }
0x1509   : > { %4510 = vmatmul.mubr.msk.bf16.vlgmr.msra.gmra.mrb[36].mxu0 %vm1223_vm2, %v2427_v22 }
0x150a   : > { %4520 = vmatpush3.bf16.msra.mxu0 %v2547_v23  ;;  %4521 = vmatprep.mubr.msk.bf16.mxu0 %vm4956_vm1, %v4955_v1 }
0x150b   : > { %v4825_v25 = vpop.eup %4824  ;;  %4531 = vmatprep.subr.bf16.mxu0 %v4955_v1 }
0x150c   : > { %v2539_v26 = vmul.f32 %v4825_v25, %v4821_v12  ;;  %v2802_v12 = vsel %vm1227_vm0, %v4226_v11, 0 }
0x150e   : > { %v2540_v27 = vpack.c.bf16 %v2539_v26, %v2539_v26 }
0x1511   : > { %4522 = vmatmul.mubr.msk.bf16.vlgmr.msra.gmra.mrb[40].mxu0 %vm1223_vm2, %v2540_v27 }
0x1512   : > { %4533 = vmatprep.mubr.msk.bf16.mxu0 %vm4956_vm1, %v4955_v1  ;;  %4532 = vmatpush3.bf16.msra.mxu0 %v2642_v29 }
0x1513   : > { %4543 = vmatprep.subr.bf16.mxu0 %v4955_v1 }
0x15dc   : > { %v2470_v32 = vpop.f32.mrb[36].mxu0 }
0x15dd   : > { %v2476_v33 = vpack.c.bf16 %v2470_v32, %v2470_v32  ;;  %v4511_v34 = vpop.f32.mrb[37].mxu0 }
0x15de   : > { %v2473_v35 = vpop.f32.mrb[38].mxu0 }
0x15df   : > { %v4512_v36 = vpop.f32.mrb[39].mxu0  ;;  %4534 = vmatmul.mubr.msk.bf16.vlgmr.msra.gmra.mrb[44].mxu0 %vm1223_vm2, %v2476_v33 }
0x15e0   : > { %4545 = vmatprep.mubr.msk.bf16.mxu0 %vm4956_vm1, %v4955_v1 }
0x15e4   : > { %v2583_v37 = vpop.f32.mrb[40].mxu0 }
0x15e5   : > { %v2589_v38 = vpack.c.bf16 %v2583_v37, %v2583_v37  ;;  %v4523_v39 = vpop.f32.mrb[41].mxu0 }
0x15e6   : > { %v2586_v40 = vpop.f32.mrb[42].mxu0 }
0x15e7   : > { %v4524_v42 = vpop.f32.mrb[43].mxu0  ;;  %4528 = vmatmul.mubr.msk.bf16.vlgmr.msra.gmra.mrb[44].mxu1 %vm1223_vm2, %v2589_v38  ;;  %v4230_v40 = vld [vmem:[%s5778_s4 + $0xc] sm:$0xf]  ;;  %s5785_s4 = sld [smem:[#allocation28_spill]] }
0x15e8   : > { %4538 = vmatpush3.bf16.xpose.msra.mxu1 %v2692_v41  ;;  %4539 = vmatprep.mubr.msk.bf16.mxu1 %vm4956_vm1, %v4955_v1  ;;  %v2963_v41 = vsel %vm1227_vm0, %v4230_v40, 0 }
0x15e9   : > { %4549 = vmatprep.subr.bf16.mxu1 %v4955_v1 }
0x15ef   : > { %4540 = vmatmul.mubr.msk.bf16.vlgmr.msra.gmra.mrb[48].mxu1 %vm1223_vm2, %v2685_v43 }
0x15f0   : > { %4551 = vmatprep.mubr.msk.bf16.mxu1 %vm4956_vm1, %v4955_v1  ;;  %4550 = vmatpush3.bf16.msra.mxu1 %v2802_v12 }
0x15f1   : > { %4561 = vmatprep.subr.bf16.mxu1 %v4955_v1 }
0x16b2   : > { %v2678_v45 = vpop.f32.mrb[44].mxu0 }
0x16b3   : > { %v4535_v46 = vpop.f32.mrb[45].mxu0 }
0x16b4   : > { %v2681_v47 = vpop.f32.mrb[46].mxu0 }
0x16b5   : > { %v4536_v48 = vpop.f32.mrb[47].mxu0 }
0x16ba   : > { %v2632_v50 = vpop.f32.mrb[44].mxu1 }
0x16bb   : > { %v5465_v51 = vadd.f32 %v2678_v45, %v2632_v50  ;;  %v4529_v52 = vpop.f32.mrb[45].mxu1 }
0x16bc   : > { %v2635_v53 = vpop.f32.mrb[46].mxu1 }
0x16bd   : > { %v4530_v54 = vpop.f32.mrb[47].mxu1 }
0x16c2   : > { %v2728_v55 = vpop.f32.mrb[48].mxu1 }
0x16c3   : > { %v2734_v56 = vmul.f32 0.35355338, %v2728_v55  ;;  %v4541_v57 = vpop.f32.mrb[49].mxu1 }
0x16c4   : > { %v2731_v58 = vpop.f32.mrb[50].mxu1 }
0x16c5   : > { %v4542_v59 = vpop.f32.mrb[51].mxu1  ;;  %v2735_v17 = vsel %vm1223_vm2, %v2734_v56, -inf }
0x16c6   : > { %2736 = vmax.xlane.f32.xlu1 %v2735_v17 }
0x16d7   : > { %2847 = vrot.lane.b32.xlu1 %v5407_v49, %s5779_s18  ;;  %s5783_s18 = sld [smem:[#allocation23_spill]] }
0x16db   : > { %2845 = vrot.lane.b32.xlu1 %v5407_v49, %s5780_s5 }
0x16dd   : > { %v4232_v50 = vld [vmem:[%s5783_s18] ss:$0 sm:$0xff]  ;;  %s5786_s18 = sld [smem:[#allocation24_spill]] }
0x1753   : > { %v2737_v60 = vpop.xlane.xlu1 %2736 }
0x1754   : > { %v2738_v61 = vsub.f32 %v2734_v56, %v2737_v60 }
0x1756   : > { %v2739_v62 = vmul.f32 1.442695, %v2738_v61 }
0x1757   : > { %v2848_v7 = vpop.permute.xlu1 %2847 }
0x1758   : > { %4826 = vpow2.f32 %v2739_v62  ;;  %v2853_v9 = vsel %vm1223_vm2, %v2848_v7, 0 }
0x175b   : > { %v2846_v10 = vpop.permute.xlu1 %2845 }
0x1762   : > { %v4827_v63 = vpop.eup %4826 }
0x1763   : > { %v2741_v0 = vsel %vm1223_vm2, %v4827_v63, 0.0 }
0x1764   : > { %2742 = vadd.xlane.f32.xlu0 %v2741_v0  ;;  %v4791_v0 = vld [vmem:[%s5785_s4 + $0x8] sm:$0xff]  }
0x177a   : > { %2747 = vrot.lane.b32.xlu0 %v5407_v49, %s5781_s6  ;;  %s5782_s6 = smov 40  }
0x17f1   : > { %v2743_v2 = vpop.xlane.xlu0 %2742 }
0x17f2   : > { %4828 = vrcp.f32 %v2743_v2 }
0x17f5   : > { %v2748_v3 = vpop.permute.xlu0 %2747 }
0x17f6   : > { %v2753_v4 = vsel %vm1227_vm0, %v2748_v3, 0 }
0x17f7   : > { %4544 = vmatpush3.bf16.msra.mxu0 %v2753_v4 }
0x17f8   : > { %4555 = vmatprep.subr.bf16.mxu0 %v4955_v1 }
0x17fc   : > { %v4829_v5 = vpop.eup %4828 }
0x17fd   : > { %v2745_v6 = vmul.f32 %v4829_v5, %v4827_v63 }
0x17ff   : > { %v2746_v8 = vpack.c.bf16 %v2745_v6, %v2745_v6  ;;  %v4233_v6 = vld [vmem:[%s5786_s18] ss:$0 sm:$0xff] }
0x1801   : > { %4546 = vmatmul.mubr.msk.bf16.vlgmr.msra.gmra.mrb[48].mxu0 %vm1223_vm2, %v2746_v8  ;;  %v4234_v8 = vld [vmem:[%s5787_s7] ss:$0 sm:$0xff]  ;;  %s1207_s7 = scalar_lea.vmem %s5791_s17, %s5233_s1  ;;  %s5794_s17 = sld [smem:[#allocation33_spill]] }
0x1802   : > { %4556 = vmatpush3.bf16.xpose.msra.mxu0 %v2853_v9  ;;  %4557 = vmatprep.mubr.msk.bf16.mxu0 %vm4956_vm1, %v4955_v1  ;;  %s5796_s1 = sld [smem:[#allocation29_spill]] }
0x1803   : > { %4567 = vmatprep.subr.bf16.mxu0 %v4955_v1 }
0x1809   : > { %4558 = vmatmul.mubr.msk.bf16.vlgmr.msra.gmra.mrb[52].mxu0 %vm1223_vm2, %v2846_v10  ;;  %v3199_v10 = vld [vmem:[%s5788_s8] sm:$0x3]  ;;  %s5792_s8 = sld [smem:[#allocation27_spill]] }
0x180a   : > { %4569 = vmatprep.mubr.msk.bf16.mxu0 %vm4956_vm1, %v4955_v1  ;;  %4568 = vmatpush3.bf16.msra.mxu0 %v2963_v41 }
0x180b   : > { %4581 = vmatprep.subr.bf16.mxu0 %v4955_v1 }
0x18d4   : > { %v2789_v13 = vpop.f32.mrb[48].mxu0 }
0x18d5   : > { %v2795_v14 = vpack.c.bf16 %v2789_v13, %v2789_v13  ;;  %v4547_v15 = vpop.f32.mrb[49].mxu0  ;;  %v3213_v13 = vsel %vm3211_vm5, %v3199_v10, 0 }
0x18d6   : > { %v2792_v16 = vpop.f32.mrb[50].mxu0 }
0x18d7   : > { %v4548_v18 = vpop.f32.mrb[51].mxu0  ;;  %4552 = vmatmul.mubr.msk.bf16.vlgmr.msra.gmra.mrb[52].mxu1 %vm1223_vm2, %v2795_v14  ;;  %v3196_v14 = vld [vmem:[%s1211_s19] sm:$0xff]  ;;  %s5795_s19 = sld [smem:[#allocation34_spill]] }
0x18d8   : > { %4563 = vmatprep.mubr.msk.bf16.mxu1 %vm4956_vm1, %v4955_v1  ;;  %v3198_v16 = vpack.c.bf16 %v3196_v14, %v3196_v14 }
0x18dc   : > { %v2889_v19 = vpop.f32.mrb[52].mxu0 }
0x18dd   : > { %v2895_v20 = vmul.f32 0.35355338, %v2889_v19  ;;  %v4559_v21 = vpop.f32.mrb[53].mxu0  ;;  %v3197_v19 = vld [vmem:[%s1207_s7] sm:$0xff] }
0x18de   : > { %v2892_v22 = vpop.f32.mrb[54].mxu0  ;;  %v4792_v21 = vld [vmem:[%s5785_s4 + $0x10] sm:$0xff]  }
0x18df   : > { %v4560_v23 = vpop.f32.mrb[55].mxu0  ;;  %v2896_v25 = vsel %vm1223_vm2, %v2895_v20, -inf  ;;  %v4793_v22 = vld [vmem:[%s5785_s4 + $0x18] sm:$0xff]  }
0x18e0   : > { %2897 = vmax.xlane.f32.xlu0 %v2896_v25  ;;  %v4235_v23 = vld [vmem:[%s5792_s8] ss:$0 sm:$0xff] }
0x18f6   : > { %2908 = vrot.lane.b32.xlu0 %v5407_v49, %s5782_s6  ;;  %s5784_s6 = sld [smem:[#allocation26_spill]] }
0x18fc   : > { %v4788_v62 = vld [vmem:[%s5784_s6] sm:$0xff]   ;;  %v4789_v63 = vld [vmem:[%s5784_s6 + $0x8] sm:$0xff]   ;;  %s5790_s6 = sld [smem:[#allocation32_spill]] }
0x1902   : > { %v3256_v15 = vld [vmem:[%s5790_s6] sm:$0x3] }
0x1903   : > { %v3268_v18 = vsel %vm3211_vm5, %v3256_v15, 0 }
0x196d   : > { %v2898_v26 = vpop.xlane.xlu0 %2897 }
0x196e   : > { %v2899_v27 = vsub.f32 %v2895_v20, %v2898_v26  ;;  %v3255_v20 = vpack.c.bf16 %v3197_v19, %v3197_v19 }
0x1970   : > { %v2900_v28 = vmul.f32 1.442695, %v2899_v27 }
0x1971   : > { %v2909_v29 = vpop.permute.xlu0 %2908 }
0x1972   : > { %4830 = vpow2.f32 %v2900_v28  ;;  %v2914_v30 = vsel %vm1227_vm0, %v2909_v29, 0 }
0x1973   : > { %4562 = vmatpush3.bf16.msra.mxu1 %v2914_v30 }
0x1974   : > { %4573 = vmatprep.subr.bf16.mxu1 %v4955_v1 }
0x197c   : > { %v4831_v31 = vpop.eup %4830 }
0x197d   : > { %v2902_v32 = vsel %vm1223_vm2, %v4831_v31, 0.0 }
0x197e   : > { %2903 = vadd.xlane.f32.xlu1 %v2902_v32  ;;  %v4245_v32 = vld [vmem:[%s5793_s14] ss:$0 sm:$0xff] }
0x19aa   : > { %v2838_v33 = vpop.f32.mrb[52].mxu1 }
0x19ab   : > { %v2844_v34 = vadd.f32 %v2838_v33, %v5465_v51  ;;  %v4553_v35 = vpop.f32.mrb[53].mxu1 }
0x19ac   : > { %v2841_v49 = vpop.f32.mrb[54].mxu1 }
0x19ad   : > { %v4554_v36 = vpop.f32.mrb[55].mxu1 }
0x1a0b   : > { %v2904_v44 = vpop.xlane.xlu1 %2903 }
0x1a0c   : > { %4832 = vrcp.f32 %v2904_v44 }
0x1a16   : > { %v4833_v37 = vpop.eup %4832 }
0x1a17   : > { %v2906_v38 = vmul.f32 %v4833_v37, %v4831_v31  ;;  %v4247_v37 = vld [vmem:[%s5794_s17] ss:$0 sm:$0xff] }
0x1a19   : > { %v2907_v39 = vpack.c.bf16 %v2906_v38, %v2906_v38 }
0x1a1b   : > { %4564 = vmatmul.mubr.msk.bf16.vlgmr.msra.gmra.mrb[56].mxu1 %vm1223_vm2, %v2907_v39 }
0x1a1c   : > { %4577 = vmatprep.mubr.msk.bf16.mxu1 %vm4956_vm1, %v4955_v1  ;;  %4574 = vmatpush3.bf16.msra.mxu1 %v4788_v62 }
0x1a1d   : > { %4575 = vmatprep.subr.bf16.mxu1 %v4955_v1 }
0x1a20   : > { %4576 = vmatpush3.bf16.msra.mxu1 %v4789_v63 }
0x1a21   : > { %4593 = vmatprep.subr.bf16.mxu1 %v4955_v1 }
0x1aee   : > { %v2950_v42 = vpop.f32.mrb[56].mxu1 }
0x1aef   : > { %v2956_v43 = vpack.c.bf16 %v2950_v42, %v2950_v42  ;;  %v4565_v45 = vpop.f32.mrb[57].mxu1 }
0x1af0   : > { %v2953_v46 = vpop.f32.mrb[58].mxu1 }
0x1af1   : > { %v4566_v47 = vpop.f32.mrb[59].mxu1  ;;  %4570 = vmatmul.mubr.msk.bf16.vlgmr.msra.gmra.mrb[56].mxu0 %vm1223_vm2, %v2956_v43  ;;  %v4794_v46 = vld [vmem:[%s5795_s19] sm:$0xff]  }
0x1af2   : > { %4589 = vmatprep.mubr.msk.bf16.mxu0 %vm4956_vm1, %v4955_v1  ;;  %v4795_v47 = vld [vmem:[%s5795_s19 + $0x8] sm:$0xff]  }
0x1bc4   : > { %v2999_v48 = vpop.f32.mrb[56].mxu0 }
0x1bc5   : > { %v3005_v51 = vadd.f32 %v2999_v48, %v2844_v34  ;;  %v4571_v52 = vpop.f32.mrb[57].mxu0 }
0x1bc6   : > { %v3002_v53 = vpop.f32.mrb[58].mxu0  ;;  %v4239_v52 = vld [vmem:[%s5796_s1] ss:$0 sm:$0xff] }
0x1bc7   : > { %v3013_v54 = vadd.f32 %v4232_v50, %v3005_v51  ;;  %v4572_v55 = vpop.f32.mrb[59].mxu0 }
0x1bc9   : > { %v5509_v56 = vadd.f32 %v3013_v54, %v5391_v24  ;;  %v4790_v24 = vld [vmem:[%s5785_s4] sm:$0xff]  }
0x1bca   : > { %4582 = vmatpush3.bf16.msra.mxu0 %v4790_v24 }
0x1bcb   : > { %v3015_v57 = vsel %vm1296_vm3, %v5509_v56, 0.0  ;;  %4583 = vmatprep.subr.bf16.mxu0 %v4955_v1 }
0x1bcc   : > { %3016 = vadd.xlane.f32.xlu1 %v3015_v57 }
0x1bce   : > { %4584 = vmatpush3.bf16.msra.mxu0 %v4791_v0 }
0x1bcf   : > { %4585 = vmatprep.subr.bf16.mxu0 %v4955_v1 }
0x1bd2   : > { %4586 = vmatpush3.bf16.msra.mxu0 %v4792_v21 }
0x1bd3   : > { %4587 = vmatprep.subr.bf16.mxu0 %v4955_v1 }
0x1bd6   : > { %4588 = vmatpush3.bf16.msra.mxu0 %v4793_v22 }
0x1bd7   : > { %4605 = vmatprep.subr.bf16.mxu0 %v4955_v1 }
0x1c59   : > { %v3017_v58 = vpop.xlane.xlu1 %3016 }
0x1c5a   : > { %v3018_v59 = vmul.f32 0.03125, %v3017_v58 }
0x1c5c   : > { %v3019_v17 = vsub.f32 %v5509_v56, %v3018_v59 }
0x1c5e   : > { %v3020_v60 = vmul.f32 %v3019_v17, %v3019_v17 }
0x1c60   : > { %v3021_v61 = vsel %vm1296_vm3, %v3020_v60, 0.0 }
0x1c61   : > { %3022 = vadd.xlane.f32.xlu1 %v3021_v61 }
0x1cee   : > { %v3023_v2 = vpop.xlane.xlu1 %3022 }
0x1cef   : > { %v3024_v3 = vmul.f32 0.03125, %v3023_v2 }
0x1cf1   : > { %v3025_v4 = vadd.f32 1e-05, %v3024_v3 }
0x1cf3   : > { %4834 = vrsqrt.f32 %v3025_v4 }
0x1cfd   : > { %v4835_v5 = vpop.eup %4834 }
0x1cfe   : > { %v3027_v7 = vmul.f32 %v4835_v5, %v3019_v17 }
0x1d00   : > { %v3035_v9 = vmul.f32 %v4233_v6, %v3027_v7 }
0x1d02   : > { %v3043_v11 = vadd.f32 %v4234_v8, %v3035_v9 }
0x1d04   : > { %v3044_v12 = vpack.c.bf16 %v3043_v11, %v3043_v11 }
0x1d06   : > { %4578 = vmatmul.mubr.msk.bf16.vlgmr.msra.gmra.mrb[60].mxu1 %vm1296_vm3, %v3044_v12  ;;  %v4249_v12 = vld [vmem:[%s5157_s27] ss:$0 sm:$0xff] }
0x1d07   : > { %4594 = vmatpush3.bf16.msra.mxu1 %v3213_v13  ;;  %4595 = vmatprep.mubr.msk.bf16.mxu1 %vm4956_vm1, %v4955_v1 }
0x1d08   : > { %4599 = vmatprep.subr.bf16.mxu1 %v4955_v1 }
0x1d0e   : > { %4596 = vmatmul.mubr.msk.bf16.vlgmr.msra.gmra.mrb[64].mxu1 %vm3207_vm6, %v3198_v16 }
0x1d0f   : > { %4600 = vmatpush3.bf16.msra.mxu1 %v3268_v18  ;;  %4601 = vmatprep.mubr.msk.bf16.mxu1 %vm4956_vm1, %v4955_v1 }
0x1d10   : > { %4613 = vmatprep.subr.bf16.mxu1 %v4955_v1 }
0x1d16   : > { %4602 = vmatmul.mubr.msk.bf16.vlgmr.msra.gmra.mrb[68].mxu1 %vm3207_vm6, %v3255_v20 }
0x1d17   : > { %4615 = vmatprep.mubr.msk.bf16.mxu1 %vm4956_vm1, %v4955_v1 }
0x1dd9   : > { %v3105_v25 = vpop.f32.mrb[60].mxu1 }
0x1dda   : > { %v3106_v26 = vadd.f32 %v4235_v23, %v3105_v25  ;;  %v4579_v27 = vpop.f32.mrb[61].mxu1 }
0x1ddb   : > { %v3108_v28 = vpop.f32.mrb[62].mxu1 }
0x1ddc   : > { %v3111_v29 = vmax.f32 %v3106_v26, 0.0  ;;  %v4580_v30 = vpop.f32.mrb[63].mxu1 }
0x1dde   : > { %v3112_v31 = vpack.c.bf16 %v3111_v29, %v3111_v29 }
0x1de0   : > { %4590 = vmatmul.mubr.msk.bf16.vlgmr.msra.gmra.mrb[60].mxu0 %vm2224_vm4, %v3112_v31  ;;  %v4257_v31 = vld [vmem:[%s5162_s12 + $0x4] sm:$0xf] }
0x1de1   : > { %v3249_v33 = vpop.f32.mrb[64].mxu1  ;;  %4609 = vmatprep.mubr.msk.bf16.mxu0 %vm4956_vm1, %v4955_v1  ;;  %4606 = vmatpush3.bf16.msra.mxu0 %v4794_v46 }
0x1de2   : > { %v3250_v34 = vadd.f32 %v4245_v32, %v3249_v33  ;;  %v4597_v35 = vpop.f32.mrb[65].mxu1  ;;  %4607 = vmatprep.subr.bf16.mxu0 %v4955_v1  ;;  %v3608_v32 = vsel %vm1227_vm0, %v4257_v31, 0 }
0x1de3   : > { %v3252_v49 = vpop.f32.mrb[66].mxu1 }
0x1de4   : > { %v5549_v36 = vpack.c.bf16 %v3250_v34, %v3250_v34  ;;  %v4598_v44 = vpop.f32.mrb[67].mxu1 }
0x1de5   : > { %4608 = vmatpush3.bf16.msra.mxu0 %v4795_v47  ;;  %v3486_v44 = vld [vmem:[%s5162_s12] sm:$0xf] }
0x1de6   : > { %3488 = vrot.lane.b32.xlu0 %v5549_v36, %s5773_s10  ;;  %4619 = vmatprep.subr.bf16.mxu0 %v4955_v1 }
0x1de9   : > { %v3304_v38 = vpop.f32.mrb[68].mxu1 }
0x1dea   : > { %v3305_v39 = vadd.f32 %v4247_v37, %v3304_v38  ;;  %v4603_v40 = vpop.f32.mrb[69].mxu1 }
0x1deb   : > { %v3307_v41 = vpop.f32.mrb[70].mxu1 }
0x1dec   : > { %v5554_v42 = vpack.c.bf16 %v3305_v39, %v3305_v39  ;;  %v4604_v43 = vpop.f32.mrb[71].mxu1  ;;  %v3654_v39 = vsel %vm1227_vm0, %v3486_v44, 0 }
0x1dee   : > { %3491 = vrot.lane.b32.xlu1 %v5554_v42, %s5773_s10  ;;  %v3384_v45 = vsel %vm1223_vm2, %v5554_v42, 0 }
0x1def   : > { %4614 = vmatpush3.bf16.xpose.msra.mxu1 %v3384_v45 }
0x1df0   : > { %4625 = vmatprep.subr.bf16.mxu1 %v4955_v1 }
0x1df6   : > { %4616 = vmatmul.mubr.msk.bf16.vlgmr.msra.gmra.mrb[72].mxu1 %vm1223_vm2, %v5549_v36 }
0x1df7   : > { %4627 = vmatprep.mubr.msk.bf16.mxu1 %vm4956_vm1, %v4955_v1 }
0x1e58   : > { %v3489_v51 = vpop.permute.xlu0 %3488 }
0x1e60   : > { %v3492_v48 = vpop.permute.xlu1 %3491 }
0x1e61   : > { %v3497_v50 = vsel %vm1223_vm2, %v3492_v48, 0 }
0x1e62   : > { %4626 = vmatpush3.bf16.xpose.msra.mxu1 %v3497_v50 }
0x1e63   : > { %4637 = vmatprep.subr.bf16.mxu1 %v4955_v1 }
0x1e69   : > { %4628 = vmatmul.mubr.msk.bf16.vlgmr.msra.gmra.mrb[76].mxu1 %vm1223_vm2, %v3489_v51 }
0x1e6a   : > { %4639 = vmatprep.mubr.msk.bf16.mxu1 %vm4956_vm1, %v4955_v1  ;;  %4638 = vmatpush3.bf16.msra.mxu1 %v3608_v32 }
0x1e6b   : > { %4649 = vmatprep.subr.bf16.mxu1 %v4955_v1 }
0x1eb3   : > { %v3189_v53 = vpop.f32.mrb[60].mxu0 }
0x1eb4   : > { %v3190_v54 = vadd.f32 %v4239_v52, %v3189_v53  ;;  %v4591_v55 = vpop.f32.mrb[61].mxu0 }
0x1eb5   : > { %v3192_v57 = vpop.f32.mrb[62].mxu0 }
0x1eb6   : > { %v3195_v58 = vadd.f32 %v3190_v54, %v5509_v56  ;;  %v4592_v59 = vpop.f32.mrb[63].mxu0 }
0x1eb8   : > { %v3310_v17 = vpack.c.bf16 %v3195_v58, %v3195_v58 }
0x1eba   : > { %4610 = vmatmul.mubr.msk.bf16.vlgmr.msra.gmra.mrb[64].mxu0 %vm1296_vm3, %v3310_v17 }
0x1ebb   : > { %4621 = vmatprep.mubr.msk.bf16.mxu0 %vm4956_vm1, %v4955_v1 }
0x1ec9   : > { %v3420_v60 = vpop.f32.mrb[72].mxu1 }
0x1eca   : > { %v3426_v61 = vmul.f32 0.35355338, %v3420_v60  ;;  %v4617_v62 = vpop.f32.mrb[73].mxu1 }
0x1ecb   : > { %v3423_v63 = vpop.f32.mrb[74].mxu1 }
0x1ecc   : > { %v4618_v24 = vpop.f32.mrb[75].mxu1  ;;  %v3427_v0 = vsel %vm1223_vm2, %v3426_v61, -inf }
0x1ecd   : > { %3428 = vmax.xlane.f32.xlu0 %v3427_v0 }
0x1f3c   : > { %v3533_v2 = vpop.f32.mrb[76].mxu1 }
0x1f3d   : > { %v3539_v3 = vmul.f32 0.35355338, %v3533_v2  ;;  %v4629_v4 = vpop.f32.mrb[77].mxu1 }
0x1f3e   : > { %v3536_v56 = vpop.f32.mrb[78].mxu1 }
0x1f3f   : > { %v4630_v5 = vpop.f32.mrb[79].mxu1  ;;  %v3540_v6 = vsel %vm1223_vm2, %v3539_v3, -inf }
0x1f40   : > { %3541 = vmax.xlane.f32.xlu1 %v3540_v6 }
0x1f51   : > { %3698 = vrot.lane.b32.xlu1 %v5554_v42, %s5777_s3 }
0x1f55   : > { %3696 = vrot.lane.b32.xlu1 %v5549_v36, %s5777_s3 }
0x1f5a   : > { %v3429_v7 = vpop.xlane.xlu0 %3428 }
0x1f5b   : > { %v3430_v8 = vsub.f32 %v3426_v61, %v3429_v7 }
0x1f5d   : > { %v3431_v9 = vmul.f32 1.442695, %v3430_v8 }
0x1f5f   : > { %4836 = vpow2.f32 %v3431_v9 }
0x1f69   : > { %v4837_v10 = vpop.eup %4836 }
0x1f6a   : > { %v3433_v11 = vsel %vm1223_vm2, %v4837_v10, 0.0 }
0x1f6b   : > { %3434 = vadd.xlane.f32.xlu0 %v3433_v11 }
0x1f8d   : > { %v3371_v13 = vpop.f32.mrb[64].mxu0 }
0x1f8e   : > { %v3372_v14 = vadd.f32 %v4249_v12, %v3371_v13  ;;  %v4611_v15 = vpop.f32.mrb[65].mxu0 }
0x1f8f   : > { %v3374_v16 = vpop.f32.mrb[66].mxu0 }
0x1f90   : > { %v5587_v18 = vpack.c.bf16 %v3372_v14, %v3372_v14  ;;  %v4612_v19 = vpop.f32.mrb[67].mxu0 }
0x1f92   : > { %v3443_v20 = vsel %vm1227_vm0, %v5587_v18, 0 }
0x1f93   : > { %4620 = vmatpush3.bf16.msra.mxu0 %v3443_v20 }
0x1f94   : > { %4631 = vmatprep.subr.bf16.mxu0 %v4955_v1 }
0x1fcd   : > { %v3542_v21 = vpop.xlane.xlu1 %3541 }
0x1fce   : > { %v3543_v22 = vsub.f32 %v3539_v3, %v3542_v21 }
0x1fd0   : > { %v3544_v23 = vmul.f32 1.442695, %v3543_v22 }
0x1fd1   : > { %v3699_v47 = vpop.permute.xlu1 %3698 }
0x1fd2   : > { %4838 = vpow2.f32 %v3544_v23  ;;  %v3704_v53 = vsel %vm1223_vm2, %v3699_v47, 0 }
0x1fd5   : > { %v3697_v55 = vpop.permute.xlu1 %3696 }
0x1fdc   : > { %v4839_v25 = vpop.eup %4838 }
0x1fdd   : > { %v3546_v26 = vsel %vm1223_vm2, %v4839_v25, 0.0 }
0x1fde   : > { %3547 = vadd.xlane.f32.xlu0 %v3546_v26 }
0x1ff4   : > { %3553 = vrot.lane.b32.xlu0 %v5587_v18, %s5773_s10 }
0x1ff8   : > { %v3435_v27 = vpop.xlane.xlu0 %3434 }
0x1ff9   : > { %4840 = vrcp.f32 %v3435_v27 }
0x2003   : > { %v4841_v28 = vpop.eup %4840 }
0x2004   : > { %v3437_v29 = vmul.f32 %v4841_v28, %v4837_v10 }
0x2006   : > { %v3438_v30 = vpack.c.bf16 %v3437_v29, %v3437_v29 }
0x2008   : > { %4622 = vmatmul.mubr.msk.bf16.vlgmr.msra.gmra.mrb[68].mxu0 %vm1223_vm2, %v3438_v30 }
0x2009   : > { %4633 = vmatprep.mubr.msk.bf16.mxu0 %vm4956_vm1, %v4955_v1 }
0x206b   : > { %v3548_v33 = vpop.xlane.xlu0 %3547 }
0x206c   : > { %4842 = vrcp.f32 %v3548_v33 }
0x206f   : > { %v3554_v34 = vpop.permute.xlu0 %3553 }
0x2070   : > { %v3559_v35 = vsel %vm1227_vm0, %v3554_v34, 0 }
0x2071   : > { %4632 = vmatpush3.bf16.msra.mxu0 %v3559_v35 }
0x2072   : > { %4643 = vmatprep.subr.bf16.mxu0 %v4955_v1 }
0x2076   : > { %v4843_v49 = vpop.eup %4842 }
0x2077   : > { %v3550_v37 = vmul.f32 %v4843_v49, %v4839_v25 }
0x2079   : > { %v3551_v38 = vpack.c.bf16 %v3550_v37, %v3550_v37 }
0x207b   : > { %4634 = vmatmul.mubr.msk.bf16.vlgmr.msra.gmra.mrb[72].mxu0 %vm1223_vm2, %v3551_v38 }
0x207c   : > { %4644 = vmatpush3.bf16.msra.mxu0 %v3654_v39  ;;  %4645 = vmatprep.mubr.msk.bf16.mxu0 %vm4956_vm1, %v4955_v1 }
0x207d   : > { %4655 = vmatprep.subr.bf16.mxu0 %v4955_v1 }
0x20db   : > { %v3479_v40 = vpop.f32.mrb[68].mxu0 }
0x20dc   : > { %v3485_v41 = vpack.c.bf16 %v3479_v40, %v3479_v40  ;;  %v4623_v43 = vpop.f32.mrb[69].mxu0 }
0x20dd   : > { %v3482_v45 = vpop.f32.mrb[70].mxu0 }
0x20de   : > { %v4624_v46 = vpop.f32.mrb[71].mxu0  ;;  %4646 = vmatmul.mubr.msk.bf16.vlgmr.msra.gmra.mrb[76].mxu0 %vm1223_vm2, %v3485_v41 }
0x20df   : > { %4657 = vmatprep.mubr.msk.bf16.mxu0 %vm4956_vm1, %v4955_v1 }
0x214e   : > { %v3595_v48 = vpop.f32.mrb[72].mxu0 }
0x214f   : > { %v3601_v50 = vpack.c.bf16 %v3595_v48, %v3595_v48  ;;  %v4635_v51 = vpop.f32.mrb[73].mxu0 }
0x2150   : > { %v3598_v52 = vpop.f32.mrb[74].mxu0 }
0x2151   : > { %v4636_v54 = vpop.f32.mrb[75].mxu0  ;;  %4640 = vmatmul.mubr.msk.bf16.vlgmr.msra.gmra.mrb[80].mxu1 %vm1223_vm2, %v3601_v50 }
0x2152   : > { %4650 = vmatpush3.bf16.xpose.msra.mxu1 %v3704_v53  ;;  %4651 = vmatprep.mubr.msk.bf16.mxu1 %vm4956_vm1, %v4955_v1 }
0x2153   : > { %4661 = vmatprep.subr.bf16.mxu1 %v4955_v1 }
0x2159   : > { %4652 = vmatmul.mubr.msk.bf16.vlgmr.msra.gmra.mrb[84].mxu1 %vm1223_vm2, %v3697_v55 }
0x215a   : > { %4663 = vmatprep.mubr.msk.bf16.mxu1 %vm4956_vm1, %v4955_v1 }
0x21b1   : > { %v3690_v57 = vpop.f32.mrb[76].mxu0 }
0x21b2   : > { %v4647_v58 = vpop.f32.mrb[77].mxu0 }
0x21b3   : > { %v3693_v59 = vpop.f32.mrb[78].mxu0 }
0x21b4   : > { %v4648_v17 = vpop.f32.mrb[79].mxu0  ;;  %v4268_v59 = vld [vmem:[%s5167_s9] ss:$0 sm:$0xff] }
0x2224   : > { %v3644_v60 = vpop.f32.mrb[80].mxu1 }
0x2225   : > { %v5620_v61 = vadd.f32 %v3690_v57, %v3644_v60  ;;  %v4641_v62 = vpop.f32.mrb[81].mxu1 }
0x2226   : > { %v3647_v63 = vpop.f32.mrb[82].mxu1 }
0x2227   : > { %v4642_v24 = vpop.f32.mrb[83].mxu1 }
0x222c   : > { %v3740_v0 = vpop.f32.mrb[84].mxu1 }
0x222d   : > { %v3746_v2 = vmul.f32 0.35355338, %v3740_v0  ;;  %v4653_v3 = vpop.f32.mrb[85].mxu1 }
0x222e   : > { %v3743_v4 = vpop.f32.mrb[86].mxu1 }
0x222f   : > { %v4654_v56 = vpop.f32.mrb[87].mxu1  ;;  %v3747_v5 = vsel %vm1223_vm2, %v3746_v2, -inf }
0x2230   : > { %3748 = vmax.xlane.f32.xlu0 %v3747_v5 }
0x2246   : > { %3759 = vrot.lane.b32.xlu0 %v5587_v18, %s5777_s3  ;;  %s4270_s3 = sshll.u32 %s5195_s0, 7  ;;  %s4968_s0 = smov [#allocation2]  }
0x2247   : > { %s5660_s8 = scalar_lea.hbm %s5172_s13, %s4270_s3  ;;  %s4856_s17 = sshll.u32 %s4968_s0, 4  ;;  %s4857_s17 = int_to_ptr.vmem [resolvable:$false] %s4856_s17 }
0x2248   : > { %s4858_s1 = scalar_lea.vmem %s4857_s17, 256 }
0x224a   : > { %3857 = vrot.lane.b32.xlu0 %v5549_v36, %s5780_s5 }
0x22bd   : > { %v3749_v6 = vpop.xlane.xlu0 %3748 }
0x22be   : > { %v3750_v7 = vsub.f32 %v3746_v2, %v3749_v6 }
0x22c0   : > { %v3751_v8 = vmul.f32 1.442695, %v3750_v7 }
0x22c1   : > { %v3760_v9 = vpop.permute.xlu0 %3759 }
0x22c2   : > { %4844 = vpow2.f32 %v3751_v8  ;;  %v3765_v10 = vsel %vm1227_vm0, %v3760_v9, 0 }
0x22c3   : > { %4656 = vmatpush3.bf16.msra.mxu0 %v3765_v10 }
0x22c4   : > { %4667 = vmatprep.subr.bf16.mxu0 %v4955_v1 }
0x22c5   : > { %v3858_v20 = vpop.permute.xlu0 %3857 }
0x22cc   : > { %v4845_v11 = vpop.eup %4844 }
0x22cd   : > { %v3753_v12 = vsel %vm1223_vm2, %v4845_v11, 0.0 }
0x22ce   : > { %3754 = vadd.xlane.f32.xlu1 %v3753_v12 }
0x22df   : > { %3859 = vrot.lane.b32.xlu1 %v5554_v42, %s5780_s5  ;;  %v4262_v42 = vld [vmem:[%s5162_s12 + $0x8] sm:$0xf] }
0x22e0   : > { %v3814_v21 = vsel %vm1227_vm0, %v4262_v42, 0 }
0x22e1   : > { %4662 = vmatpush3.bf16.msra.mxu1 %v3814_v21 }
0x22e2   : > { %4673 = vmatprep.subr.bf16.mxu1 %v4955_v1 }
0x235b   : > { %v3755_v13 = vpop.xlane.xlu1 %3754 }
0x235c   : > { %4846 = vrcp.f32 %v3755_v13 }
0x235f   : > { %v3860_v15 = vpop.permute.xlu1 %3859 }
0x2360   : > { %v3865_v19 = vsel %vm1223_vm2, %v3860_v15, 0 }
0x2366   : > { %v4847_v36 = vpop.eup %4846 }
0x2367   : > { %v3757_v14 = vmul.f32 %v4847_v36, %v4845_v11 }
0x2369   : > { %v3758_v16 = vpack.c.bf16 %v3757_v14, %v3757_v14 }
0x236b   : > { %4658 = vmatmul.mubr.msk.bf16.vlgmr.msra.gmra.mrb[80].mxu0 %vm1223_vm2, %v3758_v16 }
0x236c   : > { %4668 = vmatpush3.bf16.xpose.msra.mxu0 %v3865_v19  ;;  %4669 = vmatprep.mubr.msk.bf16.mxu0 %vm4956_vm1, %v4955_v1 }
0x236d   : > { %4679 = vmatprep.subr.bf16.mxu0 %v4955_v1 }
0x2373   : > { %4670 = vmatmul.mubr.msk.bf16.vlgmr.msra.gmra.mrb[84].mxu0 %vm1223_vm2, %v3858_v20 }
0x2374   : > { %4681 = vmatprep.mubr.msk.bf16.mxu0 %vm4956_vm1, %v4955_v1 }
0x243e   : > { %v3801_v22 = vpop.f32.mrb[80].mxu0 }
0x243f   : > { %v3807_v23 = vpack.c.bf16 %v3801_v22, %v3801_v22  ;;  %v4659_v25 = vpop.f32.mrb[81].mxu0 }
0x2440   : > { %v3804_v26 = vpop.f32.mrb[82].mxu0 }
0x2441   : > { %v4660_v27 = vpop.f32.mrb[83].mxu0  ;;  %4664 = vmatmul.mubr.msk.bf16.vlgmr.msra.gmra.mrb[88].mxu1 %vm1223_vm2, %v3807_v23 }
0x2442   : > { %4675 = vmatprep.mubr.msk.bf16.mxu1 %vm4956_vm1, %v4955_v1 }
0x2446   : > { %v3901_v28 = vpop.f32.mrb[84].mxu0 }
0x2447   : > { %v3907_v29 = vmul.f32 0.35355338, %v3901_v28  ;;  %v4671_v30 = vpop.f32.mrb[85].mxu0 }
0x2448   : > { %v3904_v31 = vpop.f32.mrb[86].mxu0 }
0x2449   : > { %v4672_v32 = vpop.f32.mrb[87].mxu0  ;;  %v3908_v33 = vsel %vm1223_vm2, %v3907_v29, -inf }
0x244a   : > { %3909 = vmax.xlane.f32.xlu1 %v3908_v33 }
0x24d7   : > { %v3910_v34 = vpop.xlane.xlu1 %3909 }
0x24d8   : > { %v3911_v35 = vsub.f32 %v3907_v29, %v3910_v34 }
0x24da   : > { %v3912_v49 = vmul.f32 1.442695, %v3911_v35 }
0x24dc   : > { %4848 = vpow2.f32 %v3912_v49 }
0x24e6   : > { %v4849_v44 = vpop.eup %4848 }
0x24e7   : > { %v3914_v37 = vsel %vm1223_vm2, %v4849_v44, 0.0 }
0x24e8   : > { %3915 = vadd.xlane.f32.xlu0 %v3914_v37 }
0x24fe   : > { %3920 = vrot.lane.b32.xlu0 %v5587_v18, %s5780_s5  ;;  %v4266_v18 = vld [vmem:[%s5162_s12 + $0xc] sm:$0xf]  ;;  %s1197_s5 = sand.u32 1, %s4906_s23  }
0x24ff   : > { %v3975_v51 = vsel %vm1227_vm0, %v4266_v18, 0  ;;  %s4167_s10 = sshll.u32 %s1197_s5, 3  ;;  %s4028_s7 = scalar_lea.sflag [#allocation3], %s1197_s5 }
0x2500   : > { %4680 = vmatpush3.bf16.msra.mxu0 %v3975_v51  ;;  %s1199_s6 = scalar_lea.vmem [#allocation2], %s4167_s10 }
0x2501   : > { %s4041_s18 = sshll.u32 %s1199_s6, 4  ;;  %s5662_s18 = int_to_ptr.vmem [resolvable:$true] %s4041_s18 }
0x2502   : > { %s4852_s14 = scalar_lea.vmem %s5662_s18, 128  ;;  %p4859_p0 = scmp.lt.s32.totalorder %s5662_s18, %s4857_s17 }
0x2503   : > { %p4853_p11 = scmp.ne.s32.totalorder %s5662_s18, %s4852_s14  ;;  %p4860_p1 = scmp.lt.s32.totalorder %s4858_s1, %s4852_s14 }
0x2505   : > { %p4854_p12 = pnand %p4853_p11, %p5212_p5  ;;  %p4861_p2 = por %p4860_p1, %p4859_p0 }
0x2507   : > { %p4855_p13 = pneg %p4854_p12 }
0x2509   : > { %p4862_p3 = pnand %p4861_p2, %p4855_p13 }
0x2514   : > { %v3850_v1 = vpop.f32.mrb[88].mxu1 }
0x2515   : > { %v3856_v38 = vadd.f32 %v3850_v1, %v5620_v61  ;;  %v4665_v39 = vpop.f32.mrb[89].mxu1 }
0x2516   : > { %v3853_v40 = vpop.f32.mrb[90].mxu1 }
0x2517   : > { %v4666_v41 = vpop.f32.mrb[91].mxu1 }
0x2575   : > { %v3916_v43 = vpop.xlane.xlu0 %3915 }
0x2576   : > { %4850 = vrcp.f32 %v3916_v43 }
0x2579   : > { %v3921_v45 = vpop.permute.xlu0 %3920 }
0x257a   : > { %v3926_v46 = vsel %vm1227_vm0, %v3921_v45, 0 }
0x257b   : > { %4674 = vmatpush3.bf16.msra.mxu1 %v3926_v46 }
0x2580   : > { %v4851_v47 = vpop.eup %4850 }
0x2581   : > { %v3918_v48 = vmul.f32 %v4851_v47, %v4849_v44 }
0x2583   : > { %v3919_v50 = vpack.c.bf16 %v3918_v48, %v3918_v48 }
0x2585   : > { %4676 = vmatmul.mubr.msk.bf16.vlgmr.msra.gmra.mrb[92].mxu1 %vm1223_vm2, %v3919_v50 }
0x2658   : > { %v3962_v52 = vpop.f32.mrb[92].mxu1 }
0x2659   : > { %v3968_v53 = vpack.c.bf16 %v3962_v52, %v3962_v52  ;;  %v4677_v54 = vpop.f32.mrb[93].mxu1 }
0x265a   : > { %v3965_v55 = vpop.f32.mrb[94].mxu1 }
0x265b   : > { %v4678_v57 = vpop.f32.mrb[95].mxu1  ;;  %4682 = vmatmul.mubr.msk.bf16.vlgmr.msra.gmra.mrb[88].mxu0 %vm1223_vm2, %v3968_v53 }
0x272e   : > { %v4011_v58 = vpop.f32.mrb[88].mxu0 }
0x272f   : > { %v4017_v17 = vadd.f32 %v4011_v58, %v3856_v38  ;;  %v4683_v60 = vpop.f32.mrb[89].mxu0 }
0x2730   : > { %v4014_v61 = vpop.f32.mrb[90].mxu0 }
0x2731   : > { %v4025_v62 = vadd.f32 %v4268_v59, %v4017_v17  ;;  %v4684_v63 = vpop.f32.mrb[91].mxu0 }
0x2733   : > { %4026 = vst.msk [vmem:[%s1199_s6] sm:$0xff] %vm1296_vm3, %v4025_v62 }
0x2734   : > { %4865 = shalt.err (!%p4862_p3)
}
0x2735   : > { %s4866_s5 = scalar_lea.hbm %s5660_s8, 128  ;;  %s4870_s10 = scalar_lea.hbm %s5172_s13, 256 }
0x2736   : > { %p4867_p4 = scmp.ne.s32.totalorder %s5660_s8, %s4866_s5  ;;  %p4871_p9 = scmp.lt.u32.totalorder %s5660_s8, %s5172_s13 }
0x2737   : > { %p4872_p10 = scmp.lt.u32.totalorder %s4870_s10, %s4866_s5  ;;  %p4874_p12 = scmp.lt.u32.totalorder %s4866_s5, %s5660_s8 }
0x2738   : > { %p4868_p7 = pnand %p4867_p4, %p5212_p5 }
0x2739   : > { %p4873_p11 = por %p4872_p10, %p4871_p9 }
0x273a   : > { %p4869_p8 = pneg %p4868_p7 }
0x273b   : > { %p4875_p0 = por %p4874_p12, %p4873_p11 }
0x273d   : > { %p4876_p13 = pnand %p4875_p0, %p4869_p8 }
0x273f   : > { %4879 = shalt.err (!%p4876_p13)
}
0x2740   : > { %4685 = dma.vmem_to_hbm [thread:$0]  (%p5212_p5), %s5662_s18, 128, %s5660_s8, %s4028_s7  }
0x2741 PF: > { %p4691_p1 = scmp.ge.s32.totalorder %s4914_s28, 2  ;;  %s4053_s3 = sand.u32 1, %s4902_s22  }
0x2742   : > { %s4054_s6 = scalar_lea.sflag [#allocation3], %s4053_s3 }
0x2743   : > { %p4688_p2 = pnand %p4691_p1, %p5216_p6 }
0x2745   : > { %4897 = dma.done.wait (!%p4688_p2), %s4054_s6, 128  }
0x2746   : > { %4899 = vsyncadd (!%p4688_p2), %s4054_s6, 4294967168  ;;  %p89_p3 = scmp.ge.s32.totalorder %s5199_s2, 4   ;;  %s5797_s22 = smov %s4906_s23 }
0x2747   : > { %s5798_s23 = smov %s4910_s26  ;;  %s5799_s26 = smov %s5210_s11 }
0x2748   : > { %s5800_s28 = smov %s5199_s2  ;;  %91 = sbr.rel (!%p89_p3) target bundleno = 78 (0x4e), region = 265 }
0x274f   :  { %4059 = vsyncpa [#allocation3], 1 }
0x2750   :  { %4061 = vsyncpa [#allocation3 + $0x1], 1 }

</bundles_post_ra>
